<compile_context>
chip_gen: v6e
topology: v6e:2x2x1
jax: 0.10.0
libtpu: 0.0.40
codegen_flags: <defaults>
</compile_context>

<pallas_src>
import jax
import jax.numpy as jnp
from jax.experimental import pallas as pl
from jax.experimental.pallas import tpu as pltpu

D = 512  # fixed by nn.Linear(512, 512, bias=False)


def _attn_kernel(x_ref, w_ref, o_ref):
    # x_ref block: (TB, S, D) f32; w_ref: (D, 3D) bf16; o_ref block: (TB, S, D)
    tb, s, d = x_ref.shape

    # --- fused QKV projection: one (TB*S, D) @ (D, 3D) MXU pass, bf16 in / f32 acc
    x = x_ref[...].reshape(tb * s, d).astype(jnp.bfloat16)
    qkv = jnp.dot(x, w_ref[...], preferred_element_type=jnp.float32)   # (TB*S, 3D) f32
    # Cast the whole result to bf16 once; slice the bf16 buffer so the f32
    # intermediate dies early (lower peak VMEM / vreg pressure).
    qkv = qkv.astype(jnp.bfloat16).reshape(tb, s, 3 * d)
    q = qkv[:, :, :d]                                                   # (TB, S, D) bf16
    k = qkv[:, :, d:2 * d]
    v = qkv[:, :, 2 * d:]

    # --- scores: batched contraction of the last dims (no explicit k transpose)
    scores = jnp.einsum("bqd,bkd->bqk", q, k,
                        preferred_element_type=jnp.float32)             # (TB, S, S) f32

    # --- numerically-stable softmax over keys; the *5 scale folded into the exponent
    m = jnp.max(scores, axis=-1, keepdims=True)
    p = jnp.exp((scores - m) * 5.0)
    denom = jnp.sum(p, axis=-1, keepdims=True)
    p = p * pl.reciprocal(denom, approx=True)

    # TODO(synk): nn.Dropout(0.1) is identity in eval mode; training-mode RNG
    # dropout is intentionally not reproduced.

    # --- weighted sum of values; lane-dense (TB, S, D) store (transpose in wrapper)
    out = jnp.einsum("bqk,bkd->bqd", p.astype(jnp.bfloat16), v,
                     preferred_element_type=jnp.float32)                # (TB, S, D)
    o_ref[...] = out.astype(o_ref.dtype)
    # TODO(synk): for long sequences the (S, S) scores tile should move to a
    # KV-tiled flash-style online softmax (extra grid axis marked "arbitrary").


def fuse_qkv_weights(w_key, w_query, w_value):
    """One-time parameter prep: W_qkv = [Wq.T | Wk.T | Wv.T] in bf16 (D, 3D)."""
    w_qkv = jnp.concatenate(
        [jnp.transpose(w_query), jnp.transpose(w_key), jnp.transpose(w_value)],
        axis=1)
    return w_qkv.astype(jnp.bfloat16)


def _vmem_budget_bytes():
    """Scoped VMEM budget to plan against (generation-aware, conservative fallback)."""
    try:
        cap = int(pltpu.get_tpu_info().vmem_capacity_bytes)
    except Exception:
        cap = 64 << 20  # v7x per-TensorCore physical -- safe lower bound
    return min(cap // 2, 64 << 20)


def _pick_batch_tile(B, S, budget_bytes):
    """Largest divisor of B whose flattened row count fits the VMEM budget.

    Caps the tile at B//2 (when B >= 2) so the grid has length >= 2 and both
    v7x TensorCores get work; costs one ~0.35 us grid step elsewhere.
    """
    # Per-row bytes: x + out double-buffered f32, f32 qkv transient, bf16 qkv,
    # bf16 q/k/v slices, f32 out accum, plus scores + p f32 (S lanes each).
    per_row = (2 * D * 4) + (2 * D * 4) + (3 * D * 4) + (3 * D * 2) + (3 * D * 2) \
              + (D * 4) + (2 * S * 4)
    fixed = 2 * (3 * D * D * 2)        # weight (assume double-buffered, worst case)
    usable = max(budget_bytes - fixed - (2 << 20), budget_bytes // 4)
    max_rows = max(1, usable // per_row)
    if S > max_rows:
        # TODO(synk): implement the KV-tiled online-softmax path for large S.
        raise NotImplementedError(
            f"S={S} exceeds the single-tile VMEM budget; KV-tiled flash path needed")
    upper = B if B < 2 else max(1, B // 2)
    tb = 1
    for cand in range(1, upper + 1):
        if B % cand == 0 and cand * S <= max_rows:
            tb = cand
    return tb


def _build_call(B, S, tb, out_dtype, vmem_limit, single_buffer_weights):
    if single_buffer_weights:
        # Weight block index never changes -> one buffer is enough.
        w_spec = pl.BlockSpec((D, 3 * D), lambda b: (0, 0),
                              pipeline_mode=pl.Buffered(1))
    else:
        w_spec = pl.BlockSpec((D, 3 * D), lambda b: (0, 0))
    return pl.pallas_call(
        _attn_kernel,
        out_shape=jax.ShapeDtypeStruct((B, S, D), out_dtype),
        grid_spec=pltpu.PrefetchScalarGridSpec(
            num_scalar_prefetch=0,
            grid=(B // tb,),
            in_specs=[
                pl.BlockSpec((tb, S, D), lambda b: (b, 0, 0)),   # x tile
                w_spec,                                          # fused bf16 W_qkv
            ],
            out_specs=pl.BlockSpec((tb, S, D), lambda b: (b, 0, 0)),  # lane-dense
        ),
        compiler_params=pltpu.CompilerParams(
            dimension_semantics=("parallel",),
            vmem_limit_bytes=vmem_limit,
        ),
    )


def attention_forward(x, w_qkv):
    """x: (B, S, D) f32; w_qkv: (D, 3D) bf16 from fuse_qkv_weights. Returns (B, D, S)."""
    B, S, d = x.shape
    assert d == D
    assert w_qkv.shape == (D, 3 * D)

    budget = _vmem_budget_bytes()
    tb = _pick_batch_tile(B, S, budget)

    try:
        out = _build_call(B, S, tb, x.dtype, budget, True)(x, w_qkv)
    except Exception:
        # pipeline_mode / Buffered not supported on this jax version: fall back
        # to the default (double-buffered) weight spec -- strictly conservative.
        out = _build_call(B, S, tb, x.dtype, budget, False)(x, w_qkv)

    # Torch layout: final .transpose(-2, -1) done cheaply outside the kernel.
    return jnp.swapaxes(out, -2, -1)


def reference_forward(x, w_qkv):
    """Pure-JAX reference mirroring the kernel's bf16-operand / f32-accum policy."""
    d = x.shape[-1]
    xb = x.astype(jnp.bfloat16)
    qkv = jnp.einsum("bsd,de->bse", xb, w_qkv,
                     preferred_element_type=jnp.float32).astype(jnp.bfloat16)
    q = qkv[..., :d]
    k = qkv[..., d:2 * d]
    v = qkv[..., 2 * d:]
    s = jnp.einsum("bqd,bkd->bqk", q, k, preferred_element_type=jnp.float32) * 5.0
    p = jax.nn.softmax(s, axis=-1)
    out = jnp.einsum("bqk,bkd->bqd", p.astype(jnp.bfloat16), v,
                     preferred_element_type=jnp.float32)
    return jnp.swapaxes(out, -2, -1)


if __name__ == "__main__":
    key = jax.random.PRNGKey(0)
    kx, kq, kk, kv = jax.random.split(key, 4)

    B, S = 2, 8
    x = jax.random.normal(kx, (B, S, D), dtype=jnp.float32)

    # Deterministic parameter init (PyTorch Linear shape: (out, in)).
    bound = 1.0 / jnp.sqrt(jnp.float32(D))
    w_query = jax.random.uniform(kq, (D, D), jnp.float32, -bound, bound)
    w_key = jax.random.uniform(kk, (D, D), jnp.float32, -bound, bound)
    w_value = jax.random.uniform(kv, (D, D), jnp.float32, -bound, bound)

    # Weight fusion / transpose / bf16 cast happens ONCE, outside the forward path.
    w_qkv = fuse_qkv_weights(w_key, w_query, w_value)

    out = attention_forward(x, w_qkv)
    out = jax.block_until_ready(out)

    ref = reference_forward(x, w_qkv)
    assert out.shape == (B, D, S), out.shape
    assert jnp.allclose(out, ref, atol=2e-2, rtol=2e-2), "mismatch vs reference"

    print("KERNEL_OK")
</pallas_src>

<mosaic_0001>
module attributes {stable_mosaic.version = 11 : i64} {
  func.func @_attn_kernel(%arg0: i32, %arg1: memref<1x8x512xf32, #tpu.memory_space<vmem>>, %arg2: memref<512x1536xbf16, #tpu.memory_space<vmem>>, %arg3: memref<1x8x512xf32, #tpu.memory_space<vmem>>) attributes {dimension_semantics = [#tpu.dimension_semantics<parallel>], iteration_bounds = array<i64: 2>, scalar_prefetch = 0 : i64, scratch_operands = 0 : i64, tpu.core_type = #tpu.core_type<tc>, window_params = [{transform_indices = @transform_0, window_bounds = array<i64: 1, 8, 512>}, {pipeline_mode = #tpu.pipeline_mode<synchronous>, transform_indices = @transform_1, window_bounds = array<i64: 512, 1536>}, {transform_indices = @transform_2, window_bounds = array<i64: 1, 8, 512>}]} {
    %c0 = arith.constant 0 : index
    %c0_0 = arith.constant 0 : index
    %c0_1 = arith.constant 0 : index
    %0 = vector.load %arg1[%c0, %c0_0, %c0_1] : memref<1x8x512xf32, #tpu.memory_space<vmem>>, vector<1x8x512xf32>
    %1 = vector.shape_cast %0 : vector<1x8x512xf32> to vector<8x512xf32>
    %2 = arith.truncf %1 : vector<8x512xf32> to vector<8x512xbf16>
    %c0_2 = arith.constant 0 : index
    %c0_3 = arith.constant 0 : index
    %3 = vector.load %arg2[%c0_2, %c0_3] : memref<512x1536xbf16, #tpu.memory_space<vmem>>, vector<512x1536xbf16>
    %cst = arith.constant dense<0.000000e+00> : vector<8x1536xf32>
    %4 = tpu.matmul %2, %3, %cst {dimension_numbers = #tpu.dot_dimension_numbers<[1], [0], [0], [1], [0, 0, 1, 1], [], []>} : vector<8x512xbf16>, vector<512x1536xbf16>, vector<8x1536xf32> -> vector<8x1536xf32>
    %5 = arith.truncf %4 : vector<8x1536xf32> to vector<8x1536xbf16>
    %6 = vector.shape_cast %5 : vector<8x1536xbf16> to vector<1x8x1536xbf16>
    %7 = vector.extract_strided_slice %6 {offsets = [0, 0, 0], sizes = [1, 8, 512], strides = [1, 1, 1]} : vector<1x8x1536xbf16> to vector<1x8x512xbf16>
    %8 = vector.extract_strided_slice %6 {offsets = [0, 0, 512], sizes = [1, 8, 512], strides = [1, 1, 1]} : vector<1x8x1536xbf16> to vector<1x8x512xbf16>
    %9 = vector.extract_strided_slice %6 {offsets = [0, 0, 1024], sizes = [1, 8, 512], strides = [1, 1, 1]} : vector<1x8x1536xbf16> to vector<1x8x512xbf16>
    "tpu.trace_start"() <{level = 10 : i32, message = "bqd,bkd->bqk"}> : () -> ()
    %cst_4 = arith.constant dense<0.000000e+00> : vector<1x8x8xf32>
    %10 = tpu.matmul %7, %8, %cst_4 {dimension_numbers = #tpu.dot_dimension_numbers<[2], [2], [1], [1], [0, 0, 0, 1, 1, 1], [0], [0]>} : vector<1x8x512xbf16>, vector<1x8x512xbf16>, vector<1x8x8xf32> -> vector<1x8x8xf32>
    "tpu.trace_stop"() : () -> ()
    %cst_5 = arith.constant dense<0xFF800000> : vector<1x8xf32>
    %11 = vector.multi_reduction <maximumf>, %10, %cst_5 [2] : vector<1x8x8xf32> to vector<1x8xf32>
    %12 = vector.shape_cast %11 : vector<1x8xf32> to vector<1x8x1xf32>
    %13 = vector.broadcast %12 : vector<1x8x1xf32> to vector<1x8x8xf32>
    %14 = arith.subf %10, %13 : vector<1x8x8xf32>
    %cst_6 = arith.constant 5.000000e+00 : f32
    %15 = vector.broadcast %cst_6 : f32 to vector<1x8x8xf32>
    %16 = arith.mulf %14, %15 : vector<1x8x8xf32>
    %17 = math.exp %16 : vector<1x8x8xf32>
    %cst_7 = arith.constant dense<0.000000e+00> : vector<1x8xf32>
    %18 = vector.multi_reduction <add>, %17, %cst_7 [2] : vector<1x8x8xf32> to vector<1x8xf32>
    %19 = vector.shape_cast %18 : vector<1x8xf32> to vector<1x8x1xf32>
    %20 = tpu.reciprocal %19 {approx = true} : vector<1x8x1xf32> -> vector<1x8x1xf32>
    %21 = vector.broadcast %20 : vector<1x8x1xf32> to vector<1x8x8xf32>
    %22 = arith.mulf %17, %21 : vector<1x8x8xf32>
    %23 = arith.truncf %22 : vector<1x8x8xf32> to vector<1x8x8xbf16>
    "tpu.trace_start"() <{level = 10 : i32, message = "bqk,bkd->bqd"}> : () -> ()
    %cst_8 = arith.constant dense<0.000000e+00> : vector<1x8x512xf32>
    %24 = tpu.matmul %23, %9, %cst_8 {dimension_numbers = #tpu.dot_dimension_numbers<[2], [1], [1], [2], [0, 0, 0, 1, 1, 2], [0], [0]>} : vector<1x8x8xbf16>, vector<1x8x512xbf16>, vector<1x8x512xf32> -> vector<1x8x512xf32>
    "tpu.trace_stop"() : () -> ()
    %c0_9 = arith.constant 0 : index
    %c0_10 = arith.constant 0 : index
    %c0_11 = arith.constant 0 : index
    %25 = vector.load %arg3[%c0_9, %c0_10, %c0_11] : memref<1x8x512xf32, #tpu.memory_space<vmem>>, vector<1x8x512xf32>
    tpu.vector_store %arg3[%c0_9, %c0_10, %c0_11], %24 {strides = array<i32>} : memref<1x8x512xf32, #tpu.memory_space<vmem>>, vector<1x8x512xf32>,
    return
  }
  func.func @transform_0(%arg0: i32) -> (i32, i32, i32) {
    %c0_i32 = arith.constant 0 : i32
    %c0_i32_0 = arith.constant 0 : i32
    %c0_i32_1 = arith.constant 0 : i32
    return %arg0, %c0_i32, %c0_i32_0 : i32, i32, i32
  }
  func.func @transform_1(%arg0: i32) -> (i32, i32) {
    %c0_i32 = arith.constant 0 : i32
    %c0_i32_0 = arith.constant 0 : i32
    %c0_i32_1 = arith.constant 0 : i32
    return %c0_i32, %c0_i32_0 : i32, i32
  }
  func.func @transform_2(%arg0: i32) -> (i32, i32, i32) {
    %c0_i32 = arith.constant 0 : i32
    %c0_i32_0 = arith.constant 0 : i32
    %c0_i32_1 = arith.constant 0 : i32
    return %arg0, %c0_i32, %c0_i32_0 : i32, i32, i32
  }
}

module attributes {stable_mosaic.version = 11 : i64} {
  func.func @_attn_kernel(%arg0: i32, %arg1: memref<1x8x512xf32, #tpu.memory_space<vmem>>, %arg2: memref<512x1536xbf16, #tpu.memory_space<vmem>>, %arg3: memref<1x8x512xf32, #tpu.memory_space<vmem>>) attributes {dimension_semantics = [#tpu.dimension_semantics<parallel>], iteration_bounds = array<i64: 2>, scalar_prefetch = 0 : i64, scratch_operands = 0 : i64, tpu.core_type = #tpu.core_type<tc>, window_params = [{transform_indices = @transform_0, window_bounds = array<i64: 1, 8, 512>}, {pipeline_mode = #tpu.pipeline_mode<synchronous>, transform_indices = @transform_1, window_bounds = array<i64: 512, 1536>}, {transform_indices = @transform_2, window_bounds = array<i64: 1, 8, 512>}]} {
    %c0 = arith.constant 0 : index
    %c0_0 = arith.constant 0 : index
    %c0_1 = arith.constant 0 : index
    %0 = vector.load %arg1[%c0, %c0_0, %c0_1] : memref<1x8x512xf32, #tpu.memory_space<vmem>>, vector<1x8x512xf32>
    %1 = vector.shape_cast %0 : vector<1x8x512xf32> to vector<8x512xf32>
    %2 = arith.truncf %1 : vector<8x512xf32> to vector<8x512xbf16>
    %c0_2 = arith.constant 0 : index
    %c0_3 = arith.constant 0 : index
    %3 = vector.load %arg2[%c0_2, %c0_3] : memref<512x1536xbf16, #tpu.memory_space<vmem>>, vector<512x1536xbf16>
    %cst = arith.constant dense<0.000000e+00> : vector<8x1536xf32>
    %4 = tpu.matmul %2, %3, %cst {dimension_numbers = #tpu.dot_dimension_numbers<[1], [0], [0], [1], [0, 0, 1, 1], [], []>} : vector<8x512xbf16>, vector<512x1536xbf16>, vector<8x1536xf32> -> vector<8x1536xf32>
    %5 = arith.truncf %4 : vector<8x1536xf32> to vector<8x1536xbf16>
    %6 = vector.shape_cast %5 : vector<8x1536xbf16> to vector<1x8x1536xbf16>
    %7 = vector.extract_strided_slice %6 {offsets = [0, 0, 0], sizes = [1, 8, 512], strides = [1, 1, 1]} : vector<1x8x1536xbf16> to vector<1x8x512xbf16>
    %8 = vector.extract_strided_slice %6 {offsets = [0, 0, 512], sizes = [1, 8, 512], strides = [1, 1, 1]} : vector<1x8x1536xbf16> to vector<1x8x512xbf16>
    %9 = vector.extract_strided_slice %6 {offsets = [0, 0, 1024], sizes = [1, 8, 512], strides = [1, 1, 1]} : vector<1x8x1536xbf16> to vector<1x8x512xbf16>
    "tpu.trace_start"() <{level = 10 : i32, message = "bqd,bkd->bqk"}> : () -> ()
    %cst_4 = arith.constant dense<0.000000e+00> : vector<1x8x8xf32>
    %10 = tpu.matmul %7, %8, %cst_4 {dimension_numbers = #tpu.dot_dimension_numbers<[2], [2], [1], [1], [0, 0, 0, 1, 1, 1], [0], [0]>} : vector<1x8x512xbf16>, vector<1x8x512xbf16>, vector<1x8x8xf32> -> vector<1x8x8xf32>
    "tpu.trace_stop"() : () -> ()
    %cst_5 = arith.constant dense<0xFF800000> : vector<1x8xf32>
    %11 = vector.multi_reduction <maximumf>, %10, %cst_5 [2] : vector<1x8x8xf32> to vector<1x8xf32>
    %12 = vector.shape_cast %11 : vector<1x8xf32> to vector<1x8x1xf32>
    %13 = vector.broadcast %12 : vector<1x8x1xf32> to vector<1x8x8xf32>
    %14 = arith.subf %10, %13 : vector<1x8x8xf32>
    %cst_6 = arith.constant 5.000000e+00 : f32
    %15 = vector.broadcast %cst_6 : f32 to vector<1x8x8xf32>
    %16 = arith.mulf %14, %15 : vector<1x8x8xf32>
    %17 = math.exp %16 : vector<1x8x8xf32>
    %cst_7 = arith.constant dense<0.000000e+00> : vector<1x8xf32>
    %18 = vector.multi_reduction <add>, %17, %cst_7 [2] : vector<1x8x8xf32> to vector<1x8xf32>
    %19 = vector.shape_cast %18 : vector<1x8xf32> to vector<1x8x1xf32>
    %20 = tpu.reciprocal %19 {approx = true} : vector<1x8x1xf32> -> vector<1x8x1xf32>
    %21 = vector.broadcast %20 : vector<1x8x1xf32> to vector<1x8x8xf32>
    %22 = arith.mulf %17, %21 : vector<1x8x8xf32>
    %23 = arith.truncf %22 : vector<1x8x8xf32> to vector<1x8x8xbf16>
    "tpu.trace_start"() <{level = 10 : i32, message = "bqk,bkd->bqd"}> : () -> ()
    %cst_8 = arith.constant dense<0.000000e+00> : vector<1x8x512xf32>
    %24 = tpu.matmul %23, %9, %cst_8 {dimension_numbers = #tpu.dot_dimension_numbers<[2], [1], [1], [2], [0, 0, 0, 1, 1, 2], [0], [0]>} : vector<1x8x8xbf16>, vector<1x8x512xbf16>, vector<1x8x512xf32> -> vector<1x8x512xf32>
    "tpu.trace_stop"() : () -> ()
    %c0_9 = arith.constant 0 : index
    %c0_10 = arith.constant 0 : index
    %c0_11 = arith.constant 0 : index
    %25 = vector.load %arg3[%c0_9, %c0_10, %c0_11] : memref<1x8x512xf32, #tpu.memory_space<vmem>>, vector<1x8x512xf32>
    tpu.vector_store %arg3[%c0_9, %c0_10, %c0_11], %24 {strides = array<i32>} : memref<1x8x512xf32, #tpu.memory_space<vmem>>, vector<1x8x512xf32>,
    return
  }
  func.func @transform_0(%arg0: i32) -> (i32, i32, i32) {
    %c0_i32 = arith.constant 0 : i32
    %c0_i32_0 = arith.constant 0 : i32
    %c0_i32_1 = arith.constant 0 : i32
    return %arg0, %c0_i32, %c0_i32_0 : i32, i32, i32
  }
  func.func @transform_1(%arg0: i32) -> (i32, i32) {
    %c0_i32 = arith.constant 0 : i32
    %c0_i32_0 = arith.constant 0 : i32
    %c0_i32_1 = arith.constant 0 : i32
    return %c0_i32, %c0_i32_0 : i32, i32
  }
  func.func @transform_2(%arg0: i32) -> (i32, i32, i32) {
    %c0_i32 = arith.constant 0 : i32
    %c0_i32_0 = arith.constant 0 : i32
    %c0_i32_1 = arith.constant 0 : i32
    return %arg0, %c0_i32, %c0_i32_0 : i32, i32, i32
  }
}

</mosaic_0001>

<bundles_post_ra>
// kernel: tpu_custom_call.1
= control target key start
LH: loop header
LB: loop body
LE: loop exit
PB: predicated region body
PF: predicated region fallthrough
CT: control target
= control target key end

     0   :  { %7 = vsyncpa [#allocation3], 0  ;;  %s4708_s0 = inlined_call_operand.hbm [shape: f32[2,8,512], index: 0, kind: input, shape index: {}]   ;;  %s4709_s1 = inlined_call_operand.hbm [shape: bf16[512,1536], index: 1, kind: input, shape index: {}]   ;;  %s4710_s2 = inlined_call_operand.hbm [shape: f32[2,8,512], index: 2, kind: output, shape index: {}]  }
   0x1   :  { %9 = vsyncpa [#allocation3 + $0x1], 0 }
   0x2   :  { %10 = vsyncpa [#allocation6], 0 }
   0x3   :  { %11 = vsyncpa [#allocation4], 0 }
   0x4   :  { %13 = vsyncpa [#allocation4 + $0x1], 0  ;;  %s4474_s9 = smov 0   ;;  %s4476_s10 = smov 0  }
   0x5   :  { %s4478_s11 = smov 0   ;;  %s4480_s12 = smov 0  }
   0x6 LB: > { %s4495_s13 = sadd.s32 4294967295, %s4451_s12   ;;  %s3283_s14 = sadd.s32 4294967294, %s4451_s12   ;;  %s4451_s12 = sphi %s4480_s12, %s4732_s12   ;;  %s4447_s11 = sphi %s4478_s11, %s4731_s11   ;;  %s4443_s10 = sphi %s4476_s10, %s4730_s10   ;;  %s4439_s9 = sphi %s4474_s9, %s4729_s9  }
   0x7   : > { %p39_p0 = scmp.ne.s32.totalorder %s4443_s10, %s4439_s9  ;;  %p4711_p1 = scmp.eq.s32.totalorder %s4495_s13, 0 }
   0x8   : > { %p90_p3 = scmp.eq.s32.totalorder %s3283_s14, 1  ;;  %p3284_p5 = scmp.ge.s32.totalorder %s4451_s12, 1 }
   0x9   : > { %p4504_p4 = por %p4711_p1, %p39_p0  ;;  %p97_p7 = scmp.lt.s32.totalorder %s4451_s12, 3 }
   0xa   : > { %p4509_p6 = por %p90_p3, %p39_p0  ;;  %s4453_s18 = smov [#allocation5]  }
   0xb   : > { %s4715_s15 = scalar_select %p4504_p4, 1, 0 }
   0xc   : > { %s4716_s16 = scalar_select %p4509_p6, 1, 0 }
   0xd   : > { %p4514_p8 = pnand %p3284_p5, %p97_p7  ;;  %s109_s19 = sshll.u32 %s4453_s18, 4  ;;  %s110_s19 = int_to_ptr.vmem [resolvable:$true] %s109_s19 }
   0xe   : > { %s4528_s21 = sadd.s32 1, %s4451_s12   ;;  %s26_s22 = sadd.s32 1, %s4447_s11 }
   0xf   : > { %s4717_s17 = scalar_select %p4514_p8, 1, 0 }
  0x10   : > { %p3697_p9 = pneg %p4514_p8  ;;  %s23_s23 = ssub.s32 %s4451_s12, %s4528_s21 }
  0x11   : > { %s4340_s24 = scalar_lea.vmem %s110_s19, 49152  ;;  %p4348_p5 = scmp.lt.s32.totalorder %s110_s19, %s110_s19 }
  0x12   : > { %p4523_p11 = pnand %p3697_p9, %p4711_p1  ;;  %p4341_p13 = scmp.ne.s32.totalorder %s110_s19, %s4340_s24 }
  0x13   : > { %p4349_p7 = scmp.lt.s32.totalorder %s4340_s24, %s4340_s24 }
  0x14   : > { %p4331_p12 = pneg %p4523_p11 }
  0x15   : > { %p4350_p10 = por %p4349_p7, %p4348_p5 }
  0x16   : > { %p4343_p0 = pnand %p4341_p13, %p4331_p12 }
  0x18   : > { %p4344_p3 = pneg %p4343_p0 }
  0x1a   : > { %p4351_p2 = pnand %p4350_p10, %p4344_p3 }
  0x1c   : > { %4354 = shalt.err (!%p4351_p2)
}
  0x1d   : > { %s4454_s25 = smov 768   ;;  %s4455_s26 = smov 48  }
  0x1e   : > { %3700 = dma.hbm_to_vmem [thread:$0]  (!%p4523_p11), %s4709_s1, 49152, %s110_s19, [#allocation6], %s4454_s25, %s4454_s25, %s4455_s26  }
  0x1f   : > { %p24_p9 = scmp.eq.s32.totalorder %s23_s23, 0  ;;  %p33_p12 = scmp.ne.s32.totalorder %s4447_s11, %s4443_s10 }
  0x20   : > { %p34_p10 = scmp.eq.s32.totalorder %s4451_s12, 0  ;;  %p3710_p2 = scmp.lt.s32.totalorder %s4451_s12, 2 }
  0x21   : > { %s4545_s29 = scalar_select %p24_p9, %s4447_s11, %s26_s22  }
  0x22   : > { %p35_p13 = por %p34_p10, %p33_p12  ;;  %p4719_p0 = scmp.eq.s32.totalorder %s4495_s13, 1 }
  0x23   : > { %s123_s3 = sand.u32 1, %s4447_s11   ;;  %s3687_s4 = sshll.u32 %s4451_s12, 9 }
  0x24   : > { %p4549_p3 = por %p4719_p0, %p33_p12  ;;  %s3287_s5 = sshll.u32 %s123_s3, 5 }
  0x25   : > { %s4558_s8 = scalar_lea.hbm %s4708_s0, %s3687_s4  ;;  %s127_s14 = scalar_lea.vmem [#allocation2], %s3287_s5 }
  0x26   : > { %s4720_s30 = scalar_select %p4549_p3, 1, 0 }
  0x27   : > { %s135_s18 = sshll.u32 %s127_s14, 4  ;;  %p4560_p11 = pnand %p3710_p2, %p35_p13  ;;  %s136_s18 = int_to_ptr.vmem [resolvable:$true] %s135_s18 }
  0x28   : > { %s124_s20 = scalar_lea.sflag [#allocation3], %s123_s3  ;;  %s4355_s22 = scalar_lea.hbm %s4558_s8, 512 }
  0x29   : > { %p4356_p5 = scmp.ne.s32.totalorder %s4558_s8, %s4355_s22  ;;  %p4357_p7 = pneg %p4560_p11 }
  0x2a   : > { %s4360_s25 = scalar_lea.hbm %s4708_s0, 1024  ;;  %p4361_p10 = scmp.lt.s32.totalorder %s4558_s8, %s4708_s0 }
  0x2b   : > { %p4358_p9 = pnand %p4357_p7, %p4356_p5  ;;  %p4362_p2 = scmp.lt.s32.totalorder %s4360_s25, %s4355_s22 }
  0x2d   : > { %p4359_p12 = pneg %p4358_p9  ;;  %p4363_p13 = por %p4362_p2, %p4361_p10 }
  0x2f   : > { %p4364_p0 = pnand %p4363_p13, %p4359_p12 }
  0x31   : > { %4367 = shalt.err (!%p4364_p0)
}
  0x32   : > { %s4368_s28 = scalar_lea.vmem %s136_s18, 512  ;;  %s4456_s3 = smov [#allocation2]  }
  0x33   : > { %p4369_p1 = scmp.ne.s32.totalorder %s136_s18, %s4368_s28  ;;  %s4373_s4 = sshll.u32 %s4456_s3, 4  ;;  %s4374_s4 = int_to_ptr.vmem [resolvable:$false] %s4373_s4 }
  0x34   : > { %s4375_s5 = scalar_lea.vmem %s4374_s4, 1024  ;;  %p4376_p5 = scmp.lt.s32.totalorder %s136_s18, %s4374_s4 }
  0x35   : > { %p4371_p6 = pnand %p4369_p1, %p4357_p7  ;;  %p4377_p9 = scmp.lt.s32.totalorder %s4375_s5, %s4368_s28 }
  0x37   : > { %p4372_p3 = pneg %p4371_p6  ;;  %p4378_p4 = por %p4377_p9, %p4376_p5 }
  0x39   : > { %p4379_p8 = pnand %p4378_p4, %p4372_p3 }
  0x3b   : > { %4382 = shalt.err (!%p4379_p8)
}
  0x3c   : > { %3704 = dma.hbm_to_vmem [thread:$0]  (!%p4560_p11), %s4558_s8, 512, %s136_s18, %s124_s20  }
  0x3d   : > { %p4722_p12 = scmp.ne.s32.totalorder %s4717_s17, 0 }
  0x3e   : > { %s4581_s6 = sand.u32 (!%p4722_p12), 1, %s4443_s10   ;;  %p4723_p1 = scmp.ne.s32.totalorder (!%p4722_p12), %s4715_s15, 0 }
  0x3f   : > { %144 = sbr.rel (%p4722_p12) target bundleno = 1257 (0x4e9), region = 28  ;;  %s3291_s7 = sshll.u32 (!%p4722_p12), %s4581_s6, 5 }
  0x40   : > { %s147_s14 = scalar_lea.sflag (!%p4722_p12), [#allocation3], %s4581_s6  ;;  %s4587_s22 = scalar_lea.vmem (!%p4722_p12), [#allocation2], %s3291_s7 }
  0x44   : > { %4426 = dma.done.wait (%p4723_p1), %s147_s14, 512  }
  0x45   : > { %4428 = vsyncadd (%p4723_p1), %s147_s14, 4294966784  ;;  %p4724_p4 = scmp.eq.s32.totalorder %s4495_s13, 0 }
  0x47   : > { %4430 = dma.done.wait (%p4724_p4), [#allocation6], 49152   ;;  %p4725_p6 = pmov %p4724_p4 }
  0x48   : > { %v3749_v0 = vld [vmem:[#allocation5 + $0x2a4] ss:$48 sps:$4 sm:$0xff]   ;;  %v3753_v2 = vld [vmem:[#allocation5 + $0x2a0] ss:$48 sps:$4 sm:$0xff]   ;;  %v177_v46 = vld [vmem:[%s4587_s22 + $0x8] sm:$0xff]  ;;  %vm3089_vm0 = vcmask 1043456  }
  0x49   : > { %4432 = vsyncadd (%p4725_p6), [#allocation6], 4294918144  ;;  %v3751_v1 = vld [vmem:[#allocation5 + $0x8a4] ss:$48 sps:$4 sm:$0xff]   ;;  %2488 = vmatprep.subr.bf16.mxu0 %v3749_v0  ;;  %v3754_v3 = vld [vmem:[#allocation5 + $0x8a0] ss:$48 sps:$4 sm:$0xff]   ;;  %v4598_v49 = vpack.c.bf16 %v177_v46, %v177_v46 }
  0x4a   : > { %2529 = vmatprep.subr.bf16.mxu1 %v3751_v1  ;;  %v3755_v4 = vld [vmem:[#allocation5 + $0x244] ss:$48 sps:$4 sm:$0xff]   ;;  %2489 = vmatpush1.bf16.msra.mxu0 %v3753_v2  ;;  %v3759_v6 = vld [vmem:[#allocation5 + $0x240] ss:$48 sps:$4 sm:$0xff]   ;;  %v179_v50 = vld [vmem:[%s4587_s22 + $0x18] sm:$0xff]  ;;  %vm3072_vm1 = vcmask 64512  }
  0x4b   : > { %2530 = vmatpush1.bf16.msra.mxu1 %v3754_v3  ;;  %v3757_v5 = vld [vmem:[#allocation5 + $0x844] ss:$48 sps:$4 sm:$0xff]   ;;  %2490 = vmatprep.subr.bf16.mxu0 %v3755_v4  ;;  %v3760_v7 = vld [vmem:[#allocation5 + $0x840] ss:$48 sps:$4 sm:$0xff]   ;;  %v4601_v52 = vpack.c.bf16 %v179_v50, %v179_v50  ;;  %v3899_v46 = vld [vmem:[#allocation5 + $0x548] ss:$48 sps:$4 sm:$0xff]  }
  0x4c   : > { %2531 = vmatprep.subr.bf16.mxu1 %v3757_v5  ;;  %v3761_v8 = vld [vmem:[#allocation5 + $0x1e4] ss:$48 sps:$4 sm:$0xff]   ;;  %v3765_v10 = vld [vmem:[#allocation5 + $0x1e0] ss:$48 sps:$4 sm:$0xff]   ;;  %2520 = vmatprep.mubr.bf16.mxu0 %v4598_v49  ;;  %v3910_v50 = vld [vmem:[#allocation5 + $0xaec] ss:$48 sps:$4 sm:$0xff]  }
  0x4d   : > { %v3763_v9 = vld [vmem:[#allocation5 + $0x7e4] ss:$48 sps:$4 sm:$0xff]   ;;  %v3766_v11 = vld [vmem:[#allocation5 + $0x7e0] ss:$48 sps:$4 sm:$0xff]   ;;  %2561 = vmatprep.mubr.bf16.mxu1 %v4601_v52  ;;  %s174_s15 = scalar_lea.vmem [#allocation7], %s3291_s7  ;;  %s3688_s8 = sshll.u32 %s4495_s13, 9 }
  0x4e   : > { %2491 = vmatpush1.bf16.msra.mxu0 %v3759_v6  ;;  %v3767_v12 = vld [vmem:[#allocation5 + $0x184] ss:$48 sps:$4 sm:$0xff]   ;;  %v3771_v14 = vld [vmem:[#allocation5 + $0x180] ss:$48 sps:$4 sm:$0xff]   ;;  %v3847_v6 = vld [vmem:[#allocation5 + $0x2ac] ss:$48 sps:$4 sm:$0xff]   ;;  %s4667_s20 = scalar_lea.hbm %s4710_s2, %s3688_s8 }
  0x4f   : > { %2532 = vmatpush1.bf16.msra.mxu1 %v3760_v7  ;;  %2492 = vmatprep.subr.bf16.mxu0 %v3761_v8  ;;  %v3769_v13 = vld [vmem:[#allocation5 + $0x784] ss:$48 sps:$4 sm:$0xff]   ;;  %v3772_v15 = vld [vmem:[#allocation5 + $0x780] ss:$48 sps:$4 sm:$0xff]   ;;  %v3850_v7 = vld [vmem:[#allocation5 + $0x8ac] ss:$48 sps:$4 sm:$0xff]  }
  0x50   : > { %2533 = vmatprep.subr.bf16.mxu1 %v3763_v9  ;;  %v3773_v16 = vld [vmem:[#allocation5 + $0x124] ss:$48 sps:$4 sm:$0xff]   ;;  %v3777_v18 = vld [vmem:[#allocation5 + $0x120] ss:$48 sps:$4 sm:$0xff]   ;;  %s3203_s17 = sshll.u32 %s174_s15, 4  ;;  %s3189_s13 = scalar_lea.sflag [#allocation4], %s4581_s6  ;;  %s4662_s17 = int_to_ptr.vmem [resolvable:$true] %s3203_s17 }
  0x51   : > { %v3775_v17 = vld [vmem:[#allocation5 + $0x724] ss:$48 sps:$4 sm:$0xff]   ;;  %v3778_v19 = vld [vmem:[#allocation5 + $0x720] ss:$48 sps:$4 sm:$0xff]   ;;  %s4383_s23 = scalar_lea.vmem %s4662_s17, 512  ;;  %p4726_p3 = scmp.ne.s32.totalorder %s4720_s30, 0 }
  0x52   : > { %2493 = vmatpush1.bf16.msra.mxu0 %v3765_v10  ;;  %v3779_v20 = vld [vmem:[#allocation5 + $0xc4] ss:$48 sps:$4 sm:$0xff]   ;;  %v3783_v22 = vld [vmem:[#allocation5 + $0xc0] ss:$48 sps:$4 sm:$0xff]   ;;  %v3845_v10 = vld [vmem:[#allocation5 + $0x2a8] ss:$48 sps:$4 sm:$0xff]   ;;  %p4384_p8 = scmp.ne.s32.totalorder %s4662_s17, %s4383_s23 }
  0x53   : > { %2534 = vmatpush1.bf16.msra.mxu1 %v3766_v11  ;;  %2494 = vmatprep.subr.bf16.mxu0 %v3767_v12  ;;  %v3781_v21 = vld [vmem:[#allocation5 + $0x6c4] ss:$48 sps:$4 sm:$0xff]   ;;  %v3784_v23 = vld [vmem:[#allocation5 + $0x6c0] ss:$48 sps:$4 sm:$0xff]   ;;  %v3848_v11 = vld [vmem:[#allocation5 + $0x8a8] ss:$48 sps:$4 sm:$0xff]  }
  0x54   : > { %2535 = vmatprep.subr.bf16.mxu1 %v3769_v13  ;;  %v3785_v24 = vld [vmem:[#allocation5 + $0x64] ss:$48 sps:$4 sm:$0xff]   ;;  %v3789_v26 = vld [vmem:[#allocation5 + $0x60] ss:$48 sps:$4 sm:$0xff]   ;;  %v3853_v12 = vld [vmem:[#allocation5 + $0x24c] ss:$48 sps:$4 sm:$0xff]   ;;  %p4385_p11 = pnand %p4384_p8, %p4726_p3 }
  0x55   : > { %v3787_v25 = vld [vmem:[#allocation5 + $0x664] ss:$48 sps:$4 sm:$0xff]   ;;  %v3790_v27 = vld [vmem:[#allocation5 + $0x660] ss:$48 sps:$4 sm:$0xff]   ;;  %v3856_v13 = vld [vmem:[#allocation5 + $0x84c] ss:$48 sps:$4 sm:$0xff]  }
  0x56   : > { %2495 = vmatpush1.bf16.msra.mxu0 %v3771_v14  ;;  %v3791_v28 = vld [vmem:[#allocation5 + $0x4] ss:$48 sps:$4 sm:$0xff]   ;;  %v3795_v30 = vld [vmem:[#allocation5] ss:$48 sps:$4 sm:$0xff]   ;;  %v3851_v14 = vld [vmem:[#allocation5 + $0x248] ss:$48 sps:$4 sm:$0xff]   ;;  %p4386_p7 = pneg %p4385_p11 }
  0x57   : > { %2536 = vmatpush1.bf16.msra.mxu1 %v3772_v15  ;;  %2496 = vmatprep.subr.bf16.mxu0 %v3773_v16  ;;  %v3793_v29 = vld [vmem:[#allocation5 + $0x604] ss:$48 sps:$4 sm:$0xff]   ;;  %v3796_v31 = vld [vmem:[#allocation5 + $0x600] ss:$48 sps:$4 sm:$0xff]   ;;  %v3854_v15 = vld [vmem:[#allocation5 + $0x848] ss:$48 sps:$4 sm:$0xff]  }
  0x58   : > { %2537 = vmatprep.subr.bf16.mxu1 %v3775_v17  ;;  %v3797_v32 = vld [vmem:[#allocation5 + $0x5a4] ss:$48 sps:$4 sm:$0xff]   ;;  %v3801_v34 = vld [vmem:[#allocation5 + $0x5a0] ss:$48 sps:$4 sm:$0xff]   ;;  %v3859_v16 = vld [vmem:[#allocation5 + $0x1ec] ss:$48 sps:$4 sm:$0xff]  }
  0x59   : > { %v3799_v33 = vld [vmem:[#allocation5 + $0xba4] ss:$48 sps:$4 sm:$0xff]   ;;  %v3802_v35 = vld [vmem:[#allocation5 + $0xba0] ss:$48 sps:$4 sm:$0xff]   ;;  %v3862_v17 = vld [vmem:[#allocation5 + $0x7ec] ss:$48 sps:$4 sm:$0xff]  }
  0x5a   : > { %2497 = vmatpush1.bf16.msra.mxu0 %v3777_v18  ;;  %v3803_v36 = vld [vmem:[#allocation5 + $0x544] ss:$48 sps:$4 sm:$0xff]   ;;  %v3807_v38 = vld [vmem:[#allocation5 + $0x540] ss:$48 sps:$4 sm:$0xff]   ;;  %v3857_v18 = vld [vmem:[#allocation5 + $0x1e8] ss:$48 sps:$4 sm:$0xff]  }
  0x5b   : > { %2538 = vmatpush1.bf16.msra.mxu1 %v3778_v19  ;;  %2498 = vmatprep.subr.bf16.mxu0 %v3779_v20  ;;  %v3805_v37 = vld [vmem:[#allocation5 + $0xb44] ss:$48 sps:$4 sm:$0xff]   ;;  %v3808_v39 = vld [vmem:[#allocation5 + $0xb40] ss:$48 sps:$4 sm:$0xff]   ;;  %v3860_v19 = vld [vmem:[#allocation5 + $0x7e8] ss:$48 sps:$4 sm:$0xff]  }
  0x5c   : > { %2539 = vmatprep.subr.bf16.mxu1 %v3781_v21  ;;  %v3809_v40 = vld [vmem:[#allocation5 + $0x4e4] ss:$48 sps:$4 sm:$0xff]   ;;  %v3813_v42 = vld [vmem:[#allocation5 + $0x4e0] ss:$48 sps:$4 sm:$0xff]   ;;  %v3865_v20 = vld [vmem:[#allocation5 + $0x18c] ss:$48 sps:$4 sm:$0xff]  }
  0x5d   : > { %v3811_v41 = vld [vmem:[#allocation5 + $0xae4] ss:$48 sps:$4 sm:$0xff]   ;;  %v3814_v43 = vld [vmem:[#allocation5 + $0xae0] ss:$48 sps:$4 sm:$0xff]   ;;  %v3868_v21 = vld [vmem:[#allocation5 + $0x78c] ss:$48 sps:$4 sm:$0xff]  }
  0x5e   : > { %2499 = vmatpush1.bf16.msra.mxu0 %v3783_v22  ;;  %v3815_v44 = vld [vmem:[#allocation5 + $0x484] ss:$48 sps:$4 sm:$0xff]   ;;  %v3819_v47 = vld [vmem:[#allocation5 + $0x480] ss:$48 sps:$4 sm:$0xff]   ;;  %v3863_v22 = vld [vmem:[#allocation5 + $0x188] ss:$48 sps:$4 sm:$0xff]  }
  0x5f   : > { %2540 = vmatpush1.bf16.msra.mxu1 %v3784_v23  ;;  %2500 = vmatprep.subr.bf16.mxu0 %v3785_v24  ;;  %v3817_v45 = vld [vmem:[#allocation5 + $0xa84] ss:$48 sps:$4 sm:$0xff]   ;;  %v3820_v48 = vld [vmem:[#allocation5 + $0xa80] ss:$48 sps:$4 sm:$0xff]   ;;  %v3866_v23 = vld [vmem:[#allocation5 + $0x788] ss:$48 sps:$4 sm:$0xff]  }
  0x60   : > { %2541 = vmatprep.subr.bf16.mxu1 %v3787_v25  ;;  %v3821_v51 = vld [vmem:[#allocation5 + $0x424] ss:$48 sps:$4 sm:$0xff]   ;;  %v3825_v54 = vld [vmem:[#allocation5 + $0x420] ss:$48 sps:$4 sm:$0xff]   ;;  %v3871_v24 = vld [vmem:[#allocation5 + $0x12c] ss:$48 sps:$4 sm:$0xff]  }
  0x61   : > { %v3823_v53 = vld [vmem:[#allocation5 + $0xa24] ss:$48 sps:$4 sm:$0xff]   ;;  %v3826_v55 = vld [vmem:[#allocation5 + $0xa20] ss:$48 sps:$4 sm:$0xff]   ;;  %v3874_v25 = vld [vmem:[#allocation5 + $0x72c] ss:$48 sps:$4 sm:$0xff]  }
  0x62   : > { %2501 = vmatpush1.bf16.msra.mxu0 %v3789_v26  ;;  %v3827_v56 = vld [vmem:[#allocation5 + $0x3c4] ss:$48 sps:$4 sm:$0xff]   ;;  %v3831_v58 = vld [vmem:[#allocation5 + $0x3c0] ss:$48 sps:$4 sm:$0xff]   ;;  %v3869_v26 = vld [vmem:[#allocation5 + $0x128] ss:$48 sps:$4 sm:$0xff]  }
  0x63   : > { %2542 = vmatpush1.bf16.msra.mxu1 %v3790_v27  ;;  %2502 = vmatprep.subr.bf16.mxu0 %v3791_v28  ;;  %v3829_v57 = vld [vmem:[#allocation5 + $0x9c4] ss:$48 sps:$4 sm:$0xff]   ;;  %v3832_v59 = vld [vmem:[#allocation5 + $0x9c0] ss:$48 sps:$4 sm:$0xff]   ;;  %v3872_v27 = vld [vmem:[#allocation5 + $0x728] ss:$48 sps:$4 sm:$0xff]  }
  0x64   : > { %2543 = vmatprep.subr.bf16.mxu1 %v3793_v29  ;;  %v3833_v60 = vld [vmem:[#allocation5 + $0x364] ss:$48 sps:$4 sm:$0xff]   ;;  %v3837_v62 = vld [vmem:[#allocation5 + $0x360] ss:$48 sps:$4 sm:$0xff]   ;;  %v3877_v28 = vld [vmem:[#allocation5 + $0xcc] ss:$48 sps:$4 sm:$0xff]  }
  0x65   : > { %v3835_v61 = vld [vmem:[#allocation5 + $0x964] ss:$48 sps:$4 sm:$0xff]   ;;  %v3838_v63 = vld [vmem:[#allocation5 + $0x960] ss:$48 sps:$4 sm:$0xff]   ;;  %v3880_v29 = vld [vmem:[#allocation5 + $0x6cc] ss:$48 sps:$4 sm:$0xff]  }
  0x66   : > { %2503 = vmatpush1.bf16.msra.mxu0 %v3795_v30  ;;  %v3839_v0 = vld [vmem:[#allocation5 + $0x304] ss:$48 sps:$4 sm:$0xff]   ;;  %v3843_v2 = vld [vmem:[#allocation5 + $0x300] ss:$48 sps:$4 sm:$0xff]   ;;  %v3875_v30 = vld [vmem:[#allocation5 + $0xc8] ss:$48 sps:$4 sm:$0xff]  }
  0x67   : > { %2544 = vmatpush1.bf16.msra.mxu1 %v3796_v31  ;;  %2504 = vmatprep.subr.bf16.mxu0 %v3797_v32  ;;  %v3841_v1 = vld [vmem:[#allocation5 + $0x904] ss:$48 sps:$4 sm:$0xff]   ;;  %v3844_v3 = vld [vmem:[#allocation5 + $0x900] ss:$48 sps:$4 sm:$0xff]   ;;  %v3878_v31 = vld [vmem:[#allocation5 + $0x6c8] ss:$48 sps:$4 sm:$0xff]  }
  0x68   : > { %2545 = vmatprep.subr.bf16.mxu1 %v3799_v33  ;;  %v176_v4 = vld [vmem:[%s4587_s22] sm:$0xff]  ;;  %v178_v5 = vld [vmem:[%s4587_s22 + $0x10] sm:$0xff]  ;;  %v3883_v32 = vld [vmem:[#allocation5 + $0x6c] ss:$48 sps:$4 sm:$0xff]   ;;  %s4458_s24 = smov [#allocation7]  }
  0x69   : > { %v4607_v8 = vpack.c.bf16 %v176_v4, %v176_v4  ;;  %v4609_v9 = vpack.c.bf16 %v178_v5, %v178_v5  ;;  %v3886_v33 = vld [vmem:[#allocation5 + $0x66c] ss:$48 sps:$4 sm:$0xff]   ;;  %v3929_v4 = vld [vmem:[#allocation5 + $0x368] ss:$48 sps:$4 sm:$0xff]   ;;  %s4387_s25 = sshll.u32 %s4458_s24, 4  ;;  %s4388_s25 = int_to_ptr.vmem [resolvable:$false] %s4387_s25 }
  0x6a   : > { %2505 = vmatpush2.bf16.msra.mxu0 %v3801_v34  ;;  %v3881_v34 = vld [vmem:[#allocation5 + $0x68] ss:$48 sps:$4 sm:$0xff]   ;;  %s4389_s26 = scalar_lea.vmem %s4388_s25, 1024  ;;  %p4390_p10 = scmp.lt.s32.totalorder %s4662_s17, %s4388_s25 }
  0x6b   : > { %2546 = vmatpush2.bf16.msra.mxu1 %v3802_v35  ;;  %2506 = vmatprep.subr.bf16.mxu0 %v3803_v36  ;;  %v3884_v35 = vld [vmem:[#allocation5 + $0x668] ss:$48 sps:$4 sm:$0xff]   ;;  %v3889_v36 = vld [vmem:[#allocation5 + $0xc] ss:$48 sps:$4 sm:$0xff]   ;;  %p4391_p2 = scmp.lt.s32.totalorder %s4389_s26, %s4383_s23 }
  0x6c   : > { %2547 = vmatprep.subr.bf16.mxu1 %v3805_v37  ;;  %v3892_v37 = vld [vmem:[#allocation5 + $0x60c] ss:$48 sps:$4 sm:$0xff]   ;;  %v3932_v5 = vld [vmem:[#allocation5 + $0x968] ss:$48 sps:$4 sm:$0xff]  }
  0x6d   : > { %p4392_p13 = por %p4391_p2, %p4390_p10 }
  0x6e   : > { %2507 = vmatpush2.bf16.msra.mxu0 %v3807_v38  ;;  %v3887_v38 = vld [vmem:[#allocation5 + $0x8] ss:$48 sps:$4 sm:$0xff]  }
  0x6f   : > { %2548 = vmatpush2.bf16.msra.mxu1 %v3808_v39  ;;  %2508 = vmatprep.subr.bf16.mxu0 %v3809_v40  ;;  %v3890_v39 = vld [vmem:[#allocation5 + $0x608] ss:$48 sps:$4 sm:$0xff]   ;;  %v3895_v40 = vld [vmem:[#allocation5 + $0x5ac] ss:$48 sps:$4 sm:$0xff]   ;;  %p4393_p0 = pnand %p4392_p13, %p4386_p7 }
  0x70   : > { %2549 = vmatprep.subr.bf16.mxu1 %v3811_v41  ;;  %v3898_v41 = vld [vmem:[#allocation5 + $0xbac] ss:$48 sps:$4 sm:$0xff]  }
  0x72   : > { %2509 = vmatpush2.bf16.msra.mxu0 %v3813_v42  ;;  %v3893_v42 = vld [vmem:[#allocation5 + $0x5a8] ss:$48 sps:$4 sm:$0xff]  }
  0x73   : > { %2550 = vmatpush2.bf16.msra.mxu1 %v3814_v43  ;;  %2510 = vmatprep.subr.bf16.mxu0 %v3815_v44  ;;  %v3896_v43 = vld [vmem:[#allocation5 + $0xba8] ss:$48 sps:$4 sm:$0xff]   ;;  %v3901_v44 = vld [vmem:[#allocation5 + $0x54c] ss:$48 sps:$4 sm:$0xff]  }
  0x74   : > { %2551 = vmatprep.subr.bf16.mxu1 %v3817_v45  ;;  %v3904_v45 = vld [vmem:[#allocation5 + $0xb4c] ss:$48 sps:$4 sm:$0xff]  }
  0x76   : > { %2511 = vmatpush2.bf16.msra.mxu0 %v3819_v47  ;;  %v3902_v47 = vld [vmem:[#allocation5 + $0xb48] ss:$48 sps:$4 sm:$0xff]  }
  0x77   : > { %2552 = vmatpush2.bf16.msra.mxu1 %v3820_v48  ;;  %2512 = vmatprep.subr.bf16.mxu0 %v3821_v51  ;;  %v3907_v48 = vld [vmem:[#allocation5 + $0x4ec] ss:$48 sps:$4 sm:$0xff]   ;;  %v3905_v51 = vld [vmem:[#allocation5 + $0x4e8] ss:$48 sps:$4 sm:$0xff]  }
  0x78   : > { %2553 = vmatprep.subr.bf16.mxu1 %v3823_v53  ;;  %v3908_v53 = vld [vmem:[#allocation5 + $0xae8] ss:$48 sps:$4 sm:$0xff]  }
  0x7a   : > { %2513 = vmatpush2.bf16.msra.mxu0 %v3825_v54  ;;  %v3913_v54 = vld [vmem:[#allocation5 + $0x48c] ss:$48 sps:$4 sm:$0xff]  }
  0x7b   : > { %2554 = vmatpush2.bf16.msra.mxu1 %v3826_v55  ;;  %2514 = vmatprep.subr.bf16.mxu0 %v3827_v56  ;;  %v3916_v55 = vld [vmem:[#allocation5 + $0xa8c] ss:$48 sps:$4 sm:$0xff]   ;;  %v3911_v56 = vld [vmem:[#allocation5 + $0x488] ss:$48 sps:$4 sm:$0xff]  }
  0x7c   : > { %2555 = vmatprep.subr.bf16.mxu1 %v3829_v57  ;;  %v3914_v57 = vld [vmem:[#allocation5 + $0xa88] ss:$48 sps:$4 sm:$0xff]  }
  0x7e   : > { %2515 = vmatpush2.bf16.msra.mxu0 %v3831_v58  ;;  %v3919_v58 = vld [vmem:[#allocation5 + $0x42c] ss:$48 sps:$4 sm:$0xff]  }
  0x7f   : > { %2556 = vmatpush2.bf16.msra.mxu1 %v3832_v59  ;;  %2516 = vmatprep.subr.bf16.mxu0 %v3833_v60  ;;  %v3922_v59 = vld [vmem:[#allocation5 + $0xa2c] ss:$48 sps:$4 sm:$0xff]   ;;  %v3917_v60 = vld [vmem:[#allocation5 + $0x428] ss:$48 sps:$4 sm:$0xff]  }
  0x80   : > { %2557 = vmatprep.subr.bf16.mxu1 %v3835_v61  ;;  %v3920_v61 = vld [vmem:[#allocation5 + $0xa28] ss:$48 sps:$4 sm:$0xff]  }
  0x82   : > { %2517 = vmatpush2.bf16.msra.mxu0 %v3837_v62  ;;  %v3925_v62 = vld [vmem:[#allocation5 + $0x3cc] ss:$48 sps:$4 sm:$0xff]  }
  0x83   : > { %2558 = vmatpush2.bf16.msra.mxu1 %v3838_v63  ;;  %2518 = vmatprep.subr.bf16.mxu0 %v3839_v0  ;;  %v3928_v63 = vld [vmem:[#allocation5 + $0x9cc] ss:$48 sps:$4 sm:$0xff]   ;;  %v3923_v0 = vld [vmem:[#allocation5 + $0x3c8] ss:$48 sps:$4 sm:$0xff]  }
  0x84   : > { %2559 = vmatprep.subr.bf16.mxu1 %v3841_v1  ;;  %v3926_v1 = vld [vmem:[#allocation5 + $0x9c8] ss:$48 sps:$4 sm:$0xff]  }
  0x86   : > { %2519 = vmatpush2.bf16.msra.mxu0 %v3843_v2  ;;  %v3931_v2 = vld [vmem:[#allocation5 + $0x36c] ss:$48 sps:$4 sm:$0xff]  }
  0x87   : > { %2560 = vmatpush2.bf16.msra.mxu1 %v3844_v3  ;;  %2570 = vmatprep.subr.bf16.mxu0 %v3847_v6  ;;  %v3934_v3 = vld [vmem:[#allocation5 + $0x96c] ss:$48 sps:$4 sm:$0xff]  }
  0x88   : > { %2611 = vmatprep.subr.bf16.mxu1 %v3850_v7  ;;  %v3937_v6 = vld [vmem:[#allocation5 + $0x30c] ss:$48 sps:$4 sm:$0xff]  }
  0x89   : > { %2521 = vmatmul.mubr.bf16.vlgmr.msra.gmra.mxu0 %v4607_v8  ;;  %v3940_v7 = vld [vmem:[#allocation5 + $0x90c] ss:$48 sps:$4 sm:$0xff]  }
  0x8a   : > { %2562 = vmatmul.mubr.bf16.vlgmr.msra.gmra.mxu1 %v4609_v9  ;;  %2571 = vmatpush1.bf16.msra.mxu0 %v3845_v10  ;;  %v3935_v10 = vld [vmem:[#allocation5 + $0x308] ss:$48 sps:$4 sm:$0xff]  }
  0x8b   : > { %2612 = vmatpush1.bf16.msra.mxu1 %v3848_v11  ;;  %2572 = vmatprep.subr.bf16.mxu0 %v3853_v12  ;;  %v3938_v11 = vld [vmem:[#allocation5 + $0x908] ss:$48 sps:$4 sm:$0xff]   ;;  %v3943_v12 = vld [vmem:[#allocation5 + $0x2b4] ss:$48 sps:$4 sm:$0xff]  }
  0x8c   : > { %2613 = vmatprep.subr.bf16.mxu1 %v3856_v13  ;;  %2602 = vmatprep.mubr.bf16.mxu0 %v4598_v49  ;;  %v3946_v13 = vld [vmem:[#allocation5 + $0x8b4] ss:$48 sps:$4 sm:$0xff]  }
  0x8d   : > { %2643 = vmatprep.mubr.bf16.mxu1 %v4601_v52 }
  0x8e   : > { %2573 = vmatpush1.bf16.msra.mxu0 %v3851_v14  ;;  %v3941_v14 = vld [vmem:[#allocation5 + $0x2b0] ss:$48 sps:$4 sm:$0xff]  }
  0x8f   : > { %2614 = vmatpush1.bf16.msra.mxu1 %v3854_v15  ;;  %2574 = vmatprep.subr.bf16.mxu0 %v3859_v16  ;;  %v3944_v15 = vld [vmem:[#allocation5 + $0x8b0] ss:$48 sps:$4 sm:$0xff]   ;;  %v3949_v16 = vld [vmem:[#allocation5 + $0x254] ss:$48 sps:$4 sm:$0xff]  }
  0x90   : > { %2615 = vmatprep.subr.bf16.mxu1 %v3862_v17  ;;  %v3952_v17 = vld [vmem:[#allocation5 + $0x854] ss:$48 sps:$4 sm:$0xff]  }
  0x92   : > { %2575 = vmatpush1.bf16.msra.mxu0 %v3857_v18  ;;  %v3947_v18 = vld [vmem:[#allocation5 + $0x250] ss:$48 sps:$4 sm:$0xff]  }
  0x93   : > { %2616 = vmatpush1.bf16.msra.mxu1 %v3860_v19  ;;  %2576 = vmatprep.subr.bf16.mxu0 %v3865_v20  ;;  %v3950_v19 = vld [vmem:[#allocation5 + $0x850] ss:$48 sps:$4 sm:$0xff]   ;;  %v3955_v20 = vld [vmem:[#allocation5 + $0x1f4] ss:$48 sps:$4 sm:$0xff]  }
  0x94   : > { %2617 = vmatprep.subr.bf16.mxu1 %v3868_v21  ;;  %v3958_v21 = vld [vmem:[#allocation5 + $0x7f4] ss:$48 sps:$4 sm:$0xff]  }
  0x96   : > { %2577 = vmatpush1.bf16.msra.mxu0 %v3863_v22  ;;  %v3953_v22 = vld [vmem:[#allocation5 + $0x1f0] ss:$48 sps:$4 sm:$0xff]  }
  0x97   : > { %2618 = vmatpush1.bf16.msra.mxu1 %v3866_v23  ;;  %2578 = vmatprep.subr.bf16.mxu0 %v3871_v24  ;;  %v3956_v23 = vld [vmem:[#allocation5 + $0x7f0] ss:$48 sps:$4 sm:$0xff]   ;;  %v3961_v24 = vld [vmem:[#allocation5 + $0x194] ss:$48 sps:$4 sm:$0xff]  }
  0x98   : > { %2619 = vmatprep.subr.bf16.mxu1 %v3874_v25  ;;  %v3964_v25 = vld [vmem:[#allocation5 + $0x794] ss:$48 sps:$4 sm:$0xff]  }
  0x9a   : > { %2579 = vmatpush1.bf16.msra.mxu0 %v3869_v26  ;;  %v3959_v26 = vld [vmem:[#allocation5 + $0x190] ss:$48 sps:$4 sm:$0xff]  }
  0x9b   : > { %2620 = vmatpush1.bf16.msra.mxu1 %v3872_v27  ;;  %2580 = vmatprep.subr.bf16.mxu0 %v3877_v28  ;;  %v3962_v27 = vld [vmem:[#allocation5 + $0x790] ss:$48 sps:$4 sm:$0xff]   ;;  %v3967_v28 = vld [vmem:[#allocation5 + $0x134] ss:$48 sps:$4 sm:$0xff]  }
  0x9c   : > { %2621 = vmatprep.subr.bf16.mxu1 %v3880_v29  ;;  %v3970_v29 = vld [vmem:[#allocation5 + $0x734] ss:$48 sps:$4 sm:$0xff]  }
  0x9e   : > { %2581 = vmatpush1.bf16.msra.mxu0 %v3875_v30  ;;  %v3965_v30 = vld [vmem:[#allocation5 + $0x130] ss:$48 sps:$4 sm:$0xff]  }
  0x9f   : > { %2622 = vmatpush1.bf16.msra.mxu1 %v3878_v31  ;;  %2582 = vmatprep.subr.bf16.mxu0 %v3883_v32  ;;  %v3968_v31 = vld [vmem:[#allocation5 + $0x730] ss:$48 sps:$4 sm:$0xff]   ;;  %v3973_v32 = vld [vmem:[#allocation5 + $0xd4] ss:$48 sps:$4 sm:$0xff]  }
  0xa0   : > { %2623 = vmatprep.subr.bf16.mxu1 %v3886_v33  ;;  %v3976_v33 = vld [vmem:[#allocation5 + $0x6d4] ss:$48 sps:$4 sm:$0xff]  }
  0xa2   : > { %2583 = vmatpush1.bf16.msra.mxu0 %v3881_v34  ;;  %v3971_v34 = vld [vmem:[#allocation5 + $0xd0] ss:$48 sps:$4 sm:$0xff]  }
  0xa3   : > { %2624 = vmatpush1.bf16.msra.mxu1 %v3884_v35  ;;  %2584 = vmatprep.subr.bf16.mxu0 %v3889_v36  ;;  %v3974_v35 = vld [vmem:[#allocation5 + $0x6d0] ss:$48 sps:$4 sm:$0xff]   ;;  %v3979_v36 = vld [vmem:[#allocation5 + $0x74] ss:$48 sps:$4 sm:$0xff]  }
  0xa4   : > { %2625 = vmatprep.subr.bf16.mxu1 %v3892_v37  ;;  %v3982_v37 = vld [vmem:[#allocation5 + $0x674] ss:$48 sps:$4 sm:$0xff]  }
  0xa6   : > { %2585 = vmatpush1.bf16.msra.mxu0 %v3887_v38  ;;  %v3977_v38 = vld [vmem:[#allocation5 + $0x70] ss:$48 sps:$4 sm:$0xff]  }
  0xa7   : > { %2626 = vmatpush1.bf16.msra.mxu1 %v3890_v39  ;;  %2586 = vmatprep.subr.bf16.mxu0 %v3895_v40  ;;  %v3980_v39 = vld [vmem:[#allocation5 + $0x670] ss:$48 sps:$4 sm:$0xff]   ;;  %v3985_v40 = vld [vmem:[#allocation5 + $0x14] ss:$48 sps:$4 sm:$0xff]  }
  0xa8   : > { %2627 = vmatprep.subr.bf16.mxu1 %v3898_v41  ;;  %v3988_v41 = vld [vmem:[#allocation5 + $0x614] ss:$48 sps:$4 sm:$0xff]  }
  0xaa   : > { %2587 = vmatpush2.bf16.msra.mxu0 %v3893_v42  ;;  %v3983_v42 = vld [vmem:[#allocation5 + $0x10] ss:$48 sps:$4 sm:$0xff]  }
  0xab   : > { %2628 = vmatpush2.bf16.msra.mxu1 %v3896_v43  ;;  %2588 = vmatprep.subr.bf16.mxu0 %v3901_v44  ;;  %v3986_v43 = vld [vmem:[#allocation5 + $0x610] ss:$48 sps:$4 sm:$0xff]   ;;  %v3991_v44 = vld [vmem:[#allocation5 + $0x5b4] ss:$48 sps:$4 sm:$0xff]  }
  0xac   : > { %2629 = vmatprep.subr.bf16.mxu1 %v3904_v45  ;;  %v3994_v45 = vld [vmem:[#allocation5 + $0xbb4] ss:$48 sps:$4 sm:$0xff]  }
  0xae   : > { %2589 = vmatpush2.bf16.msra.mxu0 %v3899_v46  ;;  %v3989_v46 = vld [vmem:[#allocation5 + $0x5b0] ss:$48 sps:$4 sm:$0xff]  }
  0xaf   : > { %2630 = vmatpush2.bf16.msra.mxu1 %v3902_v47  ;;  %2590 = vmatprep.subr.bf16.mxu0 %v3907_v48  ;;  %v3992_v47 = vld [vmem:[#allocation5 + $0xbb0] ss:$48 sps:$4 sm:$0xff]   ;;  %v3997_v48 = vld [vmem:[#allocation5 + $0x554] ss:$48 sps:$4 sm:$0xff]  }
  0xb0   : > { %2631 = vmatprep.subr.bf16.mxu1 %v3910_v50  ;;  %v4000_v50 = vld [vmem:[#allocation5 + $0xb54] ss:$48 sps:$4 sm:$0xff]  }
  0xb2   : > { %2591 = vmatpush2.bf16.msra.mxu0 %v3905_v51  ;;  %v3995_v51 = vld [vmem:[#allocation5 + $0x550] ss:$48 sps:$4 sm:$0xff]  }
  0xb3   : > { %2632 = vmatpush2.bf16.msra.mxu1 %v3908_v53  ;;  %2592 = vmatprep.subr.bf16.mxu0 %v3913_v54  ;;  %v3998_v53 = vld [vmem:[#allocation5 + $0xb50] ss:$48 sps:$4 sm:$0xff]   ;;  %v4003_v54 = vld [vmem:[#allocation5 + $0x4f4] ss:$48 sps:$4 sm:$0xff]  }
  0xb4   : > { %2633 = vmatprep.subr.bf16.mxu1 %v3916_v55  ;;  %v4006_v55 = vld [vmem:[#allocation5 + $0xaf4] ss:$48 sps:$4 sm:$0xff]  }
  0xb6   : > { %2593 = vmatpush2.bf16.msra.mxu0 %v3911_v56  ;;  %v4001_v56 = vld [vmem:[#allocation5 + $0x4f0] ss:$48 sps:$4 sm:$0xff]  }
  0xb7   : > { %2634 = vmatpush2.bf16.msra.mxu1 %v3914_v57  ;;  %2594 = vmatprep.subr.bf16.mxu0 %v3919_v58  ;;  %v4004_v57 = vld [vmem:[#allocation5 + $0xaf0] ss:$48 sps:$4 sm:$0xff]   ;;  %v4009_v58 = vld [vmem:[#allocation5 + $0x494] ss:$48 sps:$4 sm:$0xff]  }
  0xb8   : > { %2635 = vmatprep.subr.bf16.mxu1 %v3922_v59  ;;  %v4012_v59 = vld [vmem:[#allocation5 + $0xa94] ss:$48 sps:$4 sm:$0xff]  }
  0xba   : > { %2595 = vmatpush2.bf16.msra.mxu0 %v3917_v60  ;;  %v4007_v60 = vld [vmem:[#allocation5 + $0x490] ss:$48 sps:$4 sm:$0xff]  }
  0xbb   : > { %2636 = vmatpush2.bf16.msra.mxu1 %v3920_v61  ;;  %2596 = vmatprep.subr.bf16.mxu0 %v3925_v62  ;;  %v4010_v61 = vld [vmem:[#allocation5 + $0xa90] ss:$48 sps:$4 sm:$0xff]   ;;  %v4015_v62 = vld [vmem:[#allocation5 + $0x434] ss:$48 sps:$4 sm:$0xff]  }
  0xbc   : > { %2637 = vmatprep.subr.bf16.mxu1 %v3928_v63  ;;  %v4018_v63 = vld [vmem:[#allocation5 + $0xa34] ss:$48 sps:$4 sm:$0xff]  }
  0xbe   : > { %2597 = vmatpush2.bf16.msra.mxu0 %v3923_v0  ;;  %v4013_v0 = vld [vmem:[#allocation5 + $0x430] ss:$48 sps:$4 sm:$0xff]  }
  0xbf   : > { %2638 = vmatpush2.bf16.msra.mxu1 %v3926_v1  ;;  %2598 = vmatprep.subr.bf16.mxu0 %v3931_v2  ;;  %v4016_v1 = vld [vmem:[#allocation5 + $0xa30] ss:$48 sps:$4 sm:$0xff]   ;;  %v4021_v2 = vld [vmem:[#allocation5 + $0x3d4] ss:$48 sps:$4 sm:$0xff]  }
  0xc0   : > { %2639 = vmatprep.subr.bf16.mxu1 %v3934_v3  ;;  %v4024_v3 = vld [vmem:[#allocation5 + $0x9d4] ss:$48 sps:$4 sm:$0xff]  }
  0xc2   : > { %2599 = vmatpush2.bf16.msra.mxu0 %v3929_v4  ;;  %v4019_v4 = vld [vmem:[#allocation5 + $0x3d0] ss:$48 sps:$4 sm:$0xff]  }
  0xc3   : > { %2640 = vmatpush2.bf16.msra.mxu1 %v3932_v5  ;;  %2600 = vmatprep.subr.bf16.mxu0 %v3937_v6  ;;  %v4022_v5 = vld [vmem:[#allocation5 + $0x9d0] ss:$48 sps:$4 sm:$0xff]   ;;  %v4027_v6 = vld [vmem:[#allocation5 + $0x374] ss:$48 sps:$4 sm:$0xff]  }
  0xc4   : > { %2641 = vmatprep.subr.bf16.mxu1 %v3940_v7  ;;  %v4030_v7 = vld [vmem:[#allocation5 + $0x974] ss:$48 sps:$4 sm:$0xff]  }
  0xc6   : > { %2601 = vmatpush2.bf16.msra.mxu0 %v3935_v10  ;;  %v4025_v10 = vld [vmem:[#allocation5 + $0x370] ss:$48 sps:$4 sm:$0xff]  }
  0xc7   : > { %2642 = vmatpush2.bf16.msra.mxu1 %v3938_v11  ;;  %2652 = vmatprep.subr.bf16.mxu0 %v3943_v12  ;;  %v4028_v11 = vld [vmem:[#allocation5 + $0x970] ss:$48 sps:$4 sm:$0xff]   ;;  %v4033_v12 = vld [vmem:[#allocation5 + $0x314] ss:$48 sps:$4 sm:$0xff]  }
  0xc8   : > { %2693 = vmatprep.subr.bf16.mxu1 %v3946_v13  ;;  %v4036_v13 = vld [vmem:[#allocation5 + $0x914] ss:$48 sps:$4 sm:$0xff]  }
  0xc9   : > { %2603 = vmatmul.mubr.bf16.vlgmr.msra.gmra.mxu0 %v4607_v8 }
  0xca   : > { %2644 = vmatmul.mubr.bf16.vlgmr.msra.gmra.mxu1 %v4609_v9  ;;  %2653 = vmatpush1.bf16.msra.mxu0 %v3941_v14  ;;  %v4031_v14 = vld [vmem:[#allocation5 + $0x310] ss:$48 sps:$4 sm:$0xff]  }
  0xcb   : > { %2694 = vmatpush1.bf16.msra.mxu1 %v3944_v15  ;;  %2654 = vmatprep.subr.bf16.mxu0 %v3949_v16  ;;  %v4034_v15 = vld [vmem:[#allocation5 + $0x910] ss:$48 sps:$4 sm:$0xff]   ;;  %v4039_v16 = vld [vmem:[#allocation5 + $0x2bc] ss:$48 sps:$4 sm:$0xff]  }
  0xcc   : > { %2695 = vmatprep.subr.bf16.mxu1 %v3952_v17  ;;  %2684 = vmatprep.mubr.bf16.mxu0 %v4598_v49  ;;  %v4042_v17 = vld [vmem:[#allocation5 + $0x8bc] ss:$48 sps:$4 sm:$0xff]  }
  0xcd   : > { %2725 = vmatprep.mubr.bf16.mxu1 %v4601_v52 }
  0xce   : > { %2655 = vmatpush1.bf16.msra.mxu0 %v3947_v18  ;;  %v4037_v18 = vld [vmem:[#allocation5 + $0x2b8] ss:$48 sps:$4 sm:$0xff]  }
  0xcf   : > { %2696 = vmatpush1.bf16.msra.mxu1 %v3950_v19  ;;  %2656 = vmatprep.subr.bf16.mxu0 %v3955_v20  ;;  %v4040_v19 = vld [vmem:[#allocation5 + $0x8b8] ss:$48 sps:$4 sm:$0xff]   ;;  %v4045_v20 = vld [vmem:[#allocation5 + $0x25c] ss:$48 sps:$4 sm:$0xff]  }
  0xd0   : > { %2697 = vmatprep.subr.bf16.mxu1 %v3958_v21  ;;  %v4048_v21 = vld [vmem:[#allocation5 + $0x85c] ss:$48 sps:$4 sm:$0xff]  }
  0xd2   : > { %2657 = vmatpush1.bf16.msra.mxu0 %v3953_v22  ;;  %v4043_v22 = vld [vmem:[#allocation5 + $0x258] ss:$48 sps:$4 sm:$0xff]  }
  0xd3   : > { %2698 = vmatpush1.bf16.msra.mxu1 %v3956_v23  ;;  %2658 = vmatprep.subr.bf16.mxu0 %v3961_v24  ;;  %v4046_v23 = vld [vmem:[#allocation5 + $0x858] ss:$48 sps:$4 sm:$0xff]   ;;  %v4051_v24 = vld [vmem:[#allocation5 + $0x1fc] ss:$48 sps:$4 sm:$0xff]  }
  0xd4   : > { %2699 = vmatprep.subr.bf16.mxu1 %v3964_v25  ;;  %v4054_v25 = vld [vmem:[#allocation5 + $0x7fc] ss:$48 sps:$4 sm:$0xff]  }
  0xd6   : > { %2659 = vmatpush1.bf16.msra.mxu0 %v3959_v26  ;;  %v4049_v26 = vld [vmem:[#allocation5 + $0x1f8] ss:$48 sps:$4 sm:$0xff]  }
  0xd7   : > { %2700 = vmatpush1.bf16.msra.mxu1 %v3962_v27  ;;  %2660 = vmatprep.subr.bf16.mxu0 %v3967_v28  ;;  %v4052_v27 = vld [vmem:[#allocation5 + $0x7f8] ss:$48 sps:$4 sm:$0xff]   ;;  %v4057_v28 = vld [vmem:[#allocation5 + $0x19c] ss:$48 sps:$4 sm:$0xff]  }
  0xd8   : > { %2701 = vmatprep.subr.bf16.mxu1 %v3970_v29  ;;  %v4060_v29 = vld [vmem:[#allocation5 + $0x79c] ss:$48 sps:$4 sm:$0xff]  }
  0xda   : > { %2661 = vmatpush1.bf16.msra.mxu0 %v3965_v30  ;;  %v4055_v30 = vld [vmem:[#allocation5 + $0x198] ss:$48 sps:$4 sm:$0xff]  }
  0xdb   : > { %2702 = vmatpush1.bf16.msra.mxu1 %v3968_v31  ;;  %2662 = vmatprep.subr.bf16.mxu0 %v3973_v32  ;;  %v4058_v31 = vld [vmem:[#allocation5 + $0x798] ss:$48 sps:$4 sm:$0xff]   ;;  %v4063_v32 = vld [vmem:[#allocation5 + $0x13c] ss:$48 sps:$4 sm:$0xff]  }
  0xdc   : > { %2703 = vmatprep.subr.bf16.mxu1 %v3976_v33  ;;  %v4066_v33 = vld [vmem:[#allocation5 + $0x73c] ss:$48 sps:$4 sm:$0xff]  }
  0xde   : > { %2663 = vmatpush1.bf16.msra.mxu0 %v3971_v34  ;;  %v4061_v34 = vld [vmem:[#allocation5 + $0x138] ss:$48 sps:$4 sm:$0xff]  }
  0xdf   : > { %2704 = vmatpush1.bf16.msra.mxu1 %v3974_v35  ;;  %2664 = vmatprep.subr.bf16.mxu0 %v3979_v36  ;;  %v4064_v35 = vld [vmem:[#allocation5 + $0x738] ss:$48 sps:$4 sm:$0xff]   ;;  %v4069_v36 = vld [vmem:[#allocation5 + $0xdc] ss:$48 sps:$4 sm:$0xff]  }
  0xe0   : > { %2705 = vmatprep.subr.bf16.mxu1 %v3982_v37  ;;  %v4072_v37 = vld [vmem:[#allocation5 + $0x6dc] ss:$48 sps:$4 sm:$0xff]  }
  0xe2   : > { %2665 = vmatpush1.bf16.msra.mxu0 %v3977_v38  ;;  %v4067_v38 = vld [vmem:[#allocation5 + $0xd8] ss:$48 sps:$4 sm:$0xff]  }
  0xe3   : > { %2706 = vmatpush1.bf16.msra.mxu1 %v3980_v39  ;;  %2666 = vmatprep.subr.bf16.mxu0 %v3985_v40  ;;  %v4070_v39 = vld [vmem:[#allocation5 + $0x6d8] ss:$48 sps:$4 sm:$0xff]   ;;  %v4075_v40 = vld [vmem:[#allocation5 + $0x7c] ss:$48 sps:$4 sm:$0xff]  }
  0xe4   : > { %2707 = vmatprep.subr.bf16.mxu1 %v3988_v41  ;;  %v4078_v41 = vld [vmem:[#allocation5 + $0x67c] ss:$48 sps:$4 sm:$0xff]  }
  0xe6   : > { %2667 = vmatpush1.bf16.msra.mxu0 %v3983_v42  ;;  %v4073_v42 = vld [vmem:[#allocation5 + $0x78] ss:$48 sps:$4 sm:$0xff]  }
  0xe7   : > { %2708 = vmatpush1.bf16.msra.mxu1 %v3986_v43  ;;  %2668 = vmatprep.subr.bf16.mxu0 %v3991_v44  ;;  %v4076_v43 = vld [vmem:[#allocation5 + $0x678] ss:$48 sps:$4 sm:$0xff]   ;;  %v4081_v44 = vld [vmem:[#allocation5 + $0x1c] ss:$48 sps:$4 sm:$0xff]  }
  0xe8   : > { %2709 = vmatprep.subr.bf16.mxu1 %v3994_v45  ;;  %v4084_v45 = vld [vmem:[#allocation5 + $0x61c] ss:$48 sps:$4 sm:$0xff]  }
  0xea   : > { %2669 = vmatpush2.bf16.msra.mxu0 %v3989_v46  ;;  %v4079_v46 = vld [vmem:[#allocation5 + $0x18] ss:$48 sps:$4 sm:$0xff]  }
  0xeb   : > { %2710 = vmatpush2.bf16.msra.mxu1 %v3992_v47  ;;  %2670 = vmatprep.subr.bf16.mxu0 %v3997_v48  ;;  %v4082_v47 = vld [vmem:[#allocation5 + $0x618] ss:$48 sps:$4 sm:$0xff]   ;;  %v4087_v48 = vld [vmem:[#allocation5 + $0x5bc] ss:$48 sps:$4 sm:$0xff]  }
  0xec   : > { %2711 = vmatprep.subr.bf16.mxu1 %v4000_v50  ;;  %v4090_v50 = vld [vmem:[#allocation5 + $0xbbc] ss:$48 sps:$4 sm:$0xff]  }
  0xee   : > { %2671 = vmatpush2.bf16.msra.mxu0 %v3995_v51  ;;  %v4085_v51 = vld [vmem:[#allocation5 + $0x5b8] ss:$48 sps:$4 sm:$0xff]  }
  0xef   : > { %2712 = vmatpush2.bf16.msra.mxu1 %v3998_v53  ;;  %2672 = vmatprep.subr.bf16.mxu0 %v4003_v54  ;;  %v4088_v53 = vld [vmem:[#allocation5 + $0xbb8] ss:$48 sps:$4 sm:$0xff]   ;;  %v4093_v54 = vld [vmem:[#allocation5 + $0x55c] ss:$48 sps:$4 sm:$0xff]  }
  0xf0   : > { %2713 = vmatprep.subr.bf16.mxu1 %v4006_v55  ;;  %v4096_v55 = vld [vmem:[#allocation5 + $0xb5c] ss:$48 sps:$4 sm:$0xff]  }
  0xf2   : > { %2673 = vmatpush2.bf16.msra.mxu0 %v4001_v56  ;;  %v4091_v56 = vld [vmem:[#allocation5 + $0x558] ss:$48 sps:$4 sm:$0xff]  }
  0xf3   : > { %2714 = vmatpush2.bf16.msra.mxu1 %v4004_v57  ;;  %2674 = vmatprep.subr.bf16.mxu0 %v4009_v58  ;;  %v4094_v57 = vld [vmem:[#allocation5 + $0xb58] ss:$48 sps:$4 sm:$0xff]   ;;  %v4099_v58 = vld [vmem:[#allocation5 + $0x4fc] ss:$48 sps:$4 sm:$0xff]  }
  0xf4   : > { %2715 = vmatprep.subr.bf16.mxu1 %v4012_v59  ;;  %v4102_v59 = vld [vmem:[#allocation5 + $0xafc] ss:$48 sps:$4 sm:$0xff]  }
  0xf6   : > { %2675 = vmatpush2.bf16.msra.mxu0 %v4007_v60  ;;  %v4097_v60 = vld [vmem:[#allocation5 + $0x4f8] ss:$48 sps:$4 sm:$0xff]  }
  0xf7   : > { %2716 = vmatpush2.bf16.msra.mxu1 %v4010_v61  ;;  %2676 = vmatprep.subr.bf16.mxu0 %v4015_v62  ;;  %v4100_v61 = vld [vmem:[#allocation5 + $0xaf8] ss:$48 sps:$4 sm:$0xff]   ;;  %v4105_v62 = vld [vmem:[#allocation5 + $0x49c] ss:$48 sps:$4 sm:$0xff]  }
  0xf8   : > { %2717 = vmatprep.subr.bf16.mxu1 %v4018_v63  ;;  %v4108_v63 = vld [vmem:[#allocation5 + $0xa9c] ss:$48 sps:$4 sm:$0xff]  }
  0xfa   : > { %2677 = vmatpush2.bf16.msra.mxu0 %v4013_v0  ;;  %v4103_v0 = vld [vmem:[#allocation5 + $0x498] ss:$48 sps:$4 sm:$0xff]  }
  0xfb   : > { %2718 = vmatpush2.bf16.msra.mxu1 %v4016_v1  ;;  %2678 = vmatprep.subr.bf16.mxu0 %v4021_v2  ;;  %v4106_v1 = vld [vmem:[#allocation5 + $0xa98] ss:$48 sps:$4 sm:$0xff]   ;;  %v4111_v2 = vld [vmem:[#allocation5 + $0x43c] ss:$48 sps:$4 sm:$0xff]  }
  0xfc   : > { %2719 = vmatprep.subr.bf16.mxu1 %v4024_v3  ;;  %v4114_v3 = vld [vmem:[#allocation5 + $0xa3c] ss:$48 sps:$4 sm:$0xff]  }
  0xfe   : > { %2679 = vmatpush2.bf16.msra.mxu0 %v4019_v4  ;;  %v4109_v4 = vld [vmem:[#allocation5 + $0x438] ss:$48 sps:$4 sm:$0xff]  }
  0xff   : > { %2720 = vmatpush2.bf16.msra.mxu1 %v4022_v5  ;;  %2680 = vmatprep.subr.bf16.mxu0 %v4027_v6  ;;  %v4112_v5 = vld [vmem:[#allocation5 + $0xa38] ss:$48 sps:$4 sm:$0xff]   ;;  %v4117_v6 = vld [vmem:[#allocation5 + $0x3dc] ss:$48 sps:$4 sm:$0xff]  }
 0x100   : > { %2721 = vmatprep.subr.bf16.mxu1 %v4030_v7  ;;  %v4120_v7 = vld [vmem:[#allocation5 + $0x9dc] ss:$48 sps:$4 sm:$0xff]  }
 0x102   : > { %2681 = vmatpush2.bf16.msra.mxu0 %v4025_v10  ;;  %v4115_v10 = vld [vmem:[#allocation5 + $0x3d8] ss:$48 sps:$4 sm:$0xff]  }
 0x103   : > { %2722 = vmatpush2.bf16.msra.mxu1 %v4028_v11  ;;  %2682 = vmatprep.subr.bf16.mxu0 %v4033_v12  ;;  %v4118_v11 = vld [vmem:[#allocation5 + $0x9d8] ss:$48 sps:$4 sm:$0xff]   ;;  %v4123_v12 = vld [vmem:[#allocation5 + $0x37c] ss:$48 sps:$4 sm:$0xff]  }
 0x104   : > { %2723 = vmatprep.subr.bf16.mxu1 %v4036_v13  ;;  %v4126_v13 = vld [vmem:[#allocation5 + $0x97c] ss:$48 sps:$4 sm:$0xff]  }
 0x106   : > { %2683 = vmatpush2.bf16.msra.mxu0 %v4031_v14  ;;  %v4121_v14 = vld [vmem:[#allocation5 + $0x378] ss:$48 sps:$4 sm:$0xff]  }
 0x107   : > { %2724 = vmatpush2.bf16.msra.mxu1 %v4034_v15  ;;  %2734 = vmatprep.subr.bf16.mxu0 %v4039_v16  ;;  %v4124_v15 = vld [vmem:[#allocation5 + $0x978] ss:$48 sps:$4 sm:$0xff]   ;;  %v4129_v16 = vld [vmem:[#allocation5 + $0x31c] ss:$48 sps:$4 sm:$0xff]  }
 0x108   : > { %2775 = vmatprep.subr.bf16.mxu1 %v4042_v17  ;;  %v4132_v17 = vld [vmem:[#allocation5 + $0x91c] ss:$48 sps:$4 sm:$0xff]  }
 0x109   : > { %2685 = vmatmul.mubr.bf16.vlgmr.msra.gmra.mxu0 %v4607_v8 }
 0x10a   : > { %2726 = vmatmul.mubr.bf16.vlgmr.msra.gmra.mxu1 %v4609_v9  ;;  %2735 = vmatpush1.bf16.msra.mxu0 %v4037_v18  ;;  %v4127_v18 = vld [vmem:[#allocation5 + $0x318] ss:$48 sps:$4 sm:$0xff]  }
 0x10b   : > { %2776 = vmatpush1.bf16.msra.mxu1 %v4040_v19  ;;  %2736 = vmatprep.subr.bf16.mxu0 %v4045_v20  ;;  %v4130_v19 = vld [vmem:[#allocation5 + $0x918] ss:$48 sps:$4 sm:$0xff]   ;;  %v4135_v20 = vld [vmem:[#allocation5 + $0x2c4] ss:$48 sps:$4 sm:$0xff]  }
 0x10c   : > { %2777 = vmatprep.subr.bf16.mxu1 %v4048_v21  ;;  %2766 = vmatprep.mubr.bf16.mxu0 %v4598_v49  ;;  %v4138_v21 = vld [vmem:[#allocation5 + $0x8c4] ss:$48 sps:$4 sm:$0xff]  }
 0x10d   : > { %2807 = vmatprep.mubr.bf16.mxu1 %v4601_v52 }
 0x10e   : > { %2737 = vmatpush1.bf16.msra.mxu0 %v4043_v22  ;;  %v4133_v22 = vld [vmem:[#allocation5 + $0x2c0] ss:$48 sps:$4 sm:$0xff]  }
 0x10f   : > { %2778 = vmatpush1.bf16.msra.mxu1 %v4046_v23  ;;  %2738 = vmatprep.subr.bf16.mxu0 %v4051_v24  ;;  %v4136_v23 = vld [vmem:[#allocation5 + $0x8c0] ss:$48 sps:$4 sm:$0xff]   ;;  %v4141_v24 = vld [vmem:[#allocation5 + $0x264] ss:$48 sps:$4 sm:$0xff]  }
 0x110   : > { %2779 = vmatprep.subr.bf16.mxu1 %v4054_v25  ;;  %v4144_v25 = vld [vmem:[#allocation5 + $0x864] ss:$48 sps:$4 sm:$0xff]  }
 0x112   : > { %2739 = vmatpush1.bf16.msra.mxu0 %v4049_v26 }
 0x113   : > { %2780 = vmatpush1.bf16.msra.mxu1 %v4052_v27  ;;  %2740 = vmatprep.subr.bf16.mxu0 %v4057_v28 }
 0x114   : > { %2781 = vmatprep.subr.bf16.mxu1 %v4060_v29  ;;  %v4139_v29 = vld [vmem:[#allocation5 + $0x260] ss:$48 sps:$4 sm:$0xff]  }
 0x116   : > { %2741 = vmatpush1.bf16.msra.mxu0 %v4055_v30  ;;  %v4142_v30 = vld [vmem:[#allocation5 + $0x860] ss:$48 sps:$4 sm:$0xff]  }
 0x117   : > { %2782 = vmatpush1.bf16.msra.mxu1 %v4058_v31  ;;  %2742 = vmatprep.subr.bf16.mxu0 %v4063_v32 }
 0x118   : > { %2783 = vmatprep.subr.bf16.mxu1 %v4066_v33  ;;  %v4147_v33 = vld [vmem:[#allocation5 + $0x204] ss:$48 sps:$4 sm:$0xff]  }
 0x11a   : > { %2743 = vmatpush1.bf16.msra.mxu0 %v4061_v34  ;;  %v4150_v34 = vld [vmem:[#allocation5 + $0x804] ss:$48 sps:$4 sm:$0xff]  }
 0x11b   : > { %2784 = vmatpush1.bf16.msra.mxu1 %v4064_v35  ;;  %2744 = vmatprep.subr.bf16.mxu0 %v4069_v36 }
 0x11c   : > { %2785 = vmatprep.subr.bf16.mxu1 %v4072_v37 }
 0x11e   : > { %2745 = vmatpush1.bf16.msra.mxu0 %v4067_v38  ;;  %v4145_v38 = vld [vmem:[#allocation5 + $0x200] ss:$48 sps:$4 sm:$0xff]  }
 0x11f   : > { %2786 = vmatpush1.bf16.msra.mxu1 %v4070_v39  ;;  %2746 = vmatprep.subr.bf16.mxu0 %v4075_v40  ;;  %v4148_v39 = vld [vmem:[#allocation5 + $0x800] ss:$48 sps:$4 sm:$0xff]  }
 0x120   : > { %2787 = vmatprep.subr.bf16.mxu1 %v4078_v41 }
 0x122   : > { %2747 = vmatpush1.bf16.msra.mxu0 %v4073_v42  ;;  %v4153_v42 = vld [vmem:[#allocation5 + $0x1a4] ss:$48 sps:$4 sm:$0xff]  }
 0x123   : > { %2788 = vmatpush1.bf16.msra.mxu1 %v4076_v43  ;;  %2748 = vmatprep.subr.bf16.mxu0 %v4081_v44  ;;  %v4156_v43 = vld [vmem:[#allocation5 + $0x7a4] ss:$48 sps:$4 sm:$0xff]   ;;  %v4151_v44 = vld [vmem:[#allocation5 + $0x1a0] ss:$48 sps:$4 sm:$0xff]  }
 0x124   : > { %2789 = vmatprep.subr.bf16.mxu1 %v4084_v45  ;;  %v4154_v45 = vld [vmem:[#allocation5 + $0x7a0] ss:$48 sps:$4 sm:$0xff]  }
 0x126   : > { %2749 = vmatpush1.bf16.msra.mxu0 %v4079_v46  ;;  %v4159_v46 = vld [vmem:[#allocation5 + $0x144] ss:$48 sps:$4 sm:$0xff]  }
 0x127   : > { %2790 = vmatpush1.bf16.msra.mxu1 %v4082_v47  ;;  %2750 = vmatprep.subr.bf16.mxu0 %v4087_v48  ;;  %v4162_v47 = vld [vmem:[#allocation5 + $0x744] ss:$48 sps:$4 sm:$0xff]   ;;  %v4157_v48 = vld [vmem:[#allocation5 + $0x140] ss:$48 sps:$4 sm:$0xff]  }
 0x128   : > { %2791 = vmatprep.subr.bf16.mxu1 %v4090_v50  ;;  %v4160_v50 = vld [vmem:[#allocation5 + $0x740] ss:$48 sps:$4 sm:$0xff]  }
 0x12a   : > { %2751 = vmatpush2.bf16.msra.mxu0 %v4085_v51  ;;  %v4165_v51 = vld [vmem:[#allocation5 + $0xe4] ss:$48 sps:$4 sm:$0xff]  }
 0x12b   : > { %2792 = vmatpush2.bf16.msra.mxu1 %v4088_v53  ;;  %2752 = vmatprep.subr.bf16.mxu0 %v4093_v54  ;;  %v4168_v53 = vld [vmem:[#allocation5 + $0x6e4] ss:$48 sps:$4 sm:$0xff]   ;;  %v4163_v54 = vld [vmem:[#allocation5 + $0xe0] ss:$48 sps:$4 sm:$0xff]  }
 0x12c   : > { %2793 = vmatprep.subr.bf16.mxu1 %v4096_v55  ;;  %v4166_v55 = vld [vmem:[#allocation5 + $0x6e0] ss:$48 sps:$4 sm:$0xff]  }
 0x12e   : > { %2753 = vmatpush2.bf16.msra.mxu0 %v4091_v56  ;;  %v4171_v56 = vld [vmem:[#allocation5 + $0x84] ss:$48 sps:$4 sm:$0xff]  }
 0x12f   : > { %2794 = vmatpush2.bf16.msra.mxu1 %v4094_v57  ;;  %2754 = vmatprep.subr.bf16.mxu0 %v4099_v58  ;;  %v4174_v57 = vld [vmem:[#allocation5 + $0x684] ss:$48 sps:$4 sm:$0xff]   ;;  %v4169_v58 = vld [vmem:[#allocation5 + $0x80] ss:$48 sps:$4 sm:$0xff]  }
 0x130   : > { %2795 = vmatprep.subr.bf16.mxu1 %v4102_v59  ;;  %v4172_v59 = vld [vmem:[#allocation5 + $0x680] ss:$48 sps:$4 sm:$0xff]  }
 0x132   : > { %2755 = vmatpush2.bf16.msra.mxu0 %v4097_v60  ;;  %v4177_v60 = vld [vmem:[#allocation5 + $0x24] ss:$48 sps:$4 sm:$0xff]  }
 0x133   : > { %2796 = vmatpush2.bf16.msra.mxu1 %v4100_v61  ;;  %2756 = vmatprep.subr.bf16.mxu0 %v4105_v62  ;;  %v4180_v61 = vld [vmem:[#allocation5 + $0x624] ss:$48 sps:$4 sm:$0xff]   ;;  %v4175_v62 = vld [vmem:[#allocation5 + $0x20] ss:$48 sps:$4 sm:$0xff]  }
 0x134   : > { %2797 = vmatprep.subr.bf16.mxu1 %v4108_v63  ;;  %v4178_v63 = vld [vmem:[#allocation5 + $0x620] ss:$48 sps:$4 sm:$0xff]  }
 0x136   : > { %2757 = vmatpush2.bf16.msra.mxu0 %v4103_v0  ;;  %v4183_v0 = vld [vmem:[#allocation5 + $0x5c4] ss:$48 sps:$4 sm:$0xff]  }
 0x137   : > { %2798 = vmatpush2.bf16.msra.mxu1 %v4106_v1  ;;  %2758 = vmatprep.subr.bf16.mxu0 %v4111_v2  ;;  %v4186_v1 = vld [vmem:[#allocation5 + $0xbc4] ss:$48 sps:$4 sm:$0xff]   ;;  %v4181_v2 = vld [vmem:[#allocation5 + $0x5c0] ss:$48 sps:$4 sm:$0xff]  }
 0x138   : > { %2799 = vmatprep.subr.bf16.mxu1 %v4114_v3  ;;  %v4184_v3 = vld [vmem:[#allocation5 + $0xbc0] ss:$48 sps:$4 sm:$0xff]  }
 0x13a   : > { %2759 = vmatpush2.bf16.msra.mxu0 %v4109_v4  ;;  %v4189_v4 = vld [vmem:[#allocation5 + $0x564] ss:$48 sps:$4 sm:$0xff]  }
 0x13b   : > { %2800 = vmatpush2.bf16.msra.mxu1 %v4112_v5  ;;  %2760 = vmatprep.subr.bf16.mxu0 %v4117_v6  ;;  %v4192_v5 = vld [vmem:[#allocation5 + $0xb64] ss:$48 sps:$4 sm:$0xff]   ;;  %v4187_v6 = vld [vmem:[#allocation5 + $0x560] ss:$48 sps:$4 sm:$0xff]  }
 0x13c   : > { %2801 = vmatprep.subr.bf16.mxu1 %v4120_v7  ;;  %v4190_v7 = vld [vmem:[#allocation5 + $0xb60] ss:$48 sps:$4 sm:$0xff]  }
 0x13e   : > { %2761 = vmatpush2.bf16.msra.mxu0 %v4115_v10  ;;  %v4195_v10 = vld [vmem:[#allocation5 + $0x504] ss:$48 sps:$4 sm:$0xff]  }
 0x13f   : > { %2802 = vmatpush2.bf16.msra.mxu1 %v4118_v11  ;;  %2762 = vmatprep.subr.bf16.mxu0 %v4123_v12  ;;  %v4198_v11 = vld [vmem:[#allocation5 + $0xb04] ss:$48 sps:$4 sm:$0xff]   ;;  %v4193_v12 = vld [vmem:[#allocation5 + $0x500] ss:$48 sps:$4 sm:$0xff]  }
 0x140   : > { %2803 = vmatprep.subr.bf16.mxu1 %v4126_v13  ;;  %v4196_v13 = vld [vmem:[#allocation5 + $0xb00] ss:$48 sps:$4 sm:$0xff]  }
 0x142   : > { %2763 = vmatpush2.bf16.msra.mxu0 %v4121_v14  ;;  %v4201_v14 = vld [vmem:[#allocation5 + $0x4a4] ss:$48 sps:$4 sm:$0xff]  }
 0x143   : > { %2804 = vmatpush2.bf16.msra.mxu1 %v4124_v15  ;;  %2764 = vmatprep.subr.bf16.mxu0 %v4129_v16  ;;  %v4204_v15 = vld [vmem:[#allocation5 + $0xaa4] ss:$48 sps:$4 sm:$0xff]   ;;  %v4199_v16 = vld [vmem:[#allocation5 + $0x4a0] ss:$48 sps:$4 sm:$0xff]  }
 0x144   : > { %2805 = vmatprep.subr.bf16.mxu1 %v4132_v17  ;;  %v4202_v17 = vld [vmem:[#allocation5 + $0xaa0] ss:$48 sps:$4 sm:$0xff]  }
 0x146   : > { %2765 = vmatpush2.bf16.msra.mxu0 %v4127_v18  ;;  %v4207_v18 = vld [vmem:[#allocation5 + $0x444] ss:$48 sps:$4 sm:$0xff]  }
 0x147   : > { %2806 = vmatpush2.bf16.msra.mxu1 %v4130_v19  ;;  %2816 = vmatprep.subr.bf16.mxu0 %v4135_v20  ;;  %v4210_v19 = vld [vmem:[#allocation5 + $0xa44] ss:$48 sps:$4 sm:$0xff]   ;;  %v4205_v20 = vld [vmem:[#allocation5 + $0x440] ss:$48 sps:$4 sm:$0xff]  }
 0x148   : > { %2857 = vmatprep.subr.bf16.mxu1 %v4138_v21  ;;  %v4208_v21 = vld [vmem:[#allocation5 + $0xa40] ss:$48 sps:$4 sm:$0xff]  }
 0x149   : > { %v2522_v26 = vpop.f32.mrf.mxu0  ;;  %2767 = vmatmul.mubr.bf16.vlgmr.msra.gmra.mxu0 %v4607_v8 }
 0x14a   : > { %v2563_v27 = vpop.f32.mrf.mxu1  ;;  %2808 = vmatmul.mubr.bf16.vlgmr.msra.gmra.mxu1 %v4609_v9  ;;  %2817 = vmatpush1.bf16.msra.mxu0 %v4133_v22  ;;  %v4213_v22 = vld [vmem:[#allocation5 + $0x3e4] ss:$48 sps:$4 sm:$0xff]  }
 0x14b   : > { %v4625_v28 = vadd.f32 %v2563_v27, %v2522_v26  ;;  %2858 = vmatpush1.bf16.msra.mxu1 %v4136_v23  ;;  %v2524_v31 = vpop.f32.mrf.mxu0  ;;  %2818 = vmatprep.subr.bf16.mxu0 %v4141_v24  ;;  %v4216_v23 = vld [vmem:[#allocation5 + $0x9e4] ss:$48 sps:$4 sm:$0xff]   ;;  %v4211_v24 = vld [vmem:[#allocation5 + $0x3e0] ss:$48 sps:$4 sm:$0xff]  }
 0x14c   : > { %v2565_v32 = vpop.f32.mrf.mxu1  ;;  %2859 = vmatprep.subr.bf16.mxu1 %v4144_v25  ;;  %2848 = vmatprep.mubr.bf16.mxu0 %v4598_v49  ;;  %v4214_v25 = vld [vmem:[#allocation5 + $0x9e0] ss:$48 sps:$4 sm:$0xff]   ;;  %v4219_v26 = vld [vmem:[#allocation5 + $0x384] ss:$48 sps:$4 sm:$0xff]  }
 0x14d   : > { %v4627_v35 = vadd.f32 %v2565_v32, %v2524_v31  ;;  %2889 = vmatprep.mubr.bf16.mxu1 %v4601_v52  ;;  %v2526_v36 = vpop.f32.mrf.mxu0  ;;  %v4222_v27 = vld [vmem:[#allocation5 + $0x984] ss:$48 sps:$4 sm:$0xff]  }
 0x14e   : > { %v2567_v37 = vpop.f32.mrf.mxu1  ;;  %2819 = vmatpush1.bf16.msra.mxu0 %v4139_v29  ;;  %v4217_v29 = vld [vmem:[#allocation5 + $0x380] ss:$48 sps:$4 sm:$0xff]   ;;  %v4225_v31 = vld [vmem:[#allocation5 + $0x324] ss:$48 sps:$4 sm:$0xff]   ;;  %v4231_v36 = vld [vmem:[#allocation5 + $0x2cc] ss:$48 sps:$4 sm:$0xff]  }
 0x14f   : > { %2860 = vmatpush1.bf16.msra.mxu1 %v4142_v30  ;;  %v2527_v40 = vpop.f32.mrf.mxu0  ;;  %2820 = vmatprep.subr.bf16.mxu0 %v4147_v33  ;;  %v4220_v30 = vld [vmem:[#allocation5 + $0x980] ss:$48 sps:$4 sm:$0xff]   ;;  %v4228_v32 = vld [vmem:[#allocation5 + $0x924] ss:$48 sps:$4 sm:$0xff]   ;;  %v4234_v37 = vld [vmem:[#allocation5 + $0x8cc] ss:$48 sps:$4 sm:$0xff]  }
 0x150   : > { %v2568_v41 = vpop.f32.mrf.mxu1  ;;  %2861 = vmatprep.subr.bf16.mxu1 %v4150_v34  ;;  %v4223_v33 = vld [vmem:[#allocation5 + $0x320] ss:$48 sps:$4 sm:$0xff]   ;;  %v4237_v40 = vld [vmem:[#allocation5 + $0x26c] ss:$48 sps:$4 sm:$0xff]  }
 0x151   : > { %v4226_v34 = vld [vmem:[#allocation5 + $0x920] ss:$48 sps:$4 sm:$0xff]   ;;  %v4240_v41 = vld [vmem:[#allocation5 + $0x86c] ss:$48 sps:$4 sm:$0xff]  }
 0x152   : > { %2821 = vmatpush1.bf16.msra.mxu0 %v4145_v38  ;;  %v4229_v38 = vld [vmem:[#allocation5 + $0x2c8] ss:$48 sps:$4 sm:$0xff]  }
 0x153   : > { %2862 = vmatpush1.bf16.msra.mxu1 %v4148_v39  ;;  %2822 = vmatprep.subr.bf16.mxu0 %v4153_v42  ;;  %v4232_v39 = vld [vmem:[#allocation5 + $0x8c8] ss:$48 sps:$4 sm:$0xff]  }
 0x154   : > { %2863 = vmatprep.subr.bf16.mxu1 %v4156_v43 }
 0x156   : > { %2823 = vmatpush1.bf16.msra.mxu0 %v4151_v44 }
 0x157   : > { %2864 = vmatpush1.bf16.msra.mxu1 %v4154_v45  ;;  %2824 = vmatprep.subr.bf16.mxu0 %v4159_v46  ;;  %v4235_v45 = vld [vmem:[#allocation5 + $0x268] ss:$48 sps:$4 sm:$0xff]  }
 0x158   : > { %2865 = vmatprep.subr.bf16.mxu1 %v4162_v47  ;;  %v4238_v46 = vld [vmem:[#allocation5 + $0x868] ss:$48 sps:$4 sm:$0xff]  }
 0x15a   : > { %2825 = vmatpush1.bf16.msra.mxu0 %v4157_v48 }
 0x15b   : > { %2866 = vmatpush1.bf16.msra.mxu1 %v4160_v50  ;;  %2826 = vmatprep.subr.bf16.mxu0 %v4165_v51  ;;  %v4243_v50 = vld [vmem:[#allocation5 + $0x20c] ss:$48 sps:$4 sm:$0xff]  }
 0x15c   : > { %2867 = vmatprep.subr.bf16.mxu1 %v4168_v53  ;;  %v4246_v51 = vld [vmem:[#allocation5 + $0x80c] ss:$48 sps:$4 sm:$0xff]  }
 0x15e   : > { %2827 = vmatpush1.bf16.msra.mxu0 %v4163_v54 }
 0x15f   : > { %2868 = vmatpush1.bf16.msra.mxu1 %v4166_v55  ;;  %2828 = vmatprep.subr.bf16.mxu0 %v4171_v56  ;;  %v4241_v55 = vld [vmem:[#allocation5 + $0x208] ss:$48 sps:$4 sm:$0xff]  }
 0x160   : > { %2869 = vmatprep.subr.bf16.mxu1 %v4174_v57  ;;  %v4244_v56 = vld [vmem:[#allocation5 + $0x808] ss:$48 sps:$4 sm:$0xff]  }
 0x162   : > { %2829 = vmatpush1.bf16.msra.mxu0 %v4169_v58 }
 0x163   : > { %2870 = vmatpush1.bf16.msra.mxu1 %v4172_v59  ;;  %2830 = vmatprep.subr.bf16.mxu0 %v4177_v60  ;;  %v4249_v59 = vld [vmem:[#allocation5 + $0x1ac] ss:$48 sps:$4 sm:$0xff]  }
 0x164   : > { %2871 = vmatprep.subr.bf16.mxu1 %v4180_v61  ;;  %v4252_v60 = vld [vmem:[#allocation5 + $0x7ac] ss:$48 sps:$4 sm:$0xff]   ;;  %v4247_v61 = vld [vmem:[#allocation5 + $0x1a8] ss:$48 sps:$4 sm:$0xff]  }
 0x166   : > { %2831 = vmatpush1.bf16.msra.mxu0 %v4175_v62  ;;  %v4250_v62 = vld [vmem:[#allocation5 + $0x7a8] ss:$48 sps:$4 sm:$0xff]  }
 0x167   : > { %2872 = vmatpush1.bf16.msra.mxu1 %v4178_v63  ;;  %2832 = vmatprep.subr.bf16.mxu0 %v4183_v0  ;;  %v4253_v63 = vld [vmem:[#allocation5 + $0x148] ss:$48 sps:$4 sm:$0xff]  }
 0x168   : > { %2873 = vmatprep.subr.bf16.mxu1 %v4186_v1  ;;  %v4256_v0 = vld [vmem:[#allocation5 + $0x748] ss:$48 sps:$4 sm:$0xff]   ;;  %v4261_v1 = vld [vmem:[#allocation5 + $0xec] ss:$48 sps:$4 sm:$0xff]  }
 0x16a   : > { %2833 = vmatpush2.bf16.msra.mxu0 %v4181_v2  ;;  %v4264_v2 = vld [vmem:[#allocation5 + $0x6ec] ss:$48 sps:$4 sm:$0xff]  }
 0x16b   : > { %2874 = vmatpush2.bf16.msra.mxu1 %v4184_v3  ;;  %2834 = vmatprep.subr.bf16.mxu0 %v4189_v4  ;;  %v4259_v3 = vld [vmem:[#allocation5 + $0xe8] ss:$48 sps:$4 sm:$0xff]  }
 0x16c   : > { %2875 = vmatprep.subr.bf16.mxu1 %v4192_v5  ;;  %v4262_v4 = vld [vmem:[#allocation5 + $0x6e8] ss:$48 sps:$4 sm:$0xff]   ;;  %v4267_v5 = vld [vmem:[#allocation5 + $0x8c] ss:$48 sps:$4 sm:$0xff]  }
 0x16e   : > { %2835 = vmatpush2.bf16.msra.mxu0 %v4187_v6  ;;  %v4270_v6 = vld [vmem:[#allocation5 + $0x68c] ss:$48 sps:$4 sm:$0xff]  }
 0x16f   : > { %2876 = vmatpush2.bf16.msra.mxu1 %v4190_v7  ;;  %2836 = vmatprep.subr.bf16.mxu0 %v4195_v10  ;;  %v4265_v7 = vld [vmem:[#allocation5 + $0x88] ss:$48 sps:$4 sm:$0xff]  }
 0x170   : > { %2877 = vmatprep.subr.bf16.mxu1 %v4198_v11  ;;  %v4268_v10 = vld [vmem:[#allocation5 + $0x688] ss:$48 sps:$4 sm:$0xff]   ;;  %v4273_v11 = vld [vmem:[#allocation5 + $0x2c] ss:$48 sps:$4 sm:$0xff]  }
 0x172   : > { %2837 = vmatpush2.bf16.msra.mxu0 %v4193_v12  ;;  %v4276_v12 = vld [vmem:[#allocation5 + $0x62c] ss:$48 sps:$4 sm:$0xff]  }
 0x173   : > { %2878 = vmatpush2.bf16.msra.mxu1 %v4196_v13  ;;  %2838 = vmatprep.subr.bf16.mxu0 %v4201_v14  ;;  %v4271_v13 = vld [vmem:[#allocation5 + $0x28] ss:$48 sps:$4 sm:$0xff]  }
 0x174   : > { %2879 = vmatprep.subr.bf16.mxu1 %v4204_v15  ;;  %v4274_v14 = vld [vmem:[#allocation5 + $0x628] ss:$48 sps:$4 sm:$0xff]   ;;  %v4279_v15 = vld [vmem:[#allocation5 + $0x5cc] ss:$48 sps:$4 sm:$0xff]  }
 0x176   : > { %2839 = vmatpush2.bf16.msra.mxu0 %v4199_v16  ;;  %v4282_v16 = vld [vmem:[#allocation5 + $0xbcc] ss:$48 sps:$4 sm:$0xff]  }
 0x177   : > { %2880 = vmatpush2.bf16.msra.mxu1 %v4202_v17  ;;  %2840 = vmatprep.subr.bf16.mxu0 %v4207_v18  ;;  %v4277_v17 = vld [vmem:[#allocation5 + $0x5c8] ss:$48 sps:$4 sm:$0xff]  }
 0x178   : > { %2881 = vmatprep.subr.bf16.mxu1 %v4210_v19  ;;  %v4280_v18 = vld [vmem:[#allocation5 + $0xbc8] ss:$48 sps:$4 sm:$0xff]   ;;  %v4285_v19 = vld [vmem:[#allocation5 + $0x56c] ss:$48 sps:$4 sm:$0xff]  }
 0x17a   : > { %2841 = vmatpush2.bf16.msra.mxu0 %v4205_v20  ;;  %v4288_v20 = vld [vmem:[#allocation5 + $0xb6c] ss:$48 sps:$4 sm:$0xff]  }
 0x17b   : > { %2882 = vmatpush2.bf16.msra.mxu1 %v4208_v21  ;;  %2842 = vmatprep.subr.bf16.mxu0 %v4213_v22  ;;  %v4283_v21 = vld [vmem:[#allocation5 + $0x568] ss:$48 sps:$4 sm:$0xff]  }
 0x17c   : > { %2883 = vmatprep.subr.bf16.mxu1 %v4216_v23  ;;  %v4286_v22 = vld [vmem:[#allocation5 + $0xb68] ss:$48 sps:$4 sm:$0xff]   ;;  %v4291_v23 = vld [vmem:[#allocation5 + $0x50c] ss:$48 sps:$4 sm:$0xff]  }
 0x17e   : > { %2843 = vmatpush2.bf16.msra.mxu0 %v4211_v24  ;;  %v4294_v24 = vld [vmem:[#allocation5 + $0xb0c] ss:$48 sps:$4 sm:$0xff]  }
 0x17f   : > { %2884 = vmatpush2.bf16.msra.mxu1 %v4214_v25  ;;  %2844 = vmatprep.subr.bf16.mxu0 %v4219_v26  ;;  %v4289_v25 = vld [vmem:[#allocation5 + $0x508] ss:$48 sps:$4 sm:$0xff]  }
 0x180   : > { %2885 = vmatprep.subr.bf16.mxu1 %v4222_v27  ;;  %v4292_v26 = vld [vmem:[#allocation5 + $0xb08] ss:$48 sps:$4 sm:$0xff]   ;;  %v4297_v27 = vld [vmem:[#allocation5 + $0x4ac] ss:$48 sps:$4 sm:$0xff]  }
 0x182   : > { %2845 = vmatpush2.bf16.msra.mxu0 %v4217_v29  ;;  %v4300_v29 = vld [vmem:[#allocation5 + $0xaac] ss:$48 sps:$4 sm:$0xff]  }
 0x183   : > { %2886 = vmatpush2.bf16.msra.mxu1 %v4220_v30  ;;  %2846 = vmatprep.subr.bf16.mxu0 %v4225_v31  ;;  %v4295_v30 = vld [vmem:[#allocation5 + $0x4a8] ss:$48 sps:$4 sm:$0xff]  }
 0x184   : > { %2887 = vmatprep.subr.bf16.mxu1 %v4228_v32  ;;  %v4298_v31 = vld [vmem:[#allocation5 + $0xaa8] ss:$48 sps:$4 sm:$0xff]   ;;  %v4303_v32 = vld [vmem:[#allocation5 + $0x44c] ss:$48 sps:$4 sm:$0xff]  }
 0x186   : > { %2847 = vmatpush2.bf16.msra.mxu0 %v4223_v33  ;;  %v4306_v33 = vld [vmem:[#allocation5 + $0xa4c] ss:$48 sps:$4 sm:$0xff]  }
 0x187   : > { %2888 = vmatpush2.bf16.msra.mxu1 %v4226_v34  ;;  %2898 = vmatprep.subr.bf16.mxu0 %v4231_v36  ;;  %v4301_v34 = vld [vmem:[#allocation5 + $0x448] ss:$48 sps:$4 sm:$0xff]  }
 0x188   : > { %2939 = vmatprep.subr.bf16.mxu1 %v4234_v37  ;;  %v4304_v36 = vld [vmem:[#allocation5 + $0xa48] ss:$48 sps:$4 sm:$0xff]   ;;  %v4309_v37 = vld [vmem:[#allocation5 + $0x3ec] ss:$48 sps:$4 sm:$0xff]  }
 0x189   : > { %v2604_v42 = vpop.f32.mrf.mxu0  ;;  %2849 = vmatmul.mubr.bf16.vlgmr.msra.gmra.mxu0 %v4607_v8 }
 0x18a   : > { %v2645_v43 = vpop.f32.mrf.mxu1  ;;  %2890 = vmatmul.mubr.bf16.vlgmr.msra.gmra.mxu1 %v4609_v9  ;;  %2899 = vmatpush1.bf16.msra.mxu0 %v4229_v38  ;;  %v4312_v38 = vld [vmem:[#allocation5 + $0x9ec] ss:$48 sps:$4 sm:$0xff]  }
 0x18b   : > { %v4633_v44 = vadd.f32 %v2645_v43, %v2604_v42  ;;  %2940 = vmatpush1.bf16.msra.mxu1 %v4232_v39  ;;  %v4635_v47 = vpop.f32.mrf.mxu0  ;;  %2900 = vmatprep.subr.bf16.mxu0 %v4237_v40  ;;  %v4307_v39 = vld [vmem:[#allocation5 + $0x3e8] ss:$48 sps:$4 sm:$0xff]   ;;  %v4318_v42 = vld [vmem:[#allocation5 + $0x98c] ss:$48 sps:$4 sm:$0xff]  }
 0x18c   : > { %v4637_v48 = vpop.f32.mrf.mxu1  ;;  %2941 = vmatprep.subr.bf16.mxu1 %v4240_v41  ;;  %2930 = vmatprep.mubr.bf16.mxu0 %v4598_v49  ;;  %v4255_v49 = vld [vmem:[#allocation5 + $0x14c] ss:$48 sps:$4 sm:$0xff]   ;;  %v4310_v40 = vld [vmem:[#allocation5 + $0x9e8] ss:$48 sps:$4 sm:$0xff]  }
 0x18d   : > { %2971 = vmatprep.mubr.bf16.mxu1 %v4601_v52  ;;  %v2608_v53 = vpop.f32.mrf.mxu0  ;;  %v4258_v52 = vld [vmem:[#allocation5 + $0x74c] ss:$48 sps:$4 sm:$0xff]   ;;  %v4313_v43 = vld [vmem:[#allocation5 + $0x388] ss:$48 sps:$4 sm:$0xff]  }
 0x18e   : > { %v2649_v54 = vpop.f32.mrf.mxu1  ;;  %2901 = vmatpush1.bf16.msra.mxu0 %v4235_v45  ;;  %v4315_v41 = vld [vmem:[#allocation5 + $0x38c] ss:$48 sps:$4 sm:$0xff]   ;;  %v4316_v45 = vld [vmem:[#allocation5 + $0x988] ss:$48 sps:$4 sm:$0xff]  }
 0x18f   : > { %2942 = vmatpush1.bf16.msra.mxu1 %v4238_v46  ;;  %v2609_v57 = vpop.f32.mrf.mxu0  ;;  %2902 = vmatprep.subr.bf16.mxu0 %v4243_v50  ;;  %v4321_v46 = vld [vmem:[#allocation5 + $0x32c] ss:$48 sps:$4 sm:$0xff]   ;;  %v4322_v53 = vld [vmem:[#allocation5 + $0x928] ss:$48 sps:$4 sm:$0xff]   ;;  %v2648_v54 = vadd.f32 %v4637_v48, %v4635_v47 }
 0x190   : > { %v2650_v58 = vpop.f32.mrf.mxu1  ;;  %2943 = vmatprep.subr.bf16.mxu1 %v4246_v51  ;;  %v4324_v50 = vld [vmem:[#allocation5 + $0x92c] ss:$48 sps:$4 sm:$0xff]   ;;  %v4319_v51 = vld [vmem:[#allocation5 + $0x328] ss:$48 sps:$4 sm:$0xff]  }
 0x192   : > { %2903 = vmatpush1.bf16.msra.mxu0 %v4241_v55  ;;  %v2981_v55 = vpack.c.bf16 %v4627_v35, %v4627_v35  ;;  %v2980_v35 = vpack.c.bf16 %v4625_v28, %v4625_v28 }
 0x193   : > { %2944 = vmatpush1.bf16.msra.mxu1 %v4244_v56  ;;  %2904 = vmatprep.subr.bf16.mxu0 %v4249_v59  ;;  %v2983_v56 = vpack.c.bf16 %v2648_v54, %v2648_v54 }
 0x194   : > { %2945 = vmatprep.subr.bf16.mxu1 %v4252_v60 }
 0x196   : > { %2905 = vmatpush1.bf16.msra.mxu0 %v4247_v61 }
 0x197   : > { %2946 = vmatpush1.bf16.msra.mxu1 %v4250_v62  ;;  %2906 = vmatprep.subr.bf16.mxu0 %v4255_v49 }
 0x198   : > { %2947 = vmatprep.subr.bf16.mxu1 %v4258_v52 }
 0x19a   : > { %2907 = vmatpush1.bf16.msra.mxu0 %v4253_v63 }
 0x19b   : > { %2948 = vmatpush1.bf16.msra.mxu1 %v4256_v0  ;;  %2908 = vmatprep.subr.bf16.mxu0 %v4261_v1 }
 0x19c   : > { %2949 = vmatprep.subr.bf16.mxu1 %v4264_v2 }
 0x19e   : > { %2909 = vmatpush1.bf16.msra.mxu0 %v4259_v3 }
 0x19f   : > { %2950 = vmatpush1.bf16.msra.mxu1 %v4262_v4  ;;  %2910 = vmatprep.subr.bf16.mxu0 %v4267_v5 }
 0x1a0   : > { %2951 = vmatprep.subr.bf16.mxu1 %v4270_v6 }
 0x1a2   : > { %2911 = vmatpush1.bf16.msra.mxu0 %v4265_v7 }
 0x1a3   : > { %2952 = vmatpush1.bf16.msra.mxu1 %v4268_v10  ;;  %2912 = vmatprep.subr.bf16.mxu0 %v4273_v11 }
 0x1a4   : > { %2953 = vmatprep.subr.bf16.mxu1 %v4276_v12 }
 0x1a6   : > { %2913 = vmatpush1.bf16.msra.mxu0 %v4271_v13  ;;  %v2982_v13 = vpack.c.bf16 %v4633_v44, %v4633_v44 }
 0x1a7   : > { %2954 = vmatpush1.bf16.msra.mxu1 %v4274_v14  ;;  %2914 = vmatprep.subr.bf16.mxu0 %v4279_v15 }
 0x1a8   : > { %2955 = vmatprep.subr.bf16.mxu1 %v4282_v16 }
 0x1aa   : > { %2915 = vmatpush2.bf16.msra.mxu0 %v4277_v17 }
 0x1ab   : > { %2956 = vmatpush2.bf16.msra.mxu1 %v4280_v18  ;;  %2916 = vmatprep.subr.bf16.mxu0 %v4285_v19 }
 0x1ac   : > { %2957 = vmatprep.subr.bf16.mxu1 %v4288_v20 }
 0x1ae   : > { %2917 = vmatpush2.bf16.msra.mxu0 %v4283_v21 }
 0x1af   : > { %2958 = vmatpush2.bf16.msra.mxu1 %v4286_v22  ;;  %2918 = vmatprep.subr.bf16.mxu0 %v4291_v23 }
 0x1b0   : > { %2959 = vmatprep.subr.bf16.mxu1 %v4294_v24 }
 0x1b2   : > { %2919 = vmatpush2.bf16.msra.mxu0 %v4289_v25 }
 0x1b3   : > { %2960 = vmatpush2.bf16.msra.mxu1 %v4292_v26  ;;  %2920 = vmatprep.subr.bf16.mxu0 %v4297_v27 }
 0x1b4   : > { %2961 = vmatprep.subr.bf16.mxu1 %v4300_v29 }
 0x1b6   : > { %2921 = vmatpush2.bf16.msra.mxu0 %v4295_v30 }
 0x1b7   : > { %2962 = vmatpush2.bf16.msra.mxu1 %v4298_v31  ;;  %2922 = vmatprep.subr.bf16.mxu0 %v4303_v32 }
 0x1b8   : > { %2963 = vmatprep.subr.bf16.mxu1 %v4306_v33 }
 0x1ba   : > { %2923 = vmatpush2.bf16.msra.mxu0 %v4301_v34 }
 0x1bb   : > { %2964 = vmatpush2.bf16.msra.mxu1 %v4304_v36  ;;  %2924 = vmatprep.subr.bf16.mxu0 %v4309_v37 }
 0x1bc   : > { %2965 = vmatprep.subr.bf16.mxu1 %v4312_v38 }
 0x1be   : > { %2925 = vmatpush2.bf16.msra.mxu0 %v4307_v39 }
 0x1bf   : > { %2966 = vmatpush2.bf16.msra.mxu1 %v4310_v40  ;;  %2926 = vmatprep.subr.bf16.mxu0 %v4315_v41 }
 0x1c0   : > { %2967 = vmatprep.subr.bf16.mxu1 %v4318_v42 }
 0x1c2   : > { %2927 = vmatpush2.bf16.msra.mxu0 %v4313_v43 }
 0x1c3   : > { %2968 = vmatpush2.bf16.msra.mxu1 %v4316_v45  ;;  %2928 = vmatprep.subr.bf16.mxu0 %v4321_v46 }
 0x1c4   : > { %2969 = vmatprep.subr.bf16.mxu1 %v4324_v50 }
 0x1c6   : > { %2929 = vmatpush2.bf16.msra.mxu0 %v4319_v51 }
 0x1c7   : > { %2970 = vmatpush2.bf16.msra.mxu1 %v4322_v53 }
 0x1c9   : > { %v2686_v57 = vpop.f32.mrf.mxu0  ;;  %2931 = vmatmul.mubr.bf16.vlgmr.msra.gmra.mxu0 %v4607_v8 }
 0x1ca   : > { %v2727_v58 = vpop.f32.mrf.mxu1  ;;  %2972 = vmatmul.mubr.bf16.vlgmr.msra.gmra.mxu1 %v4609_v9  ;;  %3024 = vmatprep.mubr.bf16.mxu0 %v2981_v55 }
 0x1cb   : > { %3064 = vmatprep.mubr.bf16.mxu1 %v2983_v56  ;;  %v2728_v59 = vadd.f32 %v2727_v58, %v2686_v57  ;;  %v2688_v60 = vpop.f32.mrf.mxu0 }
 0x1cc   : > { %v2729_v61 = vpop.f32.mrf.mxu1 }
 0x1cd   : > { %v2730_v62 = vadd.f32 %v2729_v61, %v2688_v60  ;;  %v2690_v49 = vpop.f32.mrf.mxu0  ;;  %v2984_v52 = vpack.c.bf16 %v2728_v59, %v2728_v59  ;;  %v4457_v61 = vmov 0  }
 0x1ce   : > { %v2731_v47 = vpop.f32.mrf.mxu1 }
 0x1cf   : > { %v2985_v48 = vpack.c.bf16 %v2730_v62, %v2730_v62  ;;  %v2691_v63 = vpop.f32.mrf.mxu0 }
 0x1d0   : > { %v2732_v0 = vpop.f32.mrf.mxu1 }
 0x1d1   : > { %3006 = vmatprep.subr.bf16.mxu0 %v2985_v48 }
 0x1d2   : > { %3007 = vmatpush1.bf16.xpose.msra.mxu0 %v2984_v52 }
 0x1d9   : > { %3025 = vmatmul.mubr.bf16.vlgmr.msra.gmra.mxu0 %v2980_v35 }
 0x1da   : > { %3134 = vmatprep.mubr.bf16.mxu0 %v4457_v61 }
 0x209   : > { %v2768_v8 = vpop.f32.mrf.mxu0 }
 0x20a   : > { %v2809_v9 = vpop.f32.mrf.mxu1 }
 0x20b   : > { %v2810_v1 = vadd.f32 %v2809_v9, %v2768_v8  ;;  %v2770_v2 = vpop.f32.mrf.mxu0 }
 0x20c   : > { %v2811_v3 = vpop.f32.mrf.mxu1 }
 0x20d   : > { %v2812_v4 = vadd.f32 %v2811_v3, %v2770_v2  ;;  %v2772_v5 = vpop.f32.mrf.mxu0  ;;  %v2986_v10 = vpack.c.bf16 %v2810_v1, %v2810_v1 }
 0x20e   : > { %v2813_v6 = vpop.f32.mrf.mxu1 }
 0x20f   : > { %v2987_v7 = vpack.c.bf16 %v2812_v4, %v2812_v4  ;;  %v2773_v11 = vpop.f32.mrf.mxu0 }
 0x210   : > { %v2814_v12 = vpop.f32.mrf.mxu1 }
 0x211   : > { %3046 = vmatprep.subr.bf16.mxu1 %v2987_v7 }
 0x212   : > { %3047 = vmatpush1.bf16.xpose.msra.mxu1 %v2986_v10 }
 0x219   : > { %3065 = vmatmul.mubr.bf16.vlgmr.msra.gmra.mxu1 %v2982_v13 }
 0x21a   : > { %3175 = vmatprep.mubr.bf16.mxu1 %v4457_v61 }
 0x249   : > { %v2850_v28 = vpop.f32.mrf.mxu0 }
 0x24a   : > { %v2891_v14 = vpop.f32.mrf.mxu1 }
 0x24b   : > { %v2892_v15 = vadd.f32 %v2891_v14, %v2850_v28  ;;  %v2852_v16 = vpop.f32.mrf.mxu0 }
 0x24c   : > { %v2893_v17 = vpop.f32.mrf.mxu1 }
 0x24d   : > { %v2988_v18 = vpack.c.bf16 %v2892_v15, %v2892_v15  ;;  %v2894_v19 = vadd.f32 %v2893_v17, %v2852_v16  ;;  %v2854_v20 = vpop.f32.mrf.mxu0 }
 0x24e   : > { %v2895_v21 = vpop.f32.mrf.mxu1 }
 0x24f   : > { %v3091_v22 = vsel %vm3089_vm0, %v2988_v18, 0  ;;  %v2989_v23 = vpack.c.bf16 %v2894_v19, %v2894_v19  ;;  %v2855_v24 = vpop.f32.mrf.mxu0 }
 0x250   : > { %v2896_v25 = vpop.f32.mrf.mxu1 }
 0x251   : > { %3678 = vmatprep.subr.msk.bf16.mxu0 %vm3089_vm0, %v2989_v23 }
 0x252   : > { %3117 = vmatpush1.bf16.msra.mxu0 %v3091_v22 }
 0x289   : > { %v2932_v44 = vpop.f32.mrf.mxu0 }
 0x28a   : > { %v2973_v26 = vpop.f32.mrf.mxu1 }
 0x28b   : > { %v2974_v27 = vadd.f32 %v2973_v26, %v2932_v44  ;;  %v2934_v29 = vpop.f32.mrf.mxu0 }
 0x28c   : > { %v2975_v30 = vpop.f32.mrf.mxu1 }
 0x28d   : > { %v2990_v31 = vpack.c.bf16 %v2974_v27, %v2974_v27  ;;  %v2976_v32 = vadd.f32 %v2975_v30, %v2934_v29  ;;  %v2936_v33 = vpop.f32.mrf.mxu0 }
 0x28e   : > { %v2977_v34 = vpop.f32.mrf.mxu1 }
 0x28f   : > { %v3097_v36 = vsel %vm3089_vm0, %v2990_v31, 0  ;;  %v2991_v37 = vpack.c.bf16 %v2976_v32, %v2976_v32  ;;  %v2937_v38 = vpop.f32.mrf.mxu0 }
 0x290   : > { %v2978_v39 = vpop.f32.mrf.mxu1 }
 0x291   : > { %3680 = vmatprep.subr.msk.bf16.mxu1 %vm3089_vm0, %v2991_v37 }
 0x292   : > { %3158 = vmatpush1.bf16.msra.mxu1 %v3097_v36 }
 0x299   : > { %v3026_v40 = vpop.f32.mrf.mxu0 }
 0x29b   : > { %v3028_v41 = vpop.f32.mrf.mxu0 }
 0x29d   : > { %v3029_v42 = vpop.f32.mrf.mxu0 }
 0x29f   : > { %v3030_v43 = vpop.f32.mrf.mxu0 }
 0x2d9   : > { %v3066_v45 = vpop.f32.mrf.mxu1 }
 0x2da   : > { %v3067_v46 = vadd.f32 %v3066_v45, %v3026_v40 }
 0x2db   : > { %v3068_v50 = vpop.f32.mrf.mxu1 }
 0x2dc   : > { %v3073_v51 = vsel %vm3072_vm1, %v3067_v46, -inf }
 0x2dd   : > { %v3069_v53 = vpop.f32.mrf.mxu1  ;;  %3074 = vmax.xlane.f32.xlu0 %v3073_v51 }
 0x2df   : > { %v3070_v54 = vpop.f32.mrf.mxu1 }
 0x366   : > { %v3075_v55 = vpop.xlane.xlu0 %3074 }
 0x367   : > { %v3076_v56 = vsub.f32 %v3067_v46, %v3075_v55 }
 0x369   : > { %v3077_v57 = vmul.f32 5.0, %v3076_v56 }
 0x36b   : > { %v3078_v58 = vmul.f32 1.442695, %v3077_v57 }
 0x36d   : > { %4325 = vpow2.f32 %v3078_v58 }
 0x37a   : > { %v4326_v59 = vpop.eup %4325 }
 0x37b   : > { %v3080_v60 = vsel %vm3072_vm1, %v4326_v59, 0.0 }
 0x37c   : > { %3081 = vadd.xlane.f32.xlu0 %v3080_v60 }
 0x405   : > { %v3082_v62 = vpop.xlane.xlu0 %3081 }
 0x406   : > { %4327 = vrcp.f32 %v3082_v62 }
 0x413   : > { %v4328_v49 = vpop.eup %4327 }
 0x414   : > { %v3084_v47 = vmul.f32 %v4328_v49, %v4326_v59 }
 0x416   : > { %v3085_v48 = vpack.c.bf16 %v3084_v47, %v3084_v47 }
 0x418   : > { %3679 = vmatmul.mubr.msk.bf16.vlgmr.msra.gmra.mxu0 %vm3072_vm1, %v3085_v48  ;;  %3681 = vmatmul.mubr.msk.bf16.vlgmr.msra.gmra.mxu1 %vm3072_vm1, %v3085_v48 }
 0x4d8   : > { %v3136_v52 = vpop.f32.mrf.mxu0  ;;  %v3177_v63 = vpop.f32.mrf.mxu1 }
 0x4d9   : > { %3184 = vst [vmem:[%s174_s15] sm:$0xff] %v3136_v52  ;;  %3186 = vst [vmem:[%s174_s15 + $0x10] sm:$0xff] %v3177_v63 }
 0x4da   : > { %v3138_v0 = vpop.f32.mrf.mxu0  ;;  %v3179_v35 = vpop.f32.mrf.mxu1 }
 0x4db   : > { %3185 = vst [vmem:[%s174_s15 + $0x8] sm:$0xff] %v3138_v0  ;;  %3187 = vst [vmem:[%s174_s15 + $0x18] sm:$0xff] %v3179_v35 }
 0x4dc   : > { %v3140_v8 = vpop.f32.mrf.mxu0  ;;  %v3181_v9 = vpop.f32.mrf.mxu1 }
 0x4dd   : > { %4396 = shalt.err (!%p4393_p0)
}
 0x4de   : > { %s4397_s27 = scalar_lea.hbm %s4667_s20, 512  ;;  %s4401_s4 = scalar_lea.hbm %s4710_s2, 1024 }
 0x4df   : > { %p4398_p5 = scmp.ne.s32.totalorder %s4667_s20, %s4397_s27  ;;  %p4402_p1 = scmp.lt.s32.totalorder %s4667_s20, %s4710_s2 }
 0x4e0   : > { %p4403_p4 = scmp.lt.s32.totalorder %s4401_s4, %s4397_s27 }
 0x4e1   : > { %p4399_p9 = pnand %p4398_p5, %p4726_p3 }
 0x4e2   : > { %p4404_p6 = por %p4403_p4, %p4402_p1 }
 0x4e3   : > { %p4400_p12 = pneg %p4399_p9 }
 0x4e5   : > { %p4405_p8 = pnand %p4404_p6, %p4400_p12 }
 0x4e7   : > { %4408 = shalt.err (!%p4405_p8)
}
 0x4e8   : > { %3695 = dma.vmem_to_hbm [thread:$0]  (%p4726_p3), %s4662_s17, 512, %s4667_s20, %s3189_s13   ;;  %v3141_v1 = vpop.f32.mrf.mxu0  ;;  %v3182_v2 = vpop.f32.mrf.mxu1 }
 0x4e9 PF: > { %s3215_s7 = sand.u32 1, %s4439_s9   ;;  %p4727_p11 = scmp.ne.s32.totalorder %s4716_s16, 0 }
 0x4ea   : > { %p4728_p7 = scmp.ge.s32.totalorder %s4451_s12, 2  ;;  %s3216_s14 = scalar_lea.sflag [#allocation4], %s3215_s7 }
 0x4ec   : > { %p3706_p10 = pnand %p4728_p7, %p4727_p11 }
 0x4ee   : > { %p3707_p2 = pneg %p3706_p10 }
 0x4f0   : > { %4434 = dma.done.wait (%p3707_p2), %s3216_s14, 512  }
 0x4f1   : > { %4436 = vsyncadd (%p3707_p2), %s3216_s14, 4294966784  ;;  %p16_p3 = scmp.ge.s32.totalorder %s4528_s21, 4   ;;  %s4729_s9 = smov %s4443_s10 }
 0x4f2   : > { %s4730_s10 = smov %s4447_s11  ;;  %s4731_s11 = smov %s4545_s29 }
 0x4f3   : > { %s4732_s12 = smov %s4528_s21  ;;  %18 = sbr.rel (!%p16_p3) target bundleno = 6 (0x6), region = 77 }
 0x4f8   :  { %3221 = vsyncpa [#allocation3], 1 }
 0x4f9   :  { %3223 = vsyncpa [#allocation3 + $0x1], 1 }
 0x4fa   :  { %3224 = vsyncpa [#allocation6], 1 }
 0x4fb   :  { %3225 = vsyncpa [#allocation4], 1 }
 0x4fc   :  { %3227 = vsyncpa [#allocation4 + $0x1], 1 }

// kernel: tpu_custom_call.1
= control target key start
LH: loop header
LB: loop body
LE: loop exit
PB: predicated region body
PF: predicated region fallthrough
CT: control target
= control target key end

     0   :  { %7 = vsyncpa [#allocation3], 0  ;;  %s4708_s0 = inlined_call_operand.hbm [shape: f32[2,8,512], index: 0, kind: input, shape index: {}]   ;;  %s4709_s1 = inlined_call_operand.hbm [shape: bf16[512,1536], index: 1, kind: input, shape index: {}]   ;;  %s4710_s2 = inlined_call_operand.hbm [shape: f32[2,8,512], index: 2, kind: output, shape index: {}]  }
   0x1   :  { %9 = vsyncpa [#allocation3 + $0x1], 0 }
   0x2   :  { %10 = vsyncpa [#allocation6], 0 }
   0x3   :  { %11 = vsyncpa [#allocation4], 0 }
   0x4   :  { %13 = vsyncpa [#allocation4 + $0x1], 0  ;;  %s4474_s9 = smov 0   ;;  %s4476_s10 = smov 0  }
   0x5   :  { %s4478_s11 = smov 0   ;;  %s4480_s12 = smov 0  }
   0x6 LB: > { %s4495_s13 = sadd.s32 4294967295, %s4451_s12   ;;  %s3283_s14 = sadd.s32 4294967294, %s4451_s12   ;;  %s4451_s12 = sphi %s4480_s12, %s4732_s12   ;;  %s4447_s11 = sphi %s4478_s11, %s4731_s11   ;;  %s4443_s10 = sphi %s4476_s10, %s4730_s10   ;;  %s4439_s9 = sphi %s4474_s9, %s4729_s9  }
   0x7   : > { %p39_p0 = scmp.ne.s32.totalorder %s4443_s10, %s4439_s9  ;;  %p4711_p1 = scmp.eq.s32.totalorder %s4495_s13, 0 }
   0x8   : > { %p90_p3 = scmp.eq.s32.totalorder %s3283_s14, 1  ;;  %p3284_p5 = scmp.ge.s32.totalorder %s4451_s12, 1 }
   0x9   : > { %p4504_p4 = por %p4711_p1, %p39_p0  ;;  %p97_p7 = scmp.lt.s32.totalorder %s4451_s12, 3 }
   0xa   : > { %p4509_p6 = por %p90_p3, %p39_p0  ;;  %s4453_s18 = smov [#allocation5]  }
   0xb   : > { %s4715_s15 = scalar_select %p4504_p4, 1, 0 }
   0xc   : > { %s4716_s16 = scalar_select %p4509_p6, 1, 0 }
   0xd   : > { %p4514_p8 = pnand %p3284_p5, %p97_p7  ;;  %s109_s19 = sshll.u32 %s4453_s18, 4  ;;  %s110_s19 = int_to_ptr.vmem [resolvable:$true] %s109_s19 }
   0xe   : > { %s4528_s21 = sadd.s32 1, %s4451_s12   ;;  %s26_s22 = sadd.s32 1, %s4447_s11 }
   0xf   : > { %s4717_s17 = scalar_select %p4514_p8, 1, 0 }
  0x10   : > { %p3697_p9 = pneg %p4514_p8  ;;  %s23_s23 = ssub.s32 %s4451_s12, %s4528_s21 }
  0x11   : > { %s4340_s24 = scalar_lea.vmem %s110_s19, 49152  ;;  %p4348_p5 = scmp.lt.s32.totalorder %s110_s19, %s110_s19 }
  0x12   : > { %p4523_p11 = pnand %p3697_p9, %p4711_p1  ;;  %p4341_p13 = scmp.ne.s32.totalorder %s110_s19, %s4340_s24 }
  0x13   : > { %p4349_p7 = scmp.lt.s32.totalorder %s4340_s24, %s4340_s24 }
  0x14   : > { %p4331_p12 = pneg %p4523_p11 }
  0x15   : > { %p4350_p10 = por %p4349_p7, %p4348_p5 }
  0x16   : > { %p4343_p0 = pnand %p4341_p13, %p4331_p12 }
  0x18   : > { %p4344_p3 = pneg %p4343_p0 }
  0x1a   : > { %p4351_p2 = pnand %p4350_p10, %p4344_p3 }
  0x1c   : > { %4354 = shalt.err (!%p4351_p2)
}
  0x1d   : > { %s4454_s25 = smov 768   ;;  %s4455_s26 = smov 48  }
  0x1e   : > { %3700 = dma.hbm_to_vmem [thread:$0]  (!%p4523_p11), %s4709_s1, 49152, %s110_s19, [#allocation6], %s4454_s25, %s4454_s25, %s4455_s26  }
  0x1f   : > { %p24_p9 = scmp.eq.s32.totalorder %s23_s23, 0  ;;  %p33_p12 = scmp.ne.s32.totalorder %s4447_s11, %s4443_s10 }
  0x20   : > { %p34_p10 = scmp.eq.s32.totalorder %s4451_s12, 0  ;;  %p3710_p2 = scmp.lt.s32.totalorder %s4451_s12, 2 }
  0x21   : > { %s4545_s29 = scalar_select %p24_p9, %s4447_s11, %s26_s22  }
  0x22   : > { %p35_p13 = por %p34_p10, %p33_p12  ;;  %p4719_p0 = scmp.eq.s32.totalorder %s4495_s13, 1 }
  0x23   : > { %s123_s3 = sand.u32 1, %s4447_s11   ;;  %s3687_s4 = sshll.u32 %s4451_s12, 9 }
  0x24   : > { %p4549_p3 = por %p4719_p0, %p33_p12  ;;  %s3287_s5 = sshll.u32 %s123_s3, 5 }
  0x25   : > { %s4558_s8 = scalar_lea.hbm %s4708_s0, %s3687_s4  ;;  %s127_s14 = scalar_lea.vmem [#allocation2], %s3287_s5 }
  0x26   : > { %s4720_s30 = scalar_select %p4549_p3, 1, 0 }
  0x27   : > { %s135_s18 = sshll.u32 %s127_s14, 4  ;;  %p4560_p11 = pnand %p3710_p2, %p35_p13  ;;  %s136_s18 = int_to_ptr.vmem [resolvable:$true] %s135_s18 }
  0x28   : > { %s124_s20 = scalar_lea.sflag [#allocation3], %s123_s3  ;;  %s4355_s22 = scalar_lea.hbm %s4558_s8, 512 }
  0x29   : > { %p4356_p5 = scmp.ne.s32.totalorder %s4558_s8, %s4355_s22  ;;  %p4357_p7 = pneg %p4560_p11 }
  0x2a   : > { %s4360_s25 = scalar_lea.hbm %s4708_s0, 1024  ;;  %p4361_p10 = scmp.lt.s32.totalorder %s4558_s8, %s4708_s0 }
  0x2b   : > { %p4358_p9 = pnand %p4357_p7, %p4356_p5  ;;  %p4362_p2 = scmp.lt.s32.totalorder %s4360_s25, %s4355_s22 }
  0x2d   : > { %p4359_p12 = pneg %p4358_p9  ;;  %p4363_p13 = por %p4362_p2, %p4361_p10 }
  0x2f   : > { %p4364_p0 = pnand %p4363_p13, %p4359_p12 }
  0x31   : > { %4367 = shalt.err (!%p4364_p0)
}
  0x32   : > { %s4368_s28 = scalar_lea.vmem %s136_s18, 512  ;;  %s4456_s3 = smov [#allocation2]  }
  0x33   : > { %p4369_p1 = scmp.ne.s32.totalorder %s136_s18, %s4368_s28  ;;  %s4373_s4 = sshll.u32 %s4456_s3, 4  ;;  %s4374_s4 = int_to_ptr.vmem [resolvable:$false] %s4373_s4 }
  0x34   : > { %s4375_s5 = scalar_lea.vmem %s4374_s4, 1024  ;;  %p4376_p5 = scmp.lt.s32.totalorder %s136_s18, %s4374_s4 }
  0x35   : > { %p4371_p6 = pnand %p4369_p1, %p4357_p7  ;;  %p4377_p9 = scmp.lt.s32.totalorder %s4375_s5, %s4368_s28 }
  0x37   : > { %p4372_p3 = pneg %p4371_p6  ;;  %p4378_p4 = por %p4377_p9, %p4376_p5 }
  0x39   : > { %p4379_p8 = pnand %p4378_p4, %p4372_p3 }
  0x3b   : > { %4382 = shalt.err (!%p4379_p8)
}
  0x3c   : > { %3704 = dma.hbm_to_vmem [thread:$0]  (!%p4560_p11), %s4558_s8, 512, %s136_s18, %s124_s20  }
  0x3d   : > { %p4722_p12 = scmp.ne.s32.totalorder %s4717_s17, 0 }
  0x3e   : > { %s4581_s6 = sand.u32 (!%p4722_p12), 1, %s4443_s10   ;;  %p4723_p1 = scmp.ne.s32.totalorder (!%p4722_p12), %s4715_s15, 0 }
  0x3f   : > { %144 = sbr.rel (%p4722_p12) target bundleno = 1257 (0x4e9), region = 28  ;;  %s3291_s7 = sshll.u32 (!%p4722_p12), %s4581_s6, 5 }
  0x40   : > { %s147_s14 = scalar_lea.sflag (!%p4722_p12), [#allocation3], %s4581_s6  ;;  %s4587_s22 = scalar_lea.vmem (!%p4722_p12), [#allocation2], %s3291_s7 }
  0x44   : > { %4426 = dma.done.wait (%p4723_p1), %s147_s14, 512  }
  0x45   : > { %4428 = vsyncadd (%p4723_p1), %s147_s14, 4294966784  ;;  %p4724_p4 = scmp.eq.s32.totalorder %s4495_s13, 0 }
  0x47   : > { %4430 = dma.done.wait (%p4724_p4), [#allocation6], 49152   ;;  %p4725_p6 = pmov %p4724_p4 }
  0x48   : > { %v3749_v0 = vld [vmem:[#allocation5 + $0x2a4] ss:$48 sps:$4 sm:$0xff]   ;;  %v3753_v2 = vld [vmem:[#allocation5 + $0x2a0] ss:$48 sps:$4 sm:$0xff]   ;;  %v177_v46 = vld [vmem:[%s4587_s22 + $0x8] sm:$0xff]  ;;  %vm3089_vm0 = vcmask 1043456  }
  0x49   : > { %4432 = vsyncadd (%p4725_p6), [#allocation6], 4294918144  ;;  %v3751_v1 = vld [vmem:[#allocation5 + $0x8a4] ss:$48 sps:$4 sm:$0xff]   ;;  %2488 = vmatprep.subr.bf16.mxu0 %v3749_v0  ;;  %v3754_v3 = vld [vmem:[#allocation5 + $0x8a0] ss:$48 sps:$4 sm:$0xff]   ;;  %v4598_v49 = vpack.c.bf16 %v177_v46, %v177_v46 }
  0x4a   : > { %2529 = vmatprep.subr.bf16.mxu1 %v3751_v1  ;;  %v3755_v4 = vld [vmem:[#allocation5 + $0x244] ss:$48 sps:$4 sm:$0xff]   ;;  %2489 = vmatpush1.bf16.msra.mxu0 %v3753_v2  ;;  %v3759_v6 = vld [vmem:[#allocation5 + $0x240] ss:$48 sps:$4 sm:$0xff]   ;;  %v179_v50 = vld [vmem:[%s4587_s22 + $0x18] sm:$0xff]  ;;  %vm3072_vm1 = vcmask 64512  }
  0x4b   : > { %2530 = vmatpush1.bf16.msra.mxu1 %v3754_v3  ;;  %v3757_v5 = vld [vmem:[#allocation5 + $0x844] ss:$48 sps:$4 sm:$0xff]   ;;  %2490 = vmatprep.subr.bf16.mxu0 %v3755_v4  ;;  %v3760_v7 = vld [vmem:[#allocation5 + $0x840] ss:$48 sps:$4 sm:$0xff]   ;;  %v4601_v52 = vpack.c.bf16 %v179_v50, %v179_v50  ;;  %v3899_v46 = vld [vmem:[#allocation5 + $0x548] ss:$48 sps:$4 sm:$0xff]  }
  0x4c   : > { %2531 = vmatprep.subr.bf16.mxu1 %v3757_v5  ;;  %v3761_v8 = vld [vmem:[#allocation5 + $0x1e4] ss:$48 sps:$4 sm:$0xff]   ;;  %v3765_v10 = vld [vmem:[#allocation5 + $0x1e0] ss:$48 sps:$4 sm:$0xff]   ;;  %2520 = vmatprep.mubr.bf16.mxu0 %v4598_v49  ;;  %v3910_v50 = vld [vmem:[#allocation5 + $0xaec] ss:$48 sps:$4 sm:$0xff]  }
  0x4d   : > { %v3763_v9 = vld [vmem:[#allocation5 + $0x7e4] ss:$48 sps:$4 sm:$0xff]   ;;  %v3766_v11 = vld [vmem:[#allocation5 + $0x7e0] ss:$48 sps:$4 sm:$0xff]   ;;  %2561 = vmatprep.mubr.bf16.mxu1 %v4601_v52  ;;  %s174_s15 = scalar_lea.vmem [#allocation7], %s3291_s7  ;;  %s3688_s8 = sshll.u32 %s4495_s13, 9 }
  0x4e   : > { %2491 = vmatpush1.bf16.msra.mxu0 %v3759_v6  ;;  %v3767_v12 = vld [vmem:[#allocation5 + $0x184] ss:$48 sps:$4 sm:$0xff]   ;;  %v3771_v14 = vld [vmem:[#allocation5 + $0x180] ss:$48 sps:$4 sm:$0xff]   ;;  %v3847_v6 = vld [vmem:[#allocation5 + $0x2ac] ss:$48 sps:$4 sm:$0xff]   ;;  %s4667_s20 = scalar_lea.hbm %s4710_s2, %s3688_s8 }
  0x4f   : > { %2532 = vmatpush1.bf16.msra.mxu1 %v3760_v7  ;;  %2492 = vmatprep.subr.bf16.mxu0 %v3761_v8  ;;  %v3769_v13 = vld [vmem:[#allocation5 + $0x784] ss:$48 sps:$4 sm:$0xff]   ;;  %v3772_v15 = vld [vmem:[#allocation5 + $0x780] ss:$48 sps:$4 sm:$0xff]   ;;  %v3850_v7 = vld [vmem:[#allocation5 + $0x8ac] ss:$48 sps:$4 sm:$0xff]  }
  0x50   : > { %2533 = vmatprep.subr.bf16.mxu1 %v3763_v9  ;;  %v3773_v16 = vld [vmem:[#allocation5 + $0x124] ss:$48 sps:$4 sm:$0xff]   ;;  %v3777_v18 = vld [vmem:[#allocation5 + $0x120] ss:$48 sps:$4 sm:$0xff]   ;;  %s3203_s17 = sshll.u32 %s174_s15, 4  ;;  %s3189_s13 = scalar_lea.sflag [#allocation4], %s4581_s6  ;;  %s4662_s17 = int_to_ptr.vmem [resolvable:$true] %s3203_s17 }
  0x51   : > { %v3775_v17 = vld [vmem:[#allocation5 + $0x724] ss:$48 sps:$4 sm:$0xff]   ;;  %v3778_v19 = vld [vmem:[#allocation5 + $0x720] ss:$48 sps:$4 sm:$0xff]   ;;  %s4383_s23 = scalar_lea.vmem %s4662_s17, 512  ;;  %p4726_p3 = scmp.ne.s32.totalorder %s4720_s30, 0 }
  0x52   : > { %2493 = vmatpush1.bf16.msra.mxu0 %v3765_v10  ;;  %v3779_v20 = vld [vmem:[#allocation5 + $0xc4] ss:$48 sps:$4 sm:$0xff]   ;;  %v3783_v22 = vld [vmem:[#allocation5 + $0xc0] ss:$48 sps:$4 sm:$0xff]   ;;  %v3845_v10 = vld [vmem:[#allocation5 + $0x2a8] ss:$48 sps:$4 sm:$0xff]   ;;  %p4384_p8 = scmp.ne.s32.totalorder %s4662_s17, %s4383_s23 }
  0x53   : > { %2534 = vmatpush1.bf16.msra.mxu1 %v3766_v11  ;;  %2494 = vmatprep.subr.bf16.mxu0 %v3767_v12  ;;  %v3781_v21 = vld [vmem:[#allocation5 + $0x6c4] ss:$48 sps:$4 sm:$0xff]   ;;  %v3784_v23 = vld [vmem:[#allocation5 + $0x6c0] ss:$48 sps:$4 sm:$0xff]   ;;  %v3848_v11 = vld [vmem:[#allocation5 + $0x8a8] ss:$48 sps:$4 sm:$0xff]  }
  0x54   : > { %2535 = vmatprep.subr.bf16.mxu1 %v3769_v13  ;;  %v3785_v24 = vld [vmem:[#allocation5 + $0x64] ss:$48 sps:$4 sm:$0xff]   ;;  %v3789_v26 = vld [vmem:[#allocation5 + $0x60] ss:$48 sps:$4 sm:$0xff]   ;;  %v3853_v12 = vld [vmem:[#allocation5 + $0x24c] ss:$48 sps:$4 sm:$0xff]   ;;  %p4385_p11 = pnand %p4384_p8, %p4726_p3 }
  0x55   : > { %v3787_v25 = vld [vmem:[#allocation5 + $0x664] ss:$48 sps:$4 sm:$0xff]   ;;  %v3790_v27 = vld [vmem:[#allocation5 + $0x660] ss:$48 sps:$4 sm:$0xff]   ;;  %v3856_v13 = vld [vmem:[#allocation5 + $0x84c] ss:$48 sps:$4 sm:$0xff]  }
  0x56   : > { %2495 = vmatpush1.bf16.msra.mxu0 %v3771_v14  ;;  %v3791_v28 = vld [vmem:[#allocation5 + $0x4] ss:$48 sps:$4 sm:$0xff]   ;;  %v3795_v30 = vld [vmem:[#allocation5] ss:$48 sps:$4 sm:$0xff]   ;;  %v3851_v14 = vld [vmem:[#allocation5 + $0x248] ss:$48 sps:$4 sm:$0xff]   ;;  %p4386_p7 = pneg %p4385_p11 }
  0x57   : > { %2536 = vmatpush1.bf16.msra.mxu1 %v3772_v15  ;;  %2496 = vmatprep.subr.bf16.mxu0 %v3773_v16  ;;  %v3793_v29 = vld [vmem:[#allocation5 + $0x604] ss:$48 sps:$4 sm:$0xff]   ;;  %v3796_v31 = vld [vmem:[#allocation5 + $0x600] ss:$48 sps:$4 sm:$0xff]   ;;  %v3854_v15 = vld [vmem:[#allocation5 + $0x848] ss:$48 sps:$4 sm:$0xff]  }
  0x58   : > { %2537 = vmatprep.subr.bf16.mxu1 %v3775_v17  ;;  %v3797_v32 = vld [vmem:[#allocation5 + $0x5a4] ss:$48 sps:$4 sm:$0xff]   ;;  %v3801_v34 = vld [vmem:[#allocation5 + $0x5a0] ss:$48 sps:$4 sm:$0xff]   ;;  %v3859_v16 = vld [vmem:[#allocation5 + $0x1ec] ss:$48 sps:$4 sm:$0xff]  }
  0x59   : > { %v3799_v33 = vld [vmem:[#allocation5 + $0xba4] ss:$48 sps:$4 sm:$0xff]   ;;  %v3802_v35 = vld [vmem:[#allocation5 + $0xba0] ss:$48 sps:$4 sm:$0xff]   ;;  %v3862_v17 = vld [vmem:[#allocation5 + $0x7ec] ss:$48 sps:$4 sm:$0xff]  }
  0x5a   : > { %2497 = vmatpush1.bf16.msra.mxu0 %v3777_v18  ;;  %v3803_v36 = vld [vmem:[#allocation5 + $0x544] ss:$48 sps:$4 sm:$0xff]   ;;  %v3807_v38 = vld [vmem:[#allocation5 + $0x540] ss:$48 sps:$4 sm:$0xff]   ;;  %v3857_v18 = vld [vmem:[#allocation5 + $0x1e8] ss:$48 sps:$4 sm:$0xff]  }
  0x5b   : > { %2538 = vmatpush1.bf16.msra.mxu1 %v3778_v19  ;;  %2498 = vmatprep.subr.bf16.mxu0 %v3779_v20  ;;  %v3805_v37 = vld [vmem:[#allocation5 + $0xb44] ss:$48 sps:$4 sm:$0xff]   ;;  %v3808_v39 = vld [vmem:[#allocation5 + $0xb40] ss:$48 sps:$4 sm:$0xff]   ;;  %v3860_v19 = vld [vmem:[#allocation5 + $0x7e8] ss:$48 sps:$4 sm:$0xff]  }
  0x5c   : > { %2539 = vmatprep.subr.bf16.mxu1 %v3781_v21  ;;  %v3809_v40 = vld [vmem:[#allocation5 + $0x4e4] ss:$48 sps:$4 sm:$0xff]   ;;  %v3813_v42 = vld [vmem:[#allocation5 + $0x4e0] ss:$48 sps:$4 sm:$0xff]   ;;  %v3865_v20 = vld [vmem:[#allocation5 + $0x18c] ss:$48 sps:$4 sm:$0xff]  }
  0x5d   : > { %v3811_v41 = vld [vmem:[#allocation5 + $0xae4] ss:$48 sps:$4 sm:$0xff]   ;;  %v3814_v43 = vld [vmem:[#allocation5 + $0xae0] ss:$48 sps:$4 sm:$0xff]   ;;  %v3868_v21 = vld [vmem:[#allocation5 + $0x78c] ss:$48 sps:$4 sm:$0xff]  }
  0x5e   : > { %2499 = vmatpush1.bf16.msra.mxu0 %v3783_v22  ;;  %v3815_v44 = vld [vmem:[#allocation5 + $0x484] ss:$48 sps:$4 sm:$0xff]   ;;  %v3819_v47 = vld [vmem:[#allocation5 + $0x480] ss:$48 sps:$4 sm:$0xff]   ;;  %v3863_v22 = vld [vmem:[#allocation5 + $0x188] ss:$48 sps:$4 sm:$0xff]  }
  0x5f   : > { %2540 = vmatpush1.bf16.msra.mxu1 %v3784_v23  ;;  %2500 = vmatprep.subr.bf16.mxu0 %v3785_v24  ;;  %v3817_v45 = vld [vmem:[#allocation5 + $0xa84] ss:$48 sps:$4 sm:$0xff]   ;;  %v3820_v48 = vld [vmem:[#allocation5 + $0xa80] ss:$48 sps:$4 sm:$0xff]   ;;  %v3866_v23 = vld [vmem:[#allocation5 + $0x788] ss:$48 sps:$4 sm:$0xff]  }
  0x60   : > { %2541 = vmatprep.subr.bf16.mxu1 %v3787_v25  ;;  %v3821_v51 = vld [vmem:[#allocation5 + $0x424] ss:$48 sps:$4 sm:$0xff]   ;;  %v3825_v54 = vld [vmem:[#allocation5 + $0x420] ss:$48 sps:$4 sm:$0xff]   ;;  %v3871_v24 = vld [vmem:[#allocation5 + $0x12c] ss:$48 sps:$4 sm:$0xff]  }
  0x61   : > { %v3823_v53 = vld [vmem:[#allocation5 + $0xa24] ss:$48 sps:$4 sm:$0xff]   ;;  %v3826_v55 = vld [vmem:[#allocation5 + $0xa20] ss:$48 sps:$4 sm:$0xff]   ;;  %v3874_v25 = vld [vmem:[#allocation5 + $0x72c] ss:$48 sps:$4 sm:$0xff]  }
  0x62   : > { %2501 = vmatpush1.bf16.msra.mxu0 %v3789_v26  ;;  %v3827_v56 = vld [vmem:[#allocation5 + $0x3c4] ss:$48 sps:$4 sm:$0xff]   ;;  %v3831_v58 = vld [vmem:[#allocation5 + $0x3c0] ss:$48 sps:$4 sm:$0xff]   ;;  %v3869_v26 = vld [vmem:[#allocation5 + $0x128] ss:$48 sps:$4 sm:$0xff]  }
  0x63   : > { %2542 = vmatpush1.bf16.msra.mxu1 %v3790_v27  ;;  %2502 = vmatprep.subr.bf16.mxu0 %v3791_v28  ;;  %v3829_v57 = vld [vmem:[#allocation5 + $0x9c4] ss:$48 sps:$4 sm:$0xff]   ;;  %v3832_v59 = vld [vmem:[#allocation5 + $0x9c0] ss:$48 sps:$4 sm:$0xff]   ;;  %v3872_v27 = vld [vmem:[#allocation5 + $0x728] ss:$48 sps:$4 sm:$0xff]  }
  0x64   : > { %2543 = vmatprep.subr.bf16.mxu1 %v3793_v29  ;;  %v3833_v60 = vld [vmem:[#allocation5 + $0x364] ss:$48 sps:$4 sm:$0xff]   ;;  %v3837_v62 = vld [vmem:[#allocation5 + $0x360] ss:$48 sps:$4 sm:$0xff]   ;;  %v3877_v28 = vld [vmem:[#allocation5 + $0xcc] ss:$48 sps:$4 sm:$0xff]  }
  0x65   : > { %v3835_v61 = vld [vmem:[#allocation5 + $0x964] ss:$48 sps:$4 sm:$0xff]   ;;  %v3838_v63 = vld [vmem:[#allocation5 + $0x960] ss:$48 sps:$4 sm:$0xff]   ;;  %v3880_v29 = vld [vmem:[#allocation5 + $0x6cc] ss:$48 sps:$4 sm:$0xff]  }
  0x66   : > { %2503 = vmatpush1.bf16.msra.mxu0 %v3795_v30  ;;  %v3839_v0 = vld [vmem:[#allocation5 + $0x304] ss:$48 sps:$4 sm:$0xff]   ;;  %v3843_v2 = vld [vmem:[#allocation5 + $0x300] ss:$48 sps:$4 sm:$0xff]   ;;  %v3875_v30 = vld [vmem:[#allocation5 + $0xc8] ss:$48 sps:$4 sm:$0xff]  }
  0x67   : > { %2544 = vmatpush1.bf16.msra.mxu1 %v3796_v31  ;;  %2504 = vmatprep.subr.bf16.mxu0 %v3797_v32  ;;  %v3841_v1 = vld [vmem:[#allocation5 + $0x904] ss:$48 sps:$4 sm:$0xff]   ;;  %v3844_v3 = vld [vmem:[#allocation5 + $0x900] ss:$48 sps:$4 sm:$0xff]   ;;  %v3878_v31 = vld [vmem:[#allocation5 + $0x6c8] ss:$48 sps:$4 sm:$0xff]  }
  0x68   : > { %2545 = vmatprep.subr.bf16.mxu1 %v3799_v33  ;;  %v176_v4 = vld [vmem:[%s4587_s22] sm:$0xff]  ;;  %v178_v5 = vld [vmem:[%s4587_s22 + $0x10] sm:$0xff]  ;;  %v3883_v32 = vld [vmem:[#allocation5 + $0x6c] ss:$48 sps:$4 sm:$0xff]   ;;  %s4458_s24 = smov [#allocation7]  }
  0x69   : > { %v4607_v8 = vpack.c.bf16 %v176_v4, %v176_v4  ;;  %v4609_v9 = vpack.c.bf16 %v178_v5, %v178_v5  ;;  %v3886_v33 = vld [vmem:[#allocation5 + $0x66c] ss:$48 sps:$4 sm:$0xff]   ;;  %v3929_v4 = vld [vmem:[#allocation5 + $0x368] ss:$48 sps:$4 sm:$0xff]   ;;  %s4387_s25 = sshll.u32 %s4458_s24, 4  ;;  %s4388_s25 = int_to_ptr.vmem [resolvable:$false] %s4387_s25 }
  0x6a   : > { %2505 = vmatpush2.bf16.msra.mxu0 %v3801_v34  ;;  %v3881_v34 = vld [vmem:[#allocation5 + $0x68] ss:$48 sps:$4 sm:$0xff]   ;;  %s4389_s26 = scalar_lea.vmem %s4388_s25, 1024  ;;  %p4390_p10 = scmp.lt.s32.totalorder %s4662_s17, %s4388_s25 }
  0x6b   : > { %2546 = vmatpush2.bf16.msra.mxu1 %v3802_v35  ;;  %2506 = vmatprep.subr.bf16.mxu0 %v3803_v36  ;;  %v3884_v35 = vld [vmem:[#allocation5 + $0x668] ss:$48 sps:$4 sm:$0xff]   ;;  %v3889_v36 = vld [vmem:[#allocation5 + $0xc] ss:$48 sps:$4 sm:$0xff]   ;;  %p4391_p2 = scmp.lt.s32.totalorder %s4389_s26, %s4383_s23 }
  0x6c   : > { %2547 = vmatprep.subr.bf16.mxu1 %v3805_v37  ;;  %v3892_v37 = vld [vmem:[#allocation5 + $0x60c] ss:$48 sps:$4 sm:$0xff]   ;;  %v3932_v5 = vld [vmem:[#allocation5 + $0x968] ss:$48 sps:$4 sm:$0xff]  }
  0x6d   : > { %p4392_p13 = por %p4391_p2, %p4390_p10 }
  0x6e   : > { %2507 = vmatpush2.bf16.msra.mxu0 %v3807_v38  ;;  %v3887_v38 = vld [vmem:[#allocation5 + $0x8] ss:$48 sps:$4 sm:$0xff]  }
  0x6f   : > { %2548 = vmatpush2.bf16.msra.mxu1 %v3808_v39  ;;  %2508 = vmatprep.subr.bf16.mxu0 %v3809_v40  ;;  %v3890_v39 = vld [vmem:[#allocation5 + $0x608] ss:$48 sps:$4 sm:$0xff]   ;;  %v3895_v40 = vld [vmem:[#allocation5 + $0x5ac] ss:$48 sps:$4 sm:$0xff]   ;;  %p4393_p0 = pnand %p4392_p13, %p4386_p7 }
  0x70   : > { %2549 = vmatprep.subr.bf16.mxu1 %v3811_v41  ;;  %v3898_v41 = vld [vmem:[#allocation5 + $0xbac] ss:$48 sps:$4 sm:$0xff]  }
  0x72   : > { %2509 = vmatpush2.bf16.msra.mxu0 %v3813_v42  ;;  %v3893_v42 = vld [vmem:[#allocation5 + $0x5a8] ss:$48 sps:$4 sm:$0xff]  }
  0x73   : > { %2550 = vmatpush2.bf16.msra.mxu1 %v3814_v43  ;;  %2510 = vmatprep.subr.bf16.mxu0 %v3815_v44  ;;  %v3896_v43 = vld [vmem:[#allocation5 + $0xba8] ss:$48 sps:$4 sm:$0xff]   ;;  %v3901_v44 = vld [vmem:[#allocation5 + $0x54c] ss:$48 sps:$4 sm:$0xff]  }
  0x74   : > { %2551 = vmatprep.subr.bf16.mxu1 %v3817_v45  ;;  %v3904_v45 = vld [vmem:[#allocation5 + $0xb4c] ss:$48 sps:$4 sm:$0xff]  }
  0x76   : > { %2511 = vmatpush2.bf16.msra.mxu0 %v3819_v47  ;;  %v3902_v47 = vld [vmem:[#allocation5 + $0xb48] ss:$48 sps:$4 sm:$0xff]  }
  0x77   : > { %2552 = vmatpush2.bf16.msra.mxu1 %v3820_v48  ;;  %2512 = vmatprep.subr.bf16.mxu0 %v3821_v51  ;;  %v3907_v48 = vld [vmem:[#allocation5 + $0x4ec] ss:$48 sps:$4 sm:$0xff]   ;;  %v3905_v51 = vld [vmem:[#allocation5 + $0x4e8] ss:$48 sps:$4 sm:$0xff]  }
  0x78   : > { %2553 = vmatprep.subr.bf16.mxu1 %v3823_v53  ;;  %v3908_v53 = vld [vmem:[#allocation5 + $0xae8] ss:$48 sps:$4 sm:$0xff]  }
  0x7a   : > { %2513 = vmatpush2.bf16.msra.mxu0 %v3825_v54  ;;  %v3913_v54 = vld [vmem:[#allocation5 + $0x48c] ss:$48 sps:$4 sm:$0xff]  }
  0x7b   : > { %2554 = vmatpush2.bf16.msra.mxu1 %v3826_v55  ;;  %2514 = vmatprep.subr.bf16.mxu0 %v3827_v56  ;;  %v3916_v55 = vld [vmem:[#allocation5 + $0xa8c] ss:$48 sps:$4 sm:$0xff]   ;;  %v3911_v56 = vld [vmem:[#allocation5 + $0x488] ss:$48 sps:$4 sm:$0xff]  }
  0x7c   : > { %2555 = vmatprep.subr.bf16.mxu1 %v3829_v57  ;;  %v3914_v57 = vld [vmem:[#allocation5 + $0xa88] ss:$48 sps:$4 sm:$0xff]  }
  0x7e   : > { %2515 = vmatpush2.bf16.msra.mxu0 %v3831_v58  ;;  %v3919_v58 = vld [vmem:[#allocation5 + $0x42c] ss:$48 sps:$4 sm:$0xff]  }
  0x7f   : > { %2556 = vmatpush2.bf16.msra.mxu1 %v3832_v59  ;;  %2516 = vmatprep.subr.bf16.mxu0 %v3833_v60  ;;  %v3922_v59 = vld [vmem:[#allocation5 + $0xa2c] ss:$48 sps:$4 sm:$0xff]   ;;  %v3917_v60 = vld [vmem:[#allocation5 + $0x428] ss:$48 sps:$4 sm:$0xff]  }
  0x80   : > { %2557 = vmatprep.subr.bf16.mxu1 %v3835_v61  ;;  %v3920_v61 = vld [vmem:[#allocation5 + $0xa28] ss:$48 sps:$4 sm:$0xff]  }
  0x82   : > { %2517 = vmatpush2.bf16.msra.mxu0 %v3837_v62  ;;  %v3925_v62 = vld [vmem:[#allocation5 + $0x3cc] ss:$48 sps:$4 sm:$0xff]  }
  0x83   : > { %2558 = vmatpush2.bf16.msra.mxu1 %v3838_v63  ;;  %2518 = vmatprep.subr.bf16.mxu0 %v3839_v0  ;;  %v3928_v63 = vld [vmem:[#allocation5 + $0x9cc] ss:$48 sps:$4 sm:$0xff]   ;;  %v3923_v0 = vld [vmem:[#allocation5 + $0x3c8] ss:$48 sps:$4 sm:$0xff]  }
  0x84   : > { %2559 = vmatprep.subr.bf16.mxu1 %v3841_v1  ;;  %v3926_v1 = vld [vmem:[#allocation5 + $0x9c8] ss:$48 sps:$4 sm:$0xff]  }
  0x86   : > { %2519 = vmatpush2.bf16.msra.mxu0 %v3843_v2  ;;  %v3931_v2 = vld [vmem:[#allocation5 + $0x36c] ss:$48 sps:$4 sm:$0xff]  }
  0x87   : > { %2560 = vmatpush2.bf16.msra.mxu1 %v3844_v3  ;;  %2570 = vmatprep.subr.bf16.mxu0 %v3847_v6  ;;  %v3934_v3 = vld [vmem:[#allocation5 + $0x96c] ss:$48 sps:$4 sm:$0xff]  }
  0x88   : > { %2611 = vmatprep.subr.bf16.mxu1 %v3850_v7  ;;  %v3937_v6 = vld [vmem:[#allocation5 + $0x30c] ss:$48 sps:$4 sm:$0xff]  }
  0x89   : > { %2521 = vmatmul.mubr.bf16.vlgmr.msra.gmra.mxu0 %v4607_v8  ;;  %v3940_v7 = vld [vmem:[#allocation5 + $0x90c] ss:$48 sps:$4 sm:$0xff]  }
  0x8a   : > { %2562 = vmatmul.mubr.bf16.vlgmr.msra.gmra.mxu1 %v4609_v9  ;;  %2571 = vmatpush1.bf16.msra.mxu0 %v3845_v10  ;;  %v3935_v10 = vld [vmem:[#allocation5 + $0x308] ss:$48 sps:$4 sm:$0xff]  }
  0x8b   : > { %2612 = vmatpush1.bf16.msra.mxu1 %v3848_v11  ;;  %2572 = vmatprep.subr.bf16.mxu0 %v3853_v12  ;;  %v3938_v11 = vld [vmem:[#allocation5 + $0x908] ss:$48 sps:$4 sm:$0xff]   ;;  %v3943_v12 = vld [vmem:[#allocation5 + $0x2b4] ss:$48 sps:$4 sm:$0xff]  }
  0x8c   : > { %2613 = vmatprep.subr.bf16.mxu1 %v3856_v13  ;;  %2602 = vmatprep.mubr.bf16.mxu0 %v4598_v49  ;;  %v3946_v13 = vld [vmem:[#allocation5 + $0x8b4] ss:$48 sps:$4 sm:$0xff]  }
  0x8d   : > { %2643 = vmatprep.mubr.bf16.mxu1 %v4601_v52 }
  0x8e   : > { %2573 = vmatpush1.bf16.msra.mxu0 %v3851_v14  ;;  %v3941_v14 = vld [vmem:[#allocation5 + $0x2b0] ss:$48 sps:$4 sm:$0xff]  }
  0x8f   : > { %2614 = vmatpush1.bf16.msra.mxu1 %v3854_v15  ;;  %2574 = vmatprep.subr.bf16.mxu0 %v3859_v16  ;;  %v3944_v15 = vld [vmem:[#allocation5 + $0x8b0] ss:$48 sps:$4 sm:$0xff]   ;;  %v3949_v16 = vld [vmem:[#allocation5 + $0x254] ss:$48 sps:$4 sm:$0xff]  }
  0x90   : > { %2615 = vmatprep.subr.bf16.mxu1 %v3862_v17  ;;  %v3952_v17 = vld [vmem:[#allocation5 + $0x854] ss:$48 sps:$4 sm:$0xff]  }
  0x92   : > { %2575 = vmatpush1.bf16.msra.mxu0 %v3857_v18  ;;  %v3947_v18 = vld [vmem:[#allocation5 + $0x250] ss:$48 sps:$4 sm:$0xff]  }
  0x93   : > { %2616 = vmatpush1.bf16.msra.mxu1 %v3860_v19  ;;  %2576 = vmatprep.subr.bf16.mxu0 %v3865_v20  ;;  %v3950_v19 = vld [vmem:[#allocation5 + $0x850] ss:$48 sps:$4 sm:$0xff]   ;;  %v3955_v20 = vld [vmem:[#allocation5 + $0x1f4] ss:$48 sps:$4 sm:$0xff]  }
  0x94   : > { %2617 = vmatprep.subr.bf16.mxu1 %v3868_v21  ;;  %v3958_v21 = vld [vmem:[#allocation5 + $0x7f4] ss:$48 sps:$4 sm:$0xff]  }
  0x96   : > { %2577 = vmatpush1.bf16.msra.mxu0 %v3863_v22  ;;  %v3953_v22 = vld [vmem:[#allocation5 + $0x1f0] ss:$48 sps:$4 sm:$0xff]  }
  0x97   : > { %2618 = vmatpush1.bf16.msra.mxu1 %v3866_v23  ;;  %2578 = vmatprep.subr.bf16.mxu0 %v3871_v24  ;;  %v3956_v23 = vld [vmem:[#allocation5 + $0x7f0] ss:$48 sps:$4 sm:$0xff]   ;;  %v3961_v24 = vld [vmem:[#allocation5 + $0x194] ss:$48 sps:$4 sm:$0xff]  }
  0x98   : > { %2619 = vmatprep.subr.bf16.mxu1 %v3874_v25  ;;  %v3964_v25 = vld [vmem:[#allocation5 + $0x794] ss:$48 sps:$4 sm:$0xff]  }
  0x9a   : > { %2579 = vmatpush1.bf16.msra.mxu0 %v3869_v26  ;;  %v3959_v26 = vld [vmem:[#allocation5 + $0x190] ss:$48 sps:$4 sm:$0xff]  }
  0x9b   : > { %2620 = vmatpush1.bf16.msra.mxu1 %v3872_v27  ;;  %2580 = vmatprep.subr.bf16.mxu0 %v3877_v28  ;;  %v3962_v27 = vld [vmem:[#allocation5 + $0x790] ss:$48 sps:$4 sm:$0xff]   ;;  %v3967_v28 = vld [vmem:[#allocation5 + $0x134] ss:$48 sps:$4 sm:$0xff]  }
  0x9c   : > { %2621 = vmatprep.subr.bf16.mxu1 %v3880_v29  ;;  %v3970_v29 = vld [vmem:[#allocation5 + $0x734] ss:$48 sps:$4 sm:$0xff]  }
  0x9e   : > { %2581 = vmatpush1.bf16.msra.mxu0 %v3875_v30  ;;  %v3965_v30 = vld [vmem:[#allocation5 + $0x130] ss:$48 sps:$4 sm:$0xff]  }
  0x9f   : > { %2622 = vmatpush1.bf16.msra.mxu1 %v3878_v31  ;;  %2582 = vmatprep.subr.bf16.mxu0 %v3883_v32  ;;  %v3968_v31 = vld [vmem:[#allocation5 + $0x730] ss:$48 sps:$4 sm:$0xff]   ;;  %v3973_v32 = vld [vmem:[#allocation5 + $0xd4] ss:$48 sps:$4 sm:$0xff]  }
  0xa0   : > { %2623 = vmatprep.subr.bf16.mxu1 %v3886_v33  ;;  %v3976_v33 = vld [vmem:[#allocation5 + $0x6d4] ss:$48 sps:$4 sm:$0xff]  }
  0xa2   : > { %2583 = vmatpush1.bf16.msra.mxu0 %v3881_v34  ;;  %v3971_v34 = vld [vmem:[#allocation5 + $0xd0] ss:$48 sps:$4 sm:$0xff]  }
  0xa3   : > { %2624 = vmatpush1.bf16.msra.mxu1 %v3884_v35  ;;  %2584 = vmatprep.subr.bf16.mxu0 %v3889_v36  ;;  %v3974_v35 = vld [vmem:[#allocation5 + $0x6d0] ss:$48 sps:$4 sm:$0xff]   ;;  %v3979_v36 = vld [vmem:[#allocation5 + $0x74] ss:$48 sps:$4 sm:$0xff]  }
  0xa4   : > { %2625 = vmatprep.subr.bf16.mxu1 %v3892_v37  ;;  %v3982_v37 = vld [vmem:[#allocation5 + $0x674] ss:$48 sps:$4 sm:$0xff]  }
  0xa6   : > { %2585 = vmatpush1.bf16.msra.mxu0 %v3887_v38  ;;  %v3977_v38 = vld [vmem:[#allocation5 + $0x70] ss:$48 sps:$4 sm:$0xff]  }
  0xa7   : > { %2626 = vmatpush1.bf16.msra.mxu1 %v3890_v39  ;;  %2586 = vmatprep.subr.bf16.mxu0 %v3895_v40  ;;  %v3980_v39 = vld [vmem:[#allocation5 + $0x670] ss:$48 sps:$4 sm:$0xff]   ;;  %v3985_v40 = vld [vmem:[#allocation5 + $0x14] ss:$48 sps:$4 sm:$0xff]  }
  0xa8   : > { %2627 = vmatprep.subr.bf16.mxu1 %v3898_v41  ;;  %v3988_v41 = vld [vmem:[#allocation5 + $0x614] ss:$48 sps:$4 sm:$0xff]  }
  0xaa   : > { %2587 = vmatpush2.bf16.msra.mxu0 %v3893_v42  ;;  %v3983_v42 = vld [vmem:[#allocation5 + $0x10] ss:$48 sps:$4 sm:$0xff]  }
  0xab   : > { %2628 = vmatpush2.bf16.msra.mxu1 %v3896_v43  ;;  %2588 = vmatprep.subr.bf16.mxu0 %v3901_v44  ;;  %v3986_v43 = vld [vmem:[#allocation5 + $0x610] ss:$48 sps:$4 sm:$0xff]   ;;  %v3991_v44 = vld [vmem:[#allocation5 + $0x5b4] ss:$48 sps:$4 sm:$0xff]  }
  0xac   : > { %2629 = vmatprep.subr.bf16.mxu1 %v3904_v45  ;;  %v3994_v45 = vld [vmem:[#allocation5 + $0xbb4] ss:$48 sps:$4 sm:$0xff]  }
  0xae   : > { %2589 = vmatpush2.bf16.msra.mxu0 %v3899_v46  ;;  %v3989_v46 = vld [vmem:[#allocation5 + $0x5b0] ss:$48 sps:$4 sm:$0xff]  }
  0xaf   : > { %2630 = vmatpush2.bf16.msra.mxu1 %v3902_v47  ;;  %2590 = vmatprep.subr.bf16.mxu0 %v3907_v48  ;;  %v3992_v47 = vld [vmem:[#allocation5 + $0xbb0] ss:$48 sps:$4 sm:$0xff]   ;;  %v3997_v48 = vld [vmem:[#allocation5 + $0x554] ss:$48 sps:$4 sm:$0xff]  }
  0xb0   : > { %2631 = vmatprep.subr.bf16.mxu1 %v3910_v50  ;;  %v4000_v50 = vld [vmem:[#allocation5 + $0xb54] ss:$48 sps:$4 sm:$0xff]  }
  0xb2   : > { %2591 = vmatpush2.bf16.msra.mxu0 %v3905_v51  ;;  %v3995_v51 = vld [vmem:[#allocation5 + $0x550] ss:$48 sps:$4 sm:$0xff]  }
  0xb3   : > { %2632 = vmatpush2.bf16.msra.mxu1 %v3908_v53  ;;  %2592 = vmatprep.subr.bf16.mxu0 %v3913_v54  ;;  %v3998_v53 = vld [vmem:[#allocation5 + $0xb50] ss:$48 sps:$4 sm:$0xff]   ;;  %v4003_v54 = vld [vmem:[#allocation5 + $0x4f4] ss:$48 sps:$4 sm:$0xff]  }
  0xb4   : > { %2633 = vmatprep.subr.bf16.mxu1 %v3916_v55  ;;  %v4006_v55 = vld [vmem:[#allocation5 + $0xaf4] ss:$48 sps:$4 sm:$0xff]  }
  0xb6   : > { %2593 = vmatpush2.bf16.msra.mxu0 %v3911_v56  ;;  %v4001_v56 = vld [vmem:[#allocation5 + $0x4f0] ss:$48 sps:$4 sm:$0xff]  }
  0xb7   : > { %2634 = vmatpush2.bf16.msra.mxu1 %v3914_v57  ;;  %2594 = vmatprep.subr.bf16.mxu0 %v3919_v58  ;;  %v4004_v57 = vld [vmem:[#allocation5 + $0xaf0] ss:$48 sps:$4 sm:$0xff]   ;;  %v4009_v58 = vld [vmem:[#allocation5 + $0x494] ss:$48 sps:$4 sm:$0xff]  }
  0xb8   : > { %2635 = vmatprep.subr.bf16.mxu1 %v3922_v59  ;;  %v4012_v59 = vld [vmem:[#allocation5 + $0xa94] ss:$48 sps:$4 sm:$0xff]  }
  0xba   : > { %2595 = vmatpush2.bf16.msra.mxu0 %v3917_v60  ;;  %v4007_v60 = vld [vmem:[#allocation5 + $0x490] ss:$48 sps:$4 sm:$0xff]  }
  0xbb   : > { %2636 = vmatpush2.bf16.msra.mxu1 %v3920_v61  ;;  %2596 = vmatprep.subr.bf16.mxu0 %v3925_v62  ;;  %v4010_v61 = vld [vmem:[#allocation5 + $0xa90] ss:$48 sps:$4 sm:$0xff]   ;;  %v4015_v62 = vld [vmem:[#allocation5 + $0x434] ss:$48 sps:$4 sm:$0xff]  }
  0xbc   : > { %2637 = vmatprep.subr.bf16.mxu1 %v3928_v63  ;;  %v4018_v63 = vld [vmem:[#allocation5 + $0xa34] ss:$48 sps:$4 sm:$0xff]  }
  0xbe   : > { %2597 = vmatpush2.bf16.msra.mxu0 %v3923_v0  ;;  %v4013_v0 = vld [vmem:[#allocation5 + $0x430] ss:$48 sps:$4 sm:$0xff]  }
  0xbf   : > { %2638 = vmatpush2.bf16.msra.mxu1 %v3926_v1  ;;  %2598 = vmatprep.subr.bf16.mxu0 %v3931_v2  ;;  %v4016_v1 = vld [vmem:[#allocation5 + $0xa30] ss:$48 sps:$4 sm:$0xff]   ;;  %v4021_v2 = vld [vmem:[#allocation5 + $0x3d4] ss:$48 sps:$4 sm:$0xff]  }
  0xc0   : > { %2639 = vmatprep.subr.bf16.mxu1 %v3934_v3  ;;  %v4024_v3 = vld [vmem:[#allocation5 + $0x9d4] ss:$48 sps:$4 sm:$0xff]  }
  0xc2   : > { %2599 = vmatpush2.bf16.msra.mxu0 %v3929_v4  ;;  %v4019_v4 = vld [vmem:[#allocation5 + $0x3d0] ss:$48 sps:$4 sm:$0xff]  }
  0xc3   : > { %2640 = vmatpush2.bf16.msra.mxu1 %v3932_v5  ;;  %2600 = vmatprep.subr.bf16.mxu0 %v3937_v6  ;;  %v4022_v5 = vld [vmem:[#allocation5 + $0x9d0] ss:$48 sps:$4 sm:$0xff]   ;;  %v4027_v6 = vld [vmem:[#allocation5 + $0x374] ss:$48 sps:$4 sm:$0xff]  }
  0xc4   : > { %2641 = vmatprep.subr.bf16.mxu1 %v3940_v7  ;;  %v4030_v7 = vld [vmem:[#allocation5 + $0x974] ss:$48 sps:$4 sm:$0xff]  }
  0xc6   : > { %2601 = vmatpush2.bf16.msra.mxu0 %v3935_v10  ;;  %v4025_v10 = vld [vmem:[#allocation5 + $0x370] ss:$48 sps:$4 sm:$0xff]  }
  0xc7   : > { %2642 = vmatpush2.bf16.msra.mxu1 %v3938_v11  ;;  %2652 = vmatprep.subr.bf16.mxu0 %v3943_v12  ;;  %v4028_v11 = vld [vmem:[#allocation5 + $0x970] ss:$48 sps:$4 sm:$0xff]   ;;  %v4033_v12 = vld [vmem:[#allocation5 + $0x314] ss:$48 sps:$4 sm:$0xff]  }
  0xc8   : > { %2693 = vmatprep.subr.bf16.mxu1 %v3946_v13  ;;  %v4036_v13 = vld [vmem:[#allocation5 + $0x914] ss:$48 sps:$4 sm:$0xff]  }
  0xc9   : > { %2603 = vmatmul.mubr.bf16.vlgmr.msra.gmra.mxu0 %v4607_v8 }
  0xca   : > { %2644 = vmatmul.mubr.bf16.vlgmr.msra.gmra.mxu1 %v4609_v9  ;;  %2653 = vmatpush1.bf16.msra.mxu0 %v3941_v14  ;;  %v4031_v14 = vld [vmem:[#allocation5 + $0x310] ss:$48 sps:$4 sm:$0xff]  }
  0xcb   : > { %2694 = vmatpush1.bf16.msra.mxu1 %v3944_v15  ;;  %2654 = vmatprep.subr.bf16.mxu0 %v3949_v16  ;;  %v4034_v15 = vld [vmem:[#allocation5 + $0x910] ss:$48 sps:$4 sm:$0xff]   ;;  %v4039_v16 = vld [vmem:[#allocation5 + $0x2bc] ss:$48 sps:$4 sm:$0xff]  }
  0xcc   : > { %2695 = vmatprep.subr.bf16.mxu1 %v3952_v17  ;;  %2684 = vmatprep.mubr.bf16.mxu0 %v4598_v49  ;;  %v4042_v17 = vld [vmem:[#allocation5 + $0x8bc] ss:$48 sps:$4 sm:$0xff]  }
  0xcd   : > { %2725 = vmatprep.mubr.bf16.mxu1 %v4601_v52 }
  0xce   : > { %2655 = vmatpush1.bf16.msra.mxu0 %v3947_v18  ;;  %v4037_v18 = vld [vmem:[#allocation5 + $0x2b8] ss:$48 sps:$4 sm:$0xff]  }
  0xcf   : > { %2696 = vmatpush1.bf16.msra.mxu1 %v3950_v19  ;;  %2656 = vmatprep.subr.bf16.mxu0 %v3955_v20  ;;  %v4040_v19 = vld [vmem:[#allocation5 + $0x8b8] ss:$48 sps:$4 sm:$0xff]   ;;  %v4045_v20 = vld [vmem:[#allocation5 + $0x25c] ss:$48 sps:$4 sm:$0xff]  }
  0xd0   : > { %2697 = vmatprep.subr.bf16.mxu1 %v3958_v21  ;;  %v4048_v21 = vld [vmem:[#allocation5 + $0x85c] ss:$48 sps:$4 sm:$0xff]  }
  0xd2   : > { %2657 = vmatpush1.bf16.msra.mxu0 %v3953_v22  ;;  %v4043_v22 = vld [vmem:[#allocation5 + $0x258] ss:$48 sps:$4 sm:$0xff]  }
  0xd3   : > { %2698 = vmatpush1.bf16.msra.mxu1 %v3956_v23  ;;  %2658 = vmatprep.subr.bf16.mxu0 %v3961_v24  ;;  %v4046_v23 = vld [vmem:[#allocation5 + $0x858] ss:$48 sps:$4 sm:$0xff]   ;;  %v4051_v24 = vld [vmem:[#allocation5 + $0x1fc] ss:$48 sps:$4 sm:$0xff]  }
  0xd4   : > { %2699 = vmatprep.subr.bf16.mxu1 %v3964_v25  ;;  %v4054_v25 = vld [vmem:[#allocation5 + $0x7fc] ss:$48 sps:$4 sm:$0xff]  }
  0xd6   : > { %2659 = vmatpush1.bf16.msra.mxu0 %v3959_v26  ;;  %v4049_v26 = vld [vmem:[#allocation5 + $0x1f8] ss:$48 sps:$4 sm:$0xff]  }
  0xd7   : > { %2700 = vmatpush1.bf16.msra.mxu1 %v3962_v27  ;;  %2660 = vmatprep.subr.bf16.mxu0 %v3967_v28  ;;  %v4052_v27 = vld [vmem:[#allocation5 + $0x7f8] ss:$48 sps:$4 sm:$0xff]   ;;  %v4057_v28 = vld [vmem:[#allocation5 + $0x19c] ss:$48 sps:$4 sm:$0xff]  }
  0xd8   : > { %2701 = vmatprep.subr.bf16.mxu1 %v3970_v29  ;;  %v4060_v29 = vld [vmem:[#allocation5 + $0x79c] ss:$48 sps:$4 sm:$0xff]  }
  0xda   : > { %2661 = vmatpush1.bf16.msra.mxu0 %v3965_v30  ;;  %v4055_v30 = vld [vmem:[#allocation5 + $0x198] ss:$48 sps:$4 sm:$0xff]  }
  0xdb   : > { %2702 = vmatpush1.bf16.msra.mxu1 %v3968_v31  ;;  %2662 = vmatprep.subr.bf16.mxu0 %v3973_v32  ;;  %v4058_v31 = vld [vmem:[#allocation5 + $0x798] ss:$48 sps:$4 sm:$0xff]   ;;  %v4063_v32 = vld [vmem:[#allocation5 + $0x13c] ss:$48 sps:$4 sm:$0xff]  }
  0xdc   : > { %2703 = vmatprep.subr.bf16.mxu1 %v3976_v33  ;;  %v4066_v33 = vld [vmem:[#allocation5 + $0x73c] ss:$48 sps:$4 sm:$0xff]  }
  0xde   : > { %2663 = vmatpush1.bf16.msra.mxu0 %v3971_v34  ;;  %v4061_v34 = vld [vmem:[#allocation5 + $0x138] ss:$48 sps:$4 sm:$0xff]  }
  0xdf   : > { %2704 = vmatpush1.bf16.msra.mxu1 %v3974_v35  ;;  %2664 = vmatprep.subr.bf16.mxu0 %v3979_v36  ;;  %v4064_v35 = vld [vmem:[#allocation5 + $0x738] ss:$48 sps:$4 sm:$0xff]   ;;  %v4069_v36 = vld [vmem:[#allocation5 + $0xdc] ss:$48 sps:$4 sm:$0xff]  }
  0xe0   : > { %2705 = vmatprep.subr.bf16.mxu1 %v3982_v37  ;;  %v4072_v37 = vld [vmem:[#allocation5 + $0x6dc] ss:$48 sps:$4 sm:$0xff]  }
  0xe2   : > { %2665 = vmatpush1.bf16.msra.mxu0 %v3977_v38  ;;  %v4067_v38 = vld [vmem:[#allocation5 + $0xd8] ss:$48 sps:$4 sm:$0xff]  }
  0xe3   : > { %2706 = vmatpush1.bf16.msra.mxu1 %v3980_v39  ;;  %2666 = vmatprep.subr.bf16.mxu0 %v3985_v40  ;;  %v4070_v39 = vld [vmem:[#allocation5 + $0x6d8] ss:$48 sps:$4 sm:$0xff]   ;;  %v4075_v40 = vld [vmem:[#allocation5 + $0x7c] ss:$48 sps:$4 sm:$0xff]  }
  0xe4   : > { %2707 = vmatprep.subr.bf16.mxu1 %v3988_v41  ;;  %v4078_v41 = vld [vmem:[#allocation5 + $0x67c] ss:$48 sps:$4 sm:$0xff]  }
  0xe6   : > { %2667 = vmatpush1.bf16.msra.mxu0 %v3983_v42  ;;  %v4073_v42 = vld [vmem:[#allocation5 + $0x78] ss:$48 sps:$4 sm:$0xff]  }
  0xe7   : > { %2708 = vmatpush1.bf16.msra.mxu1 %v3986_v43  ;;  %2668 = vmatprep.subr.bf16.mxu0 %v3991_v44  ;;  %v4076_v43 = vld [vmem:[#allocation5 + $0x678] ss:$48 sps:$4 sm:$0xff]   ;;  %v4081_v44 = vld [vmem:[#allocation5 + $0x1c] ss:$48 sps:$4 sm:$0xff]  }
  0xe8   : > { %2709 = vmatprep.subr.bf16.mxu1 %v3994_v45  ;;  %v4084_v45 = vld [vmem:[#allocation5 + $0x61c] ss:$48 sps:$4 sm:$0xff]  }
  0xea   : > { %2669 = vmatpush2.bf16.msra.mxu0 %v3989_v46  ;;  %v4079_v46 = vld [vmem:[#allocation5 + $0x18] ss:$48 sps:$4 sm:$0xff]  }
  0xeb   : > { %2710 = vmatpush2.bf16.msra.mxu1 %v3992_v47  ;;  %2670 = vmatprep.subr.bf16.mxu0 %v3997_v48  ;;  %v4082_v47 = vld [vmem:[#allocation5 + $0x618] ss:$48 sps:$4 sm:$0xff]   ;;  %v4087_v48 = vld [vmem:[#allocation5 + $0x5bc] ss:$48 sps:$4 sm:$0xff]  }
  0xec   : > { %2711 = vmatprep.subr.bf16.mxu1 %v4000_v50  ;;  %v4090_v50 = vld [vmem:[#allocation5 + $0xbbc] ss:$48 sps:$4 sm:$0xff]  }
  0xee   : > { %2671 = vmatpush2.bf16.msra.mxu0 %v3995_v51  ;;  %v4085_v51 = vld [vmem:[#allocation5 + $0x5b8] ss:$48 sps:$4 sm:$0xff]  }
  0xef   : > { %2712 = vmatpush2.bf16.msra.mxu1 %v3998_v53  ;;  %2672 = vmatprep.subr.bf16.mxu0 %v4003_v54  ;;  %v4088_v53 = vld [vmem:[#allocation5 + $0xbb8] ss:$48 sps:$4 sm:$0xff]   ;;  %v4093_v54 = vld [vmem:[#allocation5 + $0x55c] ss:$48 sps:$4 sm:$0xff]  }
  0xf0   : > { %2713 = vmatprep.subr.bf16.mxu1 %v4006_v55  ;;  %v4096_v55 = vld [vmem:[#allocation5 + $0xb5c] ss:$48 sps:$4 sm:$0xff]  }
  0xf2   : > { %2673 = vmatpush2.bf16.msra.mxu0 %v4001_v56  ;;  %v4091_v56 = vld [vmem:[#allocation5 + $0x558] ss:$48 sps:$4 sm:$0xff]  }
  0xf3   : > { %2714 = vmatpush2.bf16.msra.mxu1 %v4004_v57  ;;  %2674 = vmatprep.subr.bf16.mxu0 %v4009_v58  ;;  %v4094_v57 = vld [vmem:[#allocation5 + $0xb58] ss:$48 sps:$4 sm:$0xff]   ;;  %v4099_v58 = vld [vmem:[#allocation5 + $0x4fc] ss:$48 sps:$4 sm:$0xff]  }
  0xf4   : > { %2715 = vmatprep.subr.bf16.mxu1 %v4012_v59  ;;  %v4102_v59 = vld [vmem:[#allocation5 + $0xafc] ss:$48 sps:$4 sm:$0xff]  }
  0xf6   : > { %2675 = vmatpush2.bf16.msra.mxu0 %v4007_v60  ;;  %v4097_v60 = vld [vmem:[#allocation5 + $0x4f8] ss:$48 sps:$4 sm:$0xff]  }
  0xf7   : > { %2716 = vmatpush2.bf16.msra.mxu1 %v4010_v61  ;;  %2676 = vmatprep.subr.bf16.mxu0 %v4015_v62  ;;  %v4100_v61 = vld [vmem:[#allocation5 + $0xaf8] ss:$48 sps:$4 sm:$0xff]   ;;  %v4105_v62 = vld [vmem:[#allocation5 + $0x49c] ss:$48 sps:$4 sm:$0xff]  }
  0xf8   : > { %2717 = vmatprep.subr.bf16.mxu1 %v4018_v63  ;;  %v4108_v63 = vld [vmem:[#allocation5 + $0xa9c] ss:$48 sps:$4 sm:$0xff]  }
  0xfa   : > { %2677 = vmatpush2.bf16.msra.mxu0 %v4013_v0  ;;  %v4103_v0 = vld [vmem:[#allocation5 + $0x498] ss:$48 sps:$4 sm:$0xff]  }
  0xfb   : > { %2718 = vmatpush2.bf16.msra.mxu1 %v4016_v1  ;;  %2678 = vmatprep.subr.bf16.mxu0 %v4021_v2  ;;  %v4106_v1 = vld [vmem:[#allocation5 + $0xa98] ss:$48 sps:$4 sm:$0xff]   ;;  %v4111_v2 = vld [vmem:[#allocation5 + $0x43c] ss:$48 sps:$4 sm:$0xff]  }
  0xfc   : > { %2719 = vmatprep.subr.bf16.mxu1 %v4024_v3  ;;  %v4114_v3 = vld [vmem:[#allocation5 + $0xa3c] ss:$48 sps:$4 sm:$0xff]  }
  0xfe   : > { %2679 = vmatpush2.bf16.msra.mxu0 %v4019_v4  ;;  %v4109_v4 = vld [vmem:[#allocation5 + $0x438] ss:$48 sps:$4 sm:$0xff]  }
  0xff   : > { %2720 = vmatpush2.bf16.msra.mxu1 %v4022_v5  ;;  %2680 = vmatprep.subr.bf16.mxu0 %v4027_v6  ;;  %v4112_v5 = vld [vmem:[#allocation5 + $0xa38] ss:$48 sps:$4 sm:$0xff]   ;;  %v4117_v6 = vld [vmem:[#allocation5 + $0x3dc] ss:$48 sps:$4 sm:$0xff]  }
 0x100   : > { %2721 = vmatprep.subr.bf16.mxu1 %v4030_v7  ;;  %v4120_v7 = vld [vmem:[#allocation5 + $0x9dc] ss:$48 sps:$4 sm:$0xff]  }
 0x102   : > { %2681 = vmatpush2.bf16.msra.mxu0 %v4025_v10  ;;  %v4115_v10 = vld [vmem:[#allocation5 + $0x3d8] ss:$48 sps:$4 sm:$0xff]  }
 0x103   : > { %2722 = vmatpush2.bf16.msra.mxu1 %v4028_v11  ;;  %2682 = vmatprep.subr.bf16.mxu0 %v4033_v12  ;;  %v4118_v11 = vld [vmem:[#allocation5 + $0x9d8] ss:$48 sps:$4 sm:$0xff]   ;;  %v4123_v12 = vld [vmem:[#allocation5 + $0x37c] ss:$48 sps:$4 sm:$0xff]  }
 0x104   : > { %2723 = vmatprep.subr.bf16.mxu1 %v4036_v13  ;;  %v4126_v13 = vld [vmem:[#allocation5 + $0x97c] ss:$48 sps:$4 sm:$0xff]  }
 0x106   : > { %2683 = vmatpush2.bf16.msra.mxu0 %v4031_v14  ;;  %v4121_v14 = vld [vmem:[#allocation5 + $0x378] ss:$48 sps:$4 sm:$0xff]  }
 0x107   : > { %2724 = vmatpush2.bf16.msra.mxu1 %v4034_v15  ;;  %2734 = vmatprep.subr.bf16.mxu0 %v4039_v16  ;;  %v4124_v15 = vld [vmem:[#allocation5 + $0x978] ss:$48 sps:$4 sm:$0xff]   ;;  %v4129_v16 = vld [vmem:[#allocation5 + $0x31c] ss:$48 sps:$4 sm:$0xff]  }
 0x108   : > { %2775 = vmatprep.subr.bf16.mxu1 %v4042_v17  ;;  %v4132_v17 = vld [vmem:[#allocation5 + $0x91c] ss:$48 sps:$4 sm:$0xff]  }
 0x109   : > { %2685 = vmatmul.mubr.bf16.vlgmr.msra.gmra.mxu0 %v4607_v8 }
 0x10a   : > { %2726 = vmatmul.mubr.bf16.vlgmr.msra.gmra.mxu1 %v4609_v9  ;;  %2735 = vmatpush1.bf16.msra.mxu0 %v4037_v18  ;;  %v4127_v18 = vld [vmem:[#allocation5 + $0x318] ss:$48 sps:$4 sm:$0xff]  }
 0x10b   : > { %2776 = vmatpush1.bf16.msra.mxu1 %v4040_v19  ;;  %2736 = vmatprep.subr.bf16.mxu0 %v4045_v20  ;;  %v4130_v19 = vld [vmem:[#allocation5 + $0x918] ss:$48 sps:$4 sm:$0xff]   ;;  %v4135_v20 = vld [vmem:[#allocation5 + $0x2c4] ss:$48 sps:$4 sm:$0xff]  }
 0x10c   : > { %2777 = vmatprep.subr.bf16.mxu1 %v4048_v21  ;;  %2766 = vmatprep.mubr.bf16.mxu0 %v4598_v49  ;;  %v4138_v21 = vld [vmem:[#allocation5 + $0x8c4] ss:$48 sps:$4 sm:$0xff]  }
 0x10d   : > { %2807 = vmatprep.mubr.bf16.mxu1 %v4601_v52 }
 0x10e   : > { %2737 = vmatpush1.bf16.msra.mxu0 %v4043_v22  ;;  %v4133_v22 = vld [vmem:[#allocation5 + $0x2c0] ss:$48 sps:$4 sm:$0xff]  }
 0x10f   : > { %2778 = vmatpush1.bf16.msra.mxu1 %v4046_v23  ;;  %2738 = vmatprep.subr.bf16.mxu0 %v4051_v24  ;;  %v4136_v23 = vld [vmem:[#allocation5 + $0x8c0] ss:$48 sps:$4 sm:$0xff]   ;;  %v4141_v24 = vld [vmem:[#allocation5 + $0x264] ss:$48 sps:$4 sm:$0xff]  }
 0x110   : > { %2779 = vmatprep.subr.bf16.mxu1 %v4054_v25  ;;  %v4144_v25 = vld [vmem:[#allocation5 + $0x864] ss:$48 sps:$4 sm:$0xff]  }
 0x112   : > { %2739 = vmatpush1.bf16.msra.mxu0 %v4049_v26 }
 0x113   : > { %2780 = vmatpush1.bf16.msra.mxu1 %v4052_v27  ;;  %2740 = vmatprep.subr.bf16.mxu0 %v4057_v28 }
 0x114   : > { %2781 = vmatprep.subr.bf16.mxu1 %v4060_v29  ;;  %v4139_v29 = vld [vmem:[#allocation5 + $0x260] ss:$48 sps:$4 sm:$0xff]  }
 0x116   : > { %2741 = vmatpush1.bf16.msra.mxu0 %v4055_v30  ;;  %v4142_v30 = vld [vmem:[#allocation5 + $0x860] ss:$48 sps:$4 sm:$0xff]  }
 0x117   : > { %2782 = vmatpush1.bf16.msra.mxu1 %v4058_v31  ;;  %2742 = vmatprep.subr.bf16.mxu0 %v4063_v32 }
 0x118   : > { %2783 = vmatprep.subr.bf16.mxu1 %v4066_v33  ;;  %v4147_v33 = vld [vmem:[#allocation5 + $0x204] ss:$48 sps:$4 sm:$0xff]  }
 0x11a   : > { %2743 = vmatpush1.bf16.msra.mxu0 %v4061_v34  ;;  %v4150_v34 = vld [vmem:[#allocation5 + $0x804] ss:$48 sps:$4 sm:$0xff]  }
 0x11b   : > { %2784 = vmatpush1.bf16.msra.mxu1 %v4064_v35  ;;  %2744 = vmatprep.subr.bf16.mxu0 %v4069_v36 }
 0x11c   : > { %2785 = vmatprep.subr.bf16.mxu1 %v4072_v37 }
 0x11e   : > { %2745 = vmatpush1.bf16.msra.mxu0 %v4067_v38  ;;  %v4145_v38 = vld [vmem:[#allocation5 + $0x200] ss:$48 sps:$4 sm:$0xff]  }
 0x11f   : > { %2786 = vmatpush1.bf16.msra.mxu1 %v4070_v39  ;;  %2746 = vmatprep.subr.bf16.mxu0 %v4075_v40  ;;  %v4148_v39 = vld [vmem:[#allocation5 + $0x800] ss:$48 sps:$4 sm:$0xff]  }
 0x120   : > { %2787 = vmatprep.subr.bf16.mxu1 %v4078_v41 }
 0x122   : > { %2747 = vmatpush1.bf16.msra.mxu0 %v4073_v42  ;;  %v4153_v42 = vld [vmem:[#allocation5 + $0x1a4] ss:$48 sps:$4 sm:$0xff]  }
 0x123   : > { %2788 = vmatpush1.bf16.msra.mxu1 %v4076_v43  ;;  %2748 = vmatprep.subr.bf16.mxu0 %v4081_v44  ;;  %v4156_v43 = vld [vmem:[#allocation5 + $0x7a4] ss:$48 sps:$4 sm:$0xff]   ;;  %v4151_v44 = vld [vmem:[#allocation5 + $0x1a0] ss:$48 sps:$4 sm:$0xff]  }
 0x124   : > { %2789 = vmatprep.subr.bf16.mxu1 %v4084_v45  ;;  %v4154_v45 = vld [vmem:[#allocation5 + $0x7a0] ss:$48 sps:$4 sm:$0xff]  }
 0x126   : > { %2749 = vmatpush1.bf16.msra.mxu0 %v4079_v46  ;;  %v4159_v46 = vld [vmem:[#allocation5 + $0x144] ss:$48 sps:$4 sm:$0xff]  }
 0x127   : > { %2790 = vmatpush1.bf16.msra.mxu1 %v4082_v47  ;;  %2750 = vmatprep.subr.bf16.mxu0 %v4087_v48  ;;  %v4162_v47 = vld [vmem:[#allocation5 + $0x744] ss:$48 sps:$4 sm:$0xff]   ;;  %v4157_v48 = vld [vmem:[#allocation5 + $0x140] ss:$48 sps:$4 sm:$0xff]  }
 0x128   : > { %2791 = vmatprep.subr.bf16.mxu1 %v4090_v50  ;;  %v4160_v50 = vld [vmem:[#allocation5 + $0x740] ss:$48 sps:$4 sm:$0xff]  }
 0x12a   : > { %2751 = vmatpush2.bf16.msra.mxu0 %v4085_v51  ;;  %v4165_v51 = vld [vmem:[#allocation5 + $0xe4] ss:$48 sps:$4 sm:$0xff]  }
 0x12b   : > { %2792 = vmatpush2.bf16.msra.mxu1 %v4088_v53  ;;  %2752 = vmatprep.subr.bf16.mxu0 %v4093_v54  ;;  %v4168_v53 = vld [vmem:[#allocation5 + $0x6e4] ss:$48 sps:$4 sm:$0xff]   ;;  %v4163_v54 = vld [vmem:[#allocation5 + $0xe0] ss:$48 sps:$4 sm:$0xff]  }
 0x12c   : > { %2793 = vmatprep.subr.bf16.mxu1 %v4096_v55  ;;  %v4166_v55 = vld [vmem:[#allocation5 + $0x6e0] ss:$48 sps:$4 sm:$0xff]  }
 0x12e   : > { %2753 = vmatpush2.bf16.msra.mxu0 %v4091_v56  ;;  %v4171_v56 = vld [vmem:[#allocation5 + $0x84] ss:$48 sps:$4 sm:$0xff]  }
 0x12f   : > { %2794 = vmatpush2.bf16.msra.mxu1 %v4094_v57  ;;  %2754 = vmatprep.subr.bf16.mxu0 %v4099_v58  ;;  %v4174_v57 = vld [vmem:[#allocation5 + $0x684] ss:$48 sps:$4 sm:$0xff]   ;;  %v4169_v58 = vld [vmem:[#allocation5 + $0x80] ss:$48 sps:$4 sm:$0xff]  }
 0x130   : > { %2795 = vmatprep.subr.bf16.mxu1 %v4102_v59  ;;  %v4172_v59 = vld [vmem:[#allocation5 + $0x680] ss:$48 sps:$4 sm:$0xff]  }
 0x132   : > { %2755 = vmatpush2.bf16.msra.mxu0 %v4097_v60  ;;  %v4177_v60 = vld [vmem:[#allocation5 + $0x24] ss:$48 sps:$4 sm:$0xff]  }
 0x133   : > { %2796 = vmatpush2.bf16.msra.mxu1 %v4100_v61  ;;  %2756 = vmatprep.subr.bf16.mxu0 %v4105_v62  ;;  %v4180_v61 = vld [vmem:[#allocation5 + $0x624] ss:$48 sps:$4 sm:$0xff]   ;;  %v4175_v62 = vld [vmem:[#allocation5 + $0x20] ss:$48 sps:$4 sm:$0xff]  }
 0x134   : > { %2797 = vmatprep.subr.bf16.mxu1 %v4108_v63  ;;  %v4178_v63 = vld [vmem:[#allocation5 + $0x620] ss:$48 sps:$4 sm:$0xff]  }
 0x136   : > { %2757 = vmatpush2.bf16.msra.mxu0 %v4103_v0  ;;  %v4183_v0 = vld [vmem:[#allocation5 + $0x5c4] ss:$48 sps:$4 sm:$0xff]  }
 0x137   : > { %2798 = vmatpush2.bf16.msra.mxu1 %v4106_v1  ;;  %2758 = vmatprep.subr.bf16.mxu0 %v4111_v2  ;;  %v4186_v1 = vld [vmem:[#allocation5 + $0xbc4] ss:$48 sps:$4 sm:$0xff]   ;;  %v4181_v2 = vld [vmem:[#allocation5 + $0x5c0] ss:$48 sps:$4 sm:$0xff]  }
 0x138   : > { %2799 = vmatprep.subr.bf16.mxu1 %v4114_v3  ;;  %v4184_v3 = vld [vmem:[#allocation5 + $0xbc0] ss:$48 sps:$4 sm:$0xff]  }
 0x13a   : > { %2759 = vmatpush2.bf16.msra.mxu0 %v4109_v4  ;;  %v4189_v4 = vld [vmem:[#allocation5 + $0x564] ss:$48 sps:$4 sm:$0xff]  }
 0x13b   : > { %2800 = vmatpush2.bf16.msra.mxu1 %v4112_v5  ;;  %2760 = vmatprep.subr.bf16.mxu0 %v4117_v6  ;;  %v4192_v5 = vld [vmem:[#allocation5 + $0xb64] ss:$48 sps:$4 sm:$0xff]   ;;  %v4187_v6 = vld [vmem:[#allocation5 + $0x560] ss:$48 sps:$4 sm:$0xff]  }
 0x13c   : > { %2801 = vmatprep.subr.bf16.mxu1 %v4120_v7  ;;  %v4190_v7 = vld [vmem:[#allocation5 + $0xb60] ss:$48 sps:$4 sm:$0xff]  }
 0x13e   : > { %2761 = vmatpush2.bf16.msra.mxu0 %v4115_v10  ;;  %v4195_v10 = vld [vmem:[#allocation5 + $0x504] ss:$48 sps:$4 sm:$0xff]  }
 0x13f   : > { %2802 = vmatpush2.bf16.msra.mxu1 %v4118_v11  ;;  %2762 = vmatprep.subr.bf16.mxu0 %v4123_v12  ;;  %v4198_v11 = vld [vmem:[#allocation5 + $0xb04] ss:$48 sps:$4 sm:$0xff]   ;;  %v4193_v12 = vld [vmem:[#allocation5 + $0x500] ss:$48 sps:$4 sm:$0xff]  }
 0x140   : > { %2803 = vmatprep.subr.bf16.mxu1 %v4126_v13  ;;  %v4196_v13 = vld [vmem:[#allocation5 + $0xb00] ss:$48 sps:$4 sm:$0xff]  }
 0x142   : > { %2763 = vmatpush2.bf16.msra.mxu0 %v4121_v14  ;;  %v4201_v14 = vld [vmem:[#allocation5 + $0x4a4] ss:$48 sps:$4 sm:$0xff]  }
 0x143   : > { %2804 = vmatpush2.bf16.msra.mxu1 %v4124_v15  ;;  %2764 = vmatprep.subr.bf16.mxu0 %v4129_v16  ;;  %v4204_v15 = vld [vmem:[#allocation5 + $0xaa4] ss:$48 sps:$4 sm:$0xff]   ;;  %v4199_v16 = vld [vmem:[#allocation5 + $0x4a0] ss:$48 sps:$4 sm:$0xff]  }
 0x144   : > { %2805 = vmatprep.subr.bf16.mxu1 %v4132_v17  ;;  %v4202_v17 = vld [vmem:[#allocation5 + $0xaa0] ss:$48 sps:$4 sm:$0xff]  }
 0x146   : > { %2765 = vmatpush2.bf16.msra.mxu0 %v4127_v18  ;;  %v4207_v18 = vld [vmem:[#allocation5 + $0x444] ss:$48 sps:$4 sm:$0xff]  }
 0x147   : > { %2806 = vmatpush2.bf16.msra.mxu1 %v4130_v19  ;;  %2816 = vmatprep.subr.bf16.mxu0 %v4135_v20  ;;  %v4210_v19 = vld [vmem:[#allocation5 + $0xa44] ss:$48 sps:$4 sm:$0xff]   ;;  %v4205_v20 = vld [vmem:[#allocation5 + $0x440] ss:$48 sps:$4 sm:$0xff]  }
 0x148   : > { %2857 = vmatprep.subr.bf16.mxu1 %v4138_v21  ;;  %v4208_v21 = vld [vmem:[#allocation5 + $0xa40] ss:$48 sps:$4 sm:$0xff]  }
 0x149   : > { %v2522_v26 = vpop.f32.mrf.mxu0  ;;  %2767 = vmatmul.mubr.bf16.vlgmr.msra.gmra.mxu0 %v4607_v8 }
 0x14a   : > { %v2563_v27 = vpop.f32.mrf.mxu1  ;;  %2808 = vmatmul.mubr.bf16.vlgmr.msra.gmra.mxu1 %v4609_v9  ;;  %2817 = vmatpush1.bf16.msra.mxu0 %v4133_v22  ;;  %v4213_v22 = vld [vmem:[#allocation5 + $0x3e4] ss:$48 sps:$4 sm:$0xff]  }
 0x14b   : > { %v4625_v28 = vadd.f32 %v2563_v27, %v2522_v26  ;;  %2858 = vmatpush1.bf16.msra.mxu1 %v4136_v23  ;;  %v2524_v31 = vpop.f32.mrf.mxu0  ;;  %2818 = vmatprep.subr.bf16.mxu0 %v4141_v24  ;;  %v4216_v23 = vld [vmem:[#allocation5 + $0x9e4] ss:$48 sps:$4 sm:$0xff]   ;;  %v4211_v24 = vld [vmem:[#allocation5 + $0x3e0] ss:$48 sps:$4 sm:$0xff]  }
 0x14c   : > { %v2565_v32 = vpop.f32.mrf.mxu1  ;;  %2859 = vmatprep.subr.bf16.mxu1 %v4144_v25  ;;  %2848 = vmatprep.mubr.bf16.mxu0 %v4598_v49  ;;  %v4214_v25 = vld [vmem:[#allocation5 + $0x9e0] ss:$48 sps:$4 sm:$0xff]   ;;  %v4219_v26 = vld [vmem:[#allocation5 + $0x384] ss:$48 sps:$4 sm:$0xff]  }
 0x14d   : > { %v4627_v35 = vadd.f32 %v2565_v32, %v2524_v31  ;;  %2889 = vmatprep.mubr.bf16.mxu1 %v4601_v52  ;;  %v2526_v36 = vpop.f32.mrf.mxu0  ;;  %v4222_v27 = vld [vmem:[#allocation5 + $0x984] ss:$48 sps:$4 sm:$0xff]  }
 0x14e   : > { %v2567_v37 = vpop.f32.mrf.mxu1  ;;  %2819 = vmatpush1.bf16.msra.mxu0 %v4139_v29  ;;  %v4217_v29 = vld [vmem:[#allocation5 + $0x380] ss:$48 sps:$4 sm:$0xff]   ;;  %v4225_v31 = vld [vmem:[#allocation5 + $0x324] ss:$48 sps:$4 sm:$0xff]   ;;  %v4231_v36 = vld [vmem:[#allocation5 + $0x2cc] ss:$48 sps:$4 sm:$0xff]  }
 0x14f   : > { %2860 = vmatpush1.bf16.msra.mxu1 %v4142_v30  ;;  %v2527_v40 = vpop.f32.mrf.mxu0  ;;  %2820 = vmatprep.subr.bf16.mxu0 %v4147_v33  ;;  %v4220_v30 = vld [vmem:[#allocation5 + $0x980] ss:$48 sps:$4 sm:$0xff]   ;;  %v4228_v32 = vld [vmem:[#allocation5 + $0x924] ss:$48 sps:$4 sm:$0xff]   ;;  %v4234_v37 = vld [vmem:[#allocation5 + $0x8cc] ss:$48 sps:$4 sm:$0xff]  }
 0x150   : > { %v2568_v41 = vpop.f32.mrf.mxu1  ;;  %2861 = vmatprep.subr.bf16.mxu1 %v4150_v34  ;;  %v4223_v33 = vld [vmem:[#allocation5 + $0x320] ss:$48 sps:$4 sm:$0xff]   ;;  %v4237_v40 = vld [vmem:[#allocation5 + $0x26c] ss:$48 sps:$4 sm:$0xff]  }
 0x151   : > { %v4226_v34 = vld [vmem:[#allocation5 + $0x920] ss:$48 sps:$4 sm:$0xff]   ;;  %v4240_v41 = vld [vmem:[#allocation5 + $0x86c] ss:$48 sps:$4 sm:$0xff]  }
 0x152   : > { %2821 = vmatpush1.bf16.msra.mxu0 %v4145_v38  ;;  %v4229_v38 = vld [vmem:[#allocation5 + $0x2c8] ss:$48 sps:$4 sm:$0xff]  }
 0x153   : > { %2862 = vmatpush1.bf16.msra.mxu1 %v4148_v39  ;;  %2822 = vmatprep.subr.bf16.mxu0 %v4153_v42  ;;  %v4232_v39 = vld [vmem:[#allocation5 + $0x8c8] ss:$48 sps:$4 sm:$0xff]  }
 0x154   : > { %2863 = vmatprep.subr.bf16.mxu1 %v4156_v43 }
 0x156   : > { %2823 = vmatpush1.bf16.msra.mxu0 %v4151_v44 }
 0x157   : > { %2864 = vmatpush1.bf16.msra.mxu1 %v4154_v45  ;;  %2824 = vmatprep.subr.bf16.mxu0 %v4159_v46  ;;  %v4235_v45 = vld [vmem:[#allocation5 + $0x268] ss:$48 sps:$4 sm:$0xff]  }
 0x158   : > { %2865 = vmatprep.subr.bf16.mxu1 %v4162_v47  ;;  %v4238_v46 = vld [vmem:[#allocation5 + $0x868] ss:$48 sps:$4 sm:$0xff]  }
 0x15a   : > { %2825 = vmatpush1.bf16.msra.mxu0 %v4157_v48 }
 0x15b   : > { %2866 = vmatpush1.bf16.msra.mxu1 %v4160_v50  ;;  %2826 = vmatprep.subr.bf16.mxu0 %v4165_v51  ;;  %v4243_v50 = vld [vmem:[#allocation5 + $0x20c] ss:$48 sps:$4 sm:$0xff]  }
 0x15c   : > { %2867 = vmatprep.subr.bf16.mxu1 %v4168_v53  ;;  %v4246_v51 = vld [vmem:[#allocation5 + $0x80c] ss:$48 sps:$4 sm:$0xff]  }
 0x15e   : > { %2827 = vmatpush1.bf16.msra.mxu0 %v4163_v54 }
 0x15f   : > { %2868 = vmatpush1.bf16.msra.mxu1 %v4166_v55  ;;  %2828 = vmatprep.subr.bf16.mxu0 %v4171_v56  ;;  %v4241_v55 = vld [vmem:[#allocation5 + $0x208] ss:$48 sps:$4 sm:$0xff]  }
 0x160   : > { %2869 = vmatprep.subr.bf16.mxu1 %v4174_v57  ;;  %v4244_v56 = vld [vmem:[#allocation5 + $0x808] ss:$48 sps:$4 sm:$0xff]  }
 0x162   : > { %2829 = vmatpush1.bf16.msra.mxu0 %v4169_v58 }
 0x163   : > { %2870 = vmatpush1.bf16.msra.mxu1 %v4172_v59  ;;  %2830 = vmatprep.subr.bf16.mxu0 %v4177_v60  ;;  %v4249_v59 = vld [vmem:[#allocation5 + $0x1ac] ss:$48 sps:$4 sm:$0xff]  }
 0x164   : > { %2871 = vmatprep.subr.bf16.mxu1 %v4180_v61  ;;  %v4252_v60 = vld [vmem:[#allocation5 + $0x7ac] ss:$48 sps:$4 sm:$0xff]   ;;  %v4247_v61 = vld [vmem:[#allocation5 + $0x1a8] ss:$48 sps:$4 sm:$0xff]  }
 0x166   : > { %2831 = vmatpush1.bf16.msra.mxu0 %v4175_v62  ;;  %v4250_v62 = vld [vmem:[#allocation5 + $0x7a8] ss:$48 sps:$4 sm:$0xff]  }
 0x167   : > { %2872 = vmatpush1.bf16.msra.mxu1 %v4178_v63  ;;  %2832 = vmatprep.subr.bf16.mxu0 %v4183_v0  ;;  %v4253_v63 = vld [vmem:[#allocation5 + $0x148] ss:$48 sps:$4 sm:$0xff]  }
 0x168   : > { %2873 = vmatprep.subr.bf16.mxu1 %v4186_v1  ;;  %v4256_v0 = vld [vmem:[#allocation5 + $0x748] ss:$48 sps:$4 sm:$0xff]   ;;  %v4261_v1 = vld [vmem:[#allocation5 + $0xec] ss:$48 sps:$4 sm:$0xff]  }
 0x16a   : > { %2833 = vmatpush2.bf16.msra.mxu0 %v4181_v2  ;;  %v4264_v2 = vld [vmem:[#allocation5 + $0x6ec] ss:$48 sps:$4 sm:$0xff]  }
 0x16b   : > { %2874 = vmatpush2.bf16.msra.mxu1 %v4184_v3  ;;  %2834 = vmatprep.subr.bf16.mxu0 %v4189_v4  ;;  %v4259_v3 = vld [vmem:[#allocation5 + $0xe8] ss:$48 sps:$4 sm:$0xff]  }
 0x16c   : > { %2875 = vmatprep.subr.bf16.mxu1 %v4192_v5  ;;  %v4262_v4 = vld [vmem:[#allocation5 + $0x6e8] ss:$48 sps:$4 sm:$0xff]   ;;  %v4267_v5 = vld [vmem:[#allocation5 + $0x8c] ss:$48 sps:$4 sm:$0xff]  }
 0x16e   : > { %2835 = vmatpush2.bf16.msra.mxu0 %v4187_v6  ;;  %v4270_v6 = vld [vmem:[#allocation5 + $0x68c] ss:$48 sps:$4 sm:$0xff]  }
 0x16f   : > { %2876 = vmatpush2.bf16.msra.mxu1 %v4190_v7  ;;  %2836 = vmatprep.subr.bf16.mxu0 %v4195_v10  ;;  %v4265_v7 = vld [vmem:[#allocation5 + $0x88] ss:$48 sps:$4 sm:$0xff]  }
 0x170   : > { %2877 = vmatprep.subr.bf16.mxu1 %v4198_v11  ;;  %v4268_v10 = vld [vmem:[#allocation5 + $0x688] ss:$48 sps:$4 sm:$0xff]   ;;  %v4273_v11 = vld [vmem:[#allocation5 + $0x2c] ss:$48 sps:$4 sm:$0xff]  }
 0x172   : > { %2837 = vmatpush2.bf16.msra.mxu0 %v4193_v12  ;;  %v4276_v12 = vld [vmem:[#allocation5 + $0x62c] ss:$48 sps:$4 sm:$0xff]  }
 0x173   : > { %2878 = vmatpush2.bf16.msra.mxu1 %v4196_v13  ;;  %2838 = vmatprep.subr.bf16.mxu0 %v4201_v14  ;;  %v4271_v13 = vld [vmem:[#allocation5 + $0x28] ss:$48 sps:$4 sm:$0xff]  }
 0x174   : > { %2879 = vmatprep.subr.bf16.mxu1 %v4204_v15  ;;  %v4274_v14 = vld [vmem:[#allocation5 + $0x628] ss:$48 sps:$4 sm:$0xff]   ;;  %v4279_v15 = vld [vmem:[#allocation5 + $0x5cc] ss:$48 sps:$4 sm:$0xff]  }
 0x176   : > { %2839 = vmatpush2.bf16.msra.mxu0 %v4199_v16  ;;  %v4282_v16 = vld [vmem:[#allocation5 + $0xbcc] ss:$48 sps:$4 sm:$0xff]  }
 0x177   : > { %2880 = vmatpush2.bf16.msra.mxu1 %v4202_v17  ;;  %2840 = vmatprep.subr.bf16.mxu0 %v4207_v18  ;;  %v4277_v17 = vld [vmem:[#allocation5 + $0x5c8] ss:$48 sps:$4 sm:$0xff]  }
 0x178   : > { %2881 = vmatprep.subr.bf16.mxu1 %v4210_v19  ;;  %v4280_v18 = vld [vmem:[#allocation5 + $0xbc8] ss:$48 sps:$4 sm:$0xff]   ;;  %v4285_v19 = vld [vmem:[#allocation5 + $0x56c] ss:$48 sps:$4 sm:$0xff]  }
 0x17a   : > { %2841 = vmatpush2.bf16.msra.mxu0 %v4205_v20  ;;  %v4288_v20 = vld [vmem:[#allocation5 + $0xb6c] ss:$48 sps:$4 sm:$0xff]  }
 0x17b   : > { %2882 = vmatpush2.bf16.msra.mxu1 %v4208_v21  ;;  %2842 = vmatprep.subr.bf16.mxu0 %v4213_v22  ;;  %v4283_v21 = vld [vmem:[#allocation5 + $0x568] ss:$48 sps:$4 sm:$0xff]  }
 0x17c   : > { %2883 = vmatprep.subr.bf16.mxu1 %v4216_v23  ;;  %v4286_v22 = vld [vmem:[#allocation5 + $0xb68] ss:$48 sps:$4 sm:$0xff]   ;;  %v4291_v23 = vld [vmem:[#allocation5 + $0x50c] ss:$48 sps:$4 sm:$0xff]  }
 0x17e   : > { %2843 = vmatpush2.bf16.msra.mxu0 %v4211_v24  ;;  %v4294_v24 = vld [vmem:[#allocation5 + $0xb0c] ss:$48 sps:$4 sm:$0xff]  }
 0x17f   : > { %2884 = vmatpush2.bf16.msra.mxu1 %v4214_v25  ;;  %2844 = vmatprep.subr.bf16.mxu0 %v4219_v26  ;;  %v4289_v25 = vld [vmem:[#allocation5 + $0x508] ss:$48 sps:$4 sm:$0xff]  }
 0x180   : > { %2885 = vmatprep.subr.bf16.mxu1 %v4222_v27  ;;  %v4292_v26 = vld [vmem:[#allocation5 + $0xb08] ss:$48 sps:$4 sm:$0xff]   ;;  %v4297_v27 = vld [vmem:[#allocation5 + $0x4ac] ss:$48 sps:$4 sm:$0xff]  }
 0x182   : > { %2845 = vmatpush2.bf16.msra.mxu0 %v4217_v29  ;;  %v4300_v29 = vld [vmem:[#allocation5 + $0xaac] ss:$48 sps:$4 sm:$0xff]  }
 0x183   : > { %2886 = vmatpush2.bf16.msra.mxu1 %v4220_v30  ;;  %2846 = vmatprep.subr.bf16.mxu0 %v4225_v31  ;;  %v4295_v30 = vld [vmem:[#allocation5 + $0x4a8] ss:$48 sps:$4 sm:$0xff]  }
 0x184   : > { %2887 = vmatprep.subr.bf16.mxu1 %v4228_v32  ;;  %v4298_v31 = vld [vmem:[#allocation5 + $0xaa8] ss:$48 sps:$4 sm:$0xff]   ;;  %v4303_v32 = vld [vmem:[#allocation5 + $0x44c] ss:$48 sps:$4 sm:$0xff]  }
 0x186   : > { %2847 = vmatpush2.bf16.msra.mxu0 %v4223_v33  ;;  %v4306_v33 = vld [vmem:[#allocation5 + $0xa4c] ss:$48 sps:$4 sm:$0xff]  }
 0x187   : > { %2888 = vmatpush2.bf16.msra.mxu1 %v4226_v34  ;;  %2898 = vmatprep.subr.bf16.mxu0 %v4231_v36  ;;  %v4301_v34 = vld [vmem:[#allocation5 + $0x448] ss:$48 sps:$4 sm:$0xff]  }
 0x188   : > { %2939 = vmatprep.subr.bf16.mxu1 %v4234_v37  ;;  %v4304_v36 = vld [vmem:[#allocation5 + $0xa48] ss:$48 sps:$4 sm:$0xff]   ;;  %v4309_v37 = vld [vmem:[#allocation5 + $0x3ec] ss:$48 sps:$4 sm:$0xff]  }
 0x189   : > { %v2604_v42 = vpop.f32.mrf.mxu0  ;;  %2849 = vmatmul.mubr.bf16.vlgmr.msra.gmra.mxu0 %v4607_v8 }
 0x18a   : > { %v2645_v43 = vpop.f32.mrf.mxu1  ;;  %2890 = vmatmul.mubr.bf16.vlgmr.msra.gmra.mxu1 %v4609_v9  ;;  %2899 = vmatpush1.bf16.msra.mxu0 %v4229_v38  ;;  %v4312_v38 = vld [vmem:[#allocation5 + $0x9ec] ss:$48 sps:$4 sm:$0xff]  }
 0x18b   : > { %v4633_v44 = vadd.f32 %v2645_v43, %v2604_v42  ;;  %2940 = vmatpush1.bf16.msra.mxu1 %v4232_v39  ;;  %v4635_v47 = vpop.f32.mrf.mxu0  ;;  %2900 = vmatprep.subr.bf16.mxu0 %v4237_v40  ;;  %v4307_v39 = vld [vmem:[#allocation5 + $0x3e8] ss:$48 sps:$4 sm:$0xff]   ;;  %v4318_v42 = vld [vmem:[#allocation5 + $0x98c] ss:$48 sps:$4 sm:$0xff]  }
 0x18c   : > { %v4637_v48 = vpop.f32.mrf.mxu1  ;;  %2941 = vmatprep.subr.bf16.mxu1 %v4240_v41  ;;  %2930 = vmatprep.mubr.bf16.mxu0 %v4598_v49  ;;  %v4255_v49 = vld [vmem:[#allocation5 + $0x14c] ss:$48 sps:$4 sm:$0xff]   ;;  %v4310_v40 = vld [vmem:[#allocation5 + $0x9e8] ss:$48 sps:$4 sm:$0xff]  }
 0x18d   : > { %2971 = vmatprep.mubr.bf16.mxu1 %v4601_v52  ;;  %v2608_v53 = vpop.f32.mrf.mxu0  ;;  %v4258_v52 = vld [vmem:[#allocation5 + $0x74c] ss:$48 sps:$4 sm:$0xff]   ;;  %v4313_v43 = vld [vmem:[#allocation5 + $0x388] ss:$48 sps:$4 sm:$0xff]  }
 0x18e   : > { %v2649_v54 = vpop.f32.mrf.mxu1  ;;  %2901 = vmatpush1.bf16.msra.mxu0 %v4235_v45  ;;  %v4315_v41 = vld [vmem:[#allocation5 + $0x38c] ss:$48 sps:$4 sm:$0xff]   ;;  %v4316_v45 = vld [vmem:[#allocation5 + $0x988] ss:$48 sps:$4 sm:$0xff]  }
 0x18f   : > { %2942 = vmatpush1.bf16.msra.mxu1 %v4238_v46  ;;  %v2609_v57 = vpop.f32.mrf.mxu0  ;;  %2902 = vmatprep.subr.bf16.mxu0 %v4243_v50  ;;  %v4321_v46 = vld [vmem:[#allocation5 + $0x32c] ss:$48 sps:$4 sm:$0xff]   ;;  %v4322_v53 = vld [vmem:[#allocation5 + $0x928] ss:$48 sps:$4 sm:$0xff]   ;;  %v2648_v54 = vadd.f32 %v4637_v48, %v4635_v47 }
 0x190   : > { %v2650_v58 = vpop.f32.mrf.mxu1  ;;  %2943 = vmatprep.subr.bf16.mxu1 %v4246_v51  ;;  %v4324_v50 = vld [vmem:[#allocation5 + $0x92c] ss:$48 sps:$4 sm:$0xff]   ;;  %v4319_v51 = vld [vmem:[#allocation5 + $0x328] ss:$48 sps:$4 sm:$0xff]  }
 0x192   : > { %2903 = vmatpush1.bf16.msra.mxu0 %v4241_v55  ;;  %v2981_v55 = vpack.c.bf16 %v4627_v35, %v4627_v35  ;;  %v2980_v35 = vpack.c.bf16 %v4625_v28, %v4625_v28 }
 0x193   : > { %2944 = vmatpush1.bf16.msra.mxu1 %v4244_v56  ;;  %2904 = vmatprep.subr.bf16.mxu0 %v4249_v59  ;;  %v2983_v56 = vpack.c.bf16 %v2648_v54, %v2648_v54 }
 0x194   : > { %2945 = vmatprep.subr.bf16.mxu1 %v4252_v60 }
 0x196   : > { %2905 = vmatpush1.bf16.msra.mxu0 %v4247_v61 }
 0x197   : > { %2946 = vmatpush1.bf16.msra.mxu1 %v4250_v62  ;;  %2906 = vmatprep.subr.bf16.mxu0 %v4255_v49 }
 0x198   : > { %2947 = vmatprep.subr.bf16.mxu1 %v4258_v52 }
 0x19a   : > { %2907 = vmatpush1.bf16.msra.mxu0 %v4253_v63 }
 0x19b   : > { %2948 = vmatpush1.bf16.msra.mxu1 %v4256_v0  ;;  %2908 = vmatprep.subr.bf16.mxu0 %v4261_v1 }
 0x19c   : > { %2949 = vmatprep.subr.bf16.mxu1 %v4264_v2 }
 0x19e   : > { %2909 = vmatpush1.bf16.msra.mxu0 %v4259_v3 }
 0x19f   : > { %2950 = vmatpush1.bf16.msra.mxu1 %v4262_v4  ;;  %2910 = vmatprep.subr.bf16.mxu0 %v4267_v5 }
 0x1a0   : > { %2951 = vmatprep.subr.bf16.mxu1 %v4270_v6 }
 0x1a2   : > { %2911 = vmatpush1.bf16.msra.mxu0 %v4265_v7 }
 0x1a3   : > { %2952 = vmatpush1.bf16.msra.mxu1 %v4268_v10  ;;  %2912 = vmatprep.subr.bf16.mxu0 %v4273_v11 }
 0x1a4   : > { %2953 = vmatprep.subr.bf16.mxu1 %v4276_v12 }
 0x1a6   : > { %2913 = vmatpush1.bf16.msra.mxu0 %v4271_v13  ;;  %v2982_v13 = vpack.c.bf16 %v4633_v44, %v4633_v44 }
 0x1a7   : > { %2954 = vmatpush1.bf16.msra.mxu1 %v4274_v14  ;;  %2914 = vmatprep.subr.bf16.mxu0 %v4279_v15 }
 0x1a8   : > { %2955 = vmatprep.subr.bf16.mxu1 %v4282_v16 }
 0x1aa   : > { %2915 = vmatpush2.bf16.msra.mxu0 %v4277_v17 }
 0x1ab   : > { %2956 = vmatpush2.bf16.msra.mxu1 %v4280_v18  ;;  %2916 = vmatprep.subr.bf16.mxu0 %v4285_v19 }
 0x1ac   : > { %2957 = vmatprep.subr.bf16.mxu1 %v4288_v20 }
 0x1ae   : > { %2917 = vmatpush2.bf16.msra.mxu0 %v4283_v21 }
 0x1af   : > { %2958 = vmatpush2.bf16.msra.mxu1 %v4286_v22  ;;  %2918 = vmatprep.subr.bf16.mxu0 %v4291_v23 }
 0x1b0   : > { %2959 = vmatprep.subr.bf16.mxu1 %v4294_v24 }
 0x1b2   : > { %2919 = vmatpush2.bf16.msra.mxu0 %v4289_v25 }
 0x1b3   : > { %2960 = vmatpush2.bf16.msra.mxu1 %v4292_v26  ;;  %2920 = vmatprep.subr.bf16.mxu0 %v4297_v27 }
 0x1b4   : > { %2961 = vmatprep.subr.bf16.mxu1 %v4300_v29 }
 0x1b6   : > { %2921 = vmatpush2.bf16.msra.mxu0 %v4295_v30 }
 0x1b7   : > { %2962 = vmatpush2.bf16.msra.mxu1 %v4298_v31  ;;  %2922 = vmatprep.subr.bf16.mxu0 %v4303_v32 }
 0x1b8   : > { %2963 = vmatprep.subr.bf16.mxu1 %v4306_v33 }
 0x1ba   : > { %2923 = vmatpush2.bf16.msra.mxu0 %v4301_v34 }
 0x1bb   : > { %2964 = vmatpush2.bf16.msra.mxu1 %v4304_v36  ;;  %2924 = vmatprep.subr.bf16.mxu0 %v4309_v37 }
 0x1bc   : > { %2965 = vmatprep.subr.bf16.mxu1 %v4312_v38 }
 0x1be   : > { %2925 = vmatpush2.bf16.msra.mxu0 %v4307_v39 }
 0x1bf   : > { %2966 = vmatpush2.bf16.msra.mxu1 %v4310_v40  ;;  %2926 = vmatprep.subr.bf16.mxu0 %v4315_v41 }
 0x1c0   : > { %2967 = vmatprep.subr.bf16.mxu1 %v4318_v42 }
 0x1c2   : > { %2927 = vmatpush2.bf16.msra.mxu0 %v4313_v43 }
 0x1c3   : > { %2968 = vmatpush2.bf16.msra.mxu1 %v4316_v45  ;;  %2928 = vmatprep.subr.bf16.mxu0 %v4321_v46 }
 0x1c4   : > { %2969 = vmatprep.subr.bf16.mxu1 %v4324_v50 }
 0x1c6   : > { %2929 = vmatpush2.bf16.msra.mxu0 %v4319_v51 }
 0x1c7   : > { %2970 = vmatpush2.bf16.msra.mxu1 %v4322_v53 }
 0x1c9   : > { %v2686_v57 = vpop.f32.mrf.mxu0  ;;  %2931 = vmatmul.mubr.bf16.vlgmr.msra.gmra.mxu0 %v4607_v8 }
 0x1ca   : > { %v2727_v58 = vpop.f32.mrf.mxu1  ;;  %2972 = vmatmul.mubr.bf16.vlgmr.msra.gmra.mxu1 %v4609_v9  ;;  %3024 = vmatprep.mubr.bf16.mxu0 %v2981_v55 }
 0x1cb   : > { %3064 = vmatprep.mubr.bf16.mxu1 %v2983_v56  ;;  %v2728_v59 = vadd.f32 %v2727_v58, %v2686_v57  ;;  %v2688_v60 = vpop.f32.mrf.mxu0 }
 0x1cc   : > { %v2729_v61 = vpop.f32.mrf.mxu1 }
 0x1cd   : > { %v2730_v62 = vadd.f32 %v2729_v61, %v2688_v60  ;;  %v2690_v49 = vpop.f32.mrf.mxu0  ;;  %v2984_v52 = vpack.c.bf16 %v2728_v59, %v2728_v59  ;;  %v4457_v61 = vmov 0  }
 0x1ce   : > { %v2731_v47 = vpop.f32.mrf.mxu1 }
 0x1cf   : > { %v2985_v48 = vpack.c.bf16 %v2730_v62, %v2730_v62  ;;  %v2691_v63 = vpop.f32.mrf.mxu0 }
 0x1d0   : > { %v2732_v0 = vpop.f32.mrf.mxu1 }
 0x1d1   : > { %3006 = vmatprep.subr.bf16.mxu0 %v2985_v48 }
 0x1d2   : > { %3007 = vmatpush1.bf16.xpose.msra.mxu0 %v2984_v52 }
 0x1d9   : > { %3025 = vmatmul.mubr.bf16.vlgmr.msra.gmra.mxu0 %v2980_v35 }
 0x1da   : > { %3134 = vmatprep.mubr.bf16.mxu0 %v4457_v61 }
 0x209   : > { %v2768_v8 = vpop.f32.mrf.mxu0 }
 0x20a   : > { %v2809_v9 = vpop.f32.mrf.mxu1 }
 0x20b   : > { %v2810_v1 = vadd.f32 %v2809_v9, %v2768_v8  ;;  %v2770_v2 = vpop.f32.mrf.mxu0 }
 0x20c   : > { %v2811_v3 = vpop.f32.mrf.mxu1 }
 0x20d   : > { %v2812_v4 = vadd.f32 %v2811_v3, %v2770_v2  ;;  %v2772_v5 = vpop.f32.mrf.mxu0  ;;  %v2986_v10 = vpack.c.bf16 %v2810_v1, %v2810_v1 }
 0x20e   : > { %v2813_v6 = vpop.f32.mrf.mxu1 }
 0x20f   : > { %v2987_v7 = vpack.c.bf16 %v2812_v4, %v2812_v4  ;;  %v2773_v11 = vpop.f32.mrf.mxu0 }
 0x210   : > { %v2814_v12 = vpop.f32.mrf.mxu1 }
 0x211   : > { %3046 = vmatprep.subr.bf16.mxu1 %v2987_v7 }
 0x212   : > { %3047 = vmatpush1.bf16.xpose.msra.mxu1 %v2986_v10 }
 0x219   : > { %3065 = vmatmul.mubr.bf16.vlgmr.msra.gmra.mxu1 %v2982_v13 }
 0x21a   : > { %3175 = vmatprep.mubr.bf16.mxu1 %v4457_v61 }
 0x249   : > { %v2850_v28 = vpop.f32.mrf.mxu0 }
 0x24a   : > { %v2891_v14 = vpop.f32.mrf.mxu1 }
 0x24b   : > { %v2892_v15 = vadd.f32 %v2891_v14, %v2850_v28  ;;  %v2852_v16 = vpop.f32.mrf.mxu0 }
 0x24c   : > { %v2893_v17 = vpop.f32.mrf.mxu1 }
 0x24d   : > { %v2988_v18 = vpack.c.bf16 %v2892_v15, %v2892_v15  ;;  %v2894_v19 = vadd.f32 %v2893_v17, %v2852_v16  ;;  %v2854_v20 = vpop.f32.mrf.mxu0 }
 0x24e   : > { %v2895_v21 = vpop.f32.mrf.mxu1 }
 0x24f   : > { %v3091_v22 = vsel %vm3089_vm0, %v2988_v18, 0  ;;  %v2989_v23 = vpack.c.bf16 %v2894_v19, %v2894_v19  ;;  %v2855_v24 = vpop.f32.mrf.mxu0 }
 0x250   : > { %v2896_v25 = vpop.f32.mrf.mxu1 }
 0x251   : > { %3678 = vmatprep.subr.msk.bf16.mxu0 %vm3089_vm0, %v2989_v23 }
 0x252   : > { %3117 = vmatpush1.bf16.msra.mxu0 %v3091_v22 }
 0x289   : > { %v2932_v44 = vpop.f32.mrf.mxu0 }
 0x28a   : > { %v2973_v26 = vpop.f32.mrf.mxu1 }
 0x28b   : > { %v2974_v27 = vadd.f32 %v2973_v26, %v2932_v44  ;;  %v2934_v29 = vpop.f32.mrf.mxu0 }
 0x28c   : > { %v2975_v30 = vpop.f32.mrf.mxu1 }
 0x28d   : > { %v2990_v31 = vpack.c.bf16 %v2974_v27, %v2974_v27  ;;  %v2976_v32 = vadd.f32 %v2975_v30, %v2934_v29  ;;  %v2936_v33 = vpop.f32.mrf.mxu0 }
 0x28e   : > { %v2977_v34 = vpop.f32.mrf.mxu1 }
 0x28f   : > { %v3097_v36 = vsel %vm3089_vm0, %v2990_v31, 0  ;;  %v2991_v37 = vpack.c.bf16 %v2976_v32, %v2976_v32  ;;  %v2937_v38 = vpop.f32.mrf.mxu0 }
 0x290   : > { %v2978_v39 = vpop.f32.mrf.mxu1 }
 0x291   : > { %3680 = vmatprep.subr.msk.bf16.mxu1 %vm3089_vm0, %v2991_v37 }
 0x292   : > { %3158 = vmatpush1.bf16.msra.mxu1 %v3097_v36 }
 0x299   : > { %v3026_v40 = vpop.f32.mrf.mxu0 }
 0x29b   : > { %v3028_v41 = vpop.f32.mrf.mxu0 }
 0x29d   : > { %v3029_v42 = vpop.f32.mrf.mxu0 }
 0x29f   : > { %v3030_v43 = vpop.f32.mrf.mxu0 }
 0x2d9   : > { %v3066_v45 = vpop.f32.mrf.mxu1 }
 0x2da   : > { %v3067_v46 = vadd.f32 %v3066_v45, %v3026_v40 }
 0x2db   : > { %v3068_v50 = vpop.f32.mrf.mxu1 }
 0x2dc   : > { %v3073_v51 = vsel %vm3072_vm1, %v3067_v46, -inf }
 0x2dd   : > { %v3069_v53 = vpop.f32.mrf.mxu1  ;;  %3074 = vmax.xlane.f32.xlu0 %v3073_v51 }
 0x2df   : > { %v3070_v54 = vpop.f32.mrf.mxu1 }
 0x366   : > { %v3075_v55 = vpop.xlane.xlu0 %3074 }
 0x367   : > { %v3076_v56 = vsub.f32 %v3067_v46, %v3075_v55 }
 0x369   : > { %v3077_v57 = vmul.f32 5.0, %v3076_v56 }
 0x36b   : > { %v3078_v58 = vmul.f32 1.442695, %v3077_v57 }
 0x36d   : > { %4325 = vpow2.f32 %v3078_v58 }
 0x37a   : > { %v4326_v59 = vpop.eup %4325 }
 0x37b   : > { %v3080_v60 = vsel %vm3072_vm1, %v4326_v59, 0.0 }
 0x37c   : > { %3081 = vadd.xlane.f32.xlu0 %v3080_v60 }
 0x405   : > { %v3082_v62 = vpop.xlane.xlu0 %3081 }
 0x406   : > { %4327 = vrcp.f32 %v3082_v62 }
 0x413   : > { %v4328_v49 = vpop.eup %4327 }
 0x414   : > { %v3084_v47 = vmul.f32 %v4328_v49, %v4326_v59 }
 0x416   : > { %v3085_v48 = vpack.c.bf16 %v3084_v47, %v3084_v47 }
 0x418   : > { %3679 = vmatmul.mubr.msk.bf16.vlgmr.msra.gmra.mxu0 %vm3072_vm1, %v3085_v48  ;;  %3681 = vmatmul.mubr.msk.bf16.vlgmr.msra.gmra.mxu1 %vm3072_vm1, %v3085_v48 }
 0x4d8   : > { %v3136_v52 = vpop.f32.mrf.mxu0  ;;  %v3177_v63 = vpop.f32.mrf.mxu1 }
 0x4d9   : > { %3184 = vst [vmem:[%s174_s15] sm:$0xff] %v3136_v52  ;;  %3186 = vst [vmem:[%s174_s15 + $0x10] sm:$0xff] %v3177_v63 }
 0x4da   : > { %v3138_v0 = vpop.f32.mrf.mxu0  ;;  %v3179_v35 = vpop.f32.mrf.mxu1 }
 0x4db   : > { %3185 = vst [vmem:[%s174_s15 + $0x8] sm:$0xff] %v3138_v0  ;;  %3187 = vst [vmem:[%s174_s15 + $0x18] sm:$0xff] %v3179_v35 }
 0x4dc   : > { %v3140_v8 = vpop.f32.mrf.mxu0  ;;  %v3181_v9 = vpop.f32.mrf.mxu1 }
 0x4dd   : > { %4396 = shalt.err (!%p4393_p0)
}
 0x4de   : > { %s4397_s27 = scalar_lea.hbm %s4667_s20, 512  ;;  %s4401_s4 = scalar_lea.hbm %s4710_s2, 1024 }
 0x4df   : > { %p4398_p5 = scmp.ne.s32.totalorder %s4667_s20, %s4397_s27  ;;  %p4402_p1 = scmp.lt.s32.totalorder %s4667_s20, %s4710_s2 }
 0x4e0   : > { %p4403_p4 = scmp.lt.s32.totalorder %s4401_s4, %s4397_s27 }
 0x4e1   : > { %p4399_p9 = pnand %p4398_p5, %p4726_p3 }
 0x4e2   : > { %p4404_p6 = por %p4403_p4, %p4402_p1 }
 0x4e3   : > { %p4400_p12 = pneg %p4399_p9 }
 0x4e5   : > { %p4405_p8 = pnand %p4404_p6, %p4400_p12 }
 0x4e7   : > { %4408 = shalt.err (!%p4405_p8)
}
 0x4e8   : > { %3695 = dma.vmem_to_hbm [thread:$0]  (%p4726_p3), %s4662_s17, 512, %s4667_s20, %s3189_s13   ;;  %v3141_v1 = vpop.f32.mrf.mxu0  ;;  %v3182_v2 = vpop.f32.mrf.mxu1 }
 0x4e9 PF: > { %s3215_s7 = sand.u32 1, %s4439_s9   ;;  %p4727_p11 = scmp.ne.s32.totalorder %s4716_s16, 0 }
 0x4ea   : > { %p4728_p7 = scmp.ge.s32.totalorder %s4451_s12, 2  ;;  %s3216_s14 = scalar_lea.sflag [#allocation4], %s3215_s7 }
 0x4ec   : > { %p3706_p10 = pnand %p4728_p7, %p4727_p11 }
 0x4ee   : > { %p3707_p2 = pneg %p3706_p10 }
 0x4f0   : > { %4434 = dma.done.wait (%p3707_p2), %s3216_s14, 512  }
 0x4f1   : > { %4436 = vsyncadd (%p3707_p2), %s3216_s14, 4294966784  ;;  %p16_p3 = scmp.ge.s32.totalorder %s4528_s21, 4   ;;  %s4729_s9 = smov %s4443_s10 }
 0x4f2   : > { %s4730_s10 = smov %s4447_s11  ;;  %s4731_s11 = smov %s4545_s29 }
 0x4f3   : > { %s4732_s12 = smov %s4528_s21  ;;  %18 = sbr.rel (!%p16_p3) target bundleno = 6 (0x6), region = 77 }
 0x4f8   :  { %3221 = vsyncpa [#allocation3], 1 }
 0x4f9   :  { %3223 = vsyncpa [#allocation3 + $0x1], 1 }
 0x4fa   :  { %3224 = vsyncpa [#allocation6], 1 }
 0x4fb   :  { %3225 = vsyncpa [#allocation4], 1 }
 0x4fc   :  { %3227 = vsyncpa [#allocation4 + $0x1], 1 }

</bundles_post_ra>
